<compile_context>
chip_gen: v7x
topology: tpu7x:2x2x1
jax: 0.10.0
libtpu: 0.0.40
codegen_flags: <defaults>
</compile_context>

<pallas_src>
import jax
import jax.numpy as jnp
from jax.experimental import pallas as pl
from jax.experimental.pallas import tpu as pltpu

# Small synthetic BERT config.
B, S, H = 2, 8, 128          # batch, seq, hidden
NUM_HEADS, HEAD_DIM = 4, 32  # H = NUM_HEADS * HEAD_DIM
FFN = 256
VOCAB = 64
NUM_LAYERS = 2
EPS = 1e-12


# ---------------------------------------------------------------------------
# In-kernel helpers (f32 math)
# ---------------------------------------------------------------------------
def _ln(x, g, b):
    mu = jnp.mean(x, axis=-1, keepdims=True)
    var = jnp.mean((x - mu) ** 2, axis=-1, keepdims=True)
    return (x - mu) * jax.lax.rsqrt(var + EPS) * g + b


# ---------------------------------------------------------------------------
# Fused Pallas kernel: embeddings -> N encoder layers -> masked mean pooling
# ---------------------------------------------------------------------------
def sentence_bert_kernel(ids_ref, mask_ref, tok_emb_ref, pos_emb_ref,
                         emb_g_ref, emb_b_ref,
                         wqkv_ref, bqkv_ref, wo_ref, bo_ref,
                         ln1_g_ref, ln1_b_ref,
                         w1_ref, b1_ref, w2_ref, b2_ref,
                         ln2_g_ref, ln2_b_ref, o_ref):
    # ---- Embedding: exact gather via one-hot matmul (bf16 operands, f32 acc) ----
    ids = ids_ref[...]                                               # (B*S, 1) int32
    vocab_iota = jax.lax.broadcasted_iota(jnp.int32, (B * S, VOCAB), 1)
    onehot = (vocab_iota == ids).astype(jnp.bfloat16)                # 0/1 exact in bf16
    tok = jnp.dot(onehot, tok_emb_ref[...],
                  preferred_element_type=jnp.float32)                # (B*S, H) f32
    # Position embeddings via broadcast add on the 3-D view (no sublane concat).
    x3 = tok.reshape(B, S, H) + pos_emb_ref[...]
    x = _ln(x3.reshape(B * S, H), emb_g_ref[...], emb_b_ref[...])    # (B*S, H) f32

    # ---- Additive attention bias from the (B, S) padding mask, built once ----
    mask = mask_ref[...]                                             # (B, S) f32
    bias_b = ((mask - 1.0) * 1e9)[:, None, :]                        # (B, 1, S)
    # Replicate to the head-major (h*B+b) batch layout used by the batched einsums.
    bias_hb = jnp.concatenate([bias_b] * NUM_HEADS, axis=0)          # (NH*B, 1, S)

    def to_heads(t):
        # (B*S, H) -> (NUM_HEADS*B, S, HEAD_DIM), head-major leading batch (idx = h*B+b).
        return jnp.concatenate(
            [t[:, h * HEAD_DIM:(h + 1) * HEAD_DIM].reshape(B, S, HEAD_DIM)
             for h in range(NUM_HEADS)], axis=0)

    for l in range(NUM_LAYERS):                                      # static unroll (2 layers)
        xb = x.astype(jnp.bfloat16)

        # Fused QKV projection: ONE MXU pass + ONE bias add.
        # (1/sqrt(HEAD_DIM) is folded into the q columns of wqkv at init.)
        qkv = jnp.dot(xb, wqkv_ref[l],
                      preferred_element_type=jnp.float32) + bqkv_ref[l]   # (B*S, 3H)
        qh = to_heads(qkv[:, 0:H].astype(jnp.bfloat16))              # (NH*B, S, HD)
        kh = to_heads(qkv[:, H:2 * H].astype(jnp.bfloat16))
        vh = to_heads(qkv[:, 2 * H:3 * H].astype(jnp.bfloat16))

        # All heads in ONE pair of batched einsums (single leading batch dim = NH*B),
        # one bias add and one softmax per layer.
        s = jnp.einsum('bqd,bkd->bqk', qh, kh,
                       preferred_element_type=jnp.float32) + bias_hb      # (NH*B, S, S)
        s = s - jnp.max(s, axis=-1, keepdims=True)
        p = jnp.exp(s)
        p = p * pl.reciprocal(jnp.sum(p, axis=-1, keepdims=True), approx=True)
        ctx_h = jnp.einsum('bqk,bkd->bqd', p.astype(jnp.bfloat16), vh,
                           preferred_element_type=jnp.float32)            # (NH*B, S, HD)
        ctx = jnp.concatenate(
            [ctx_h[h * B:(h + 1) * B].reshape(B * S, HEAD_DIM)
             for h in range(NUM_HEADS)], axis=-1)                         # (B*S, H) f32

        attn_out = jnp.dot(ctx.astype(jnp.bfloat16), wo_ref[l],
                           preferred_element_type=jnp.float32) + bo_ref[l]
        h1 = _ln(x + attn_out, ln1_g_ref[l], ln1_b_ref[l])

        inter = jnp.dot(h1.astype(jnp.bfloat16), w1_ref[l],
                        preferred_element_type=jnp.float32) + b1_ref[l]
        # TODO(synk): HF BERT uses exact erf-GELU; tanh approximation kept (guaranteed lowering).
        inter = jax.nn.gelu(inter, approximate=True)
        ffn_out = jnp.dot(inter.astype(jnp.bfloat16), w2_ref[l],
                          preferred_element_type=jnp.float32) + b2_ref[l]
        x = _ln(h1 + ffn_out, ln2_g_ref[l], ln2_b_ref[l])

    # ---- Masked mean pooling over tokens ("mean-tokens"); exact divide for parity ----
    xf = x.reshape(B, S, H)
    summed = jnp.sum(xf * mask[:, :, None], axis=1)                  # (B, H)
    cnt = jnp.maximum(jnp.sum(mask, axis=1, keepdims=True), 1e-9)    # (B, 1)
    o_ref[...] = (summed / cnt).astype(o_ref.dtype)


# ---------------------------------------------------------------------------
# Wrapper: one gridless pallas_call, everything VMEM-resident.
# ---------------------------------------------------------------------------
@jax.jit
def sentence_bert_forward(params, token_ids, attention_mask):
    tok_emb, pos_emb, emb_g, emb_b, stacked = params
    ids2d = token_ids.reshape(B * S, 1).astype(jnp.int32)
    mask = attention_mask.astype(jnp.float32)                        # (B, S)
    return pl.pallas_call(
        sentence_bert_kernel,
        out_shape=jax.ShapeDtypeStruct((B, H), jnp.float32),
        # ~0.7 MiB resident; 8 MiB leaves generous headroom yet stays under the 16 MiB
        # scoped default on v5e (32 MiB on v6e/v7x) so surrounding fusions keep their VMEM.
        compiler_params=pltpu.CompilerParams(vmem_limit_bytes=8 * 1024 * 1024),
    )(ids2d, mask, tok_emb, pos_emb, emb_g, emb_b, *stacked)


# ---------------------------------------------------------------------------
# Deterministic parameter initialization (synthetic; no checkpoint load).
# Per-layer weights stacked along a leading layer axis; matmul weights bf16.
# Q/K/V are fused into one (H, 3H) weight, with 1/sqrt(HEAD_DIM) folded into the q columns.
# ---------------------------------------------------------------------------
def init_params(key):
    keys = jax.random.split(key, 2 + NUM_LAYERS * 6)
    it = iter(range(len(keys)))

    def nrm(shape):
        return jax.random.normal(keys[next(it)], shape, jnp.float32) * 0.02

    tok_emb = nrm((VOCAB, H)).astype(jnp.bfloat16)   # bf16 table (one-hot gather on MXU)
    pos_emb = nrm((S, H))
    emb_g = jnp.ones((1, H), jnp.float32)
    emb_b = jnp.zeros((1, H), jnp.float32)

    scale = 1.0 / (HEAD_DIM ** 0.5)
    layers = []
    for _ in range(NUM_LAYERS):
        wq, wk, wv = nrm((H, H)), nrm((H, H)), nrm((H, H))
        wo = nrm((H, H))
        w1, w2 = nrm((H, FFN)), nrm((FFN, H))
        wqkv = jnp.concatenate([wq * scale, wk, wv], axis=1)     # (H, 3H), scale folded into q
        layers.append(dict(wqkv=wqkv, wo=wo, w1=w1, w2=w2))

    def stk(name):
        return jnp.stack([l[name] for l in layers]).astype(jnp.bfloat16)

    zeros_h = jnp.zeros((NUM_LAYERS, 1, H), jnp.float32)
    ones_h = jnp.ones((NUM_LAYERS, 1, H), jnp.float32)
    zeros_3h = jnp.zeros((NUM_LAYERS, 1, 3 * H), jnp.float32)
    zeros_ffn = jnp.zeros((NUM_LAYERS, 1, FFN), jnp.float32)

    stacked = (
        stk('wqkv'), zeros_3h,   # fused QKV weight, fused QKV bias
        stk('wo'), zeros_h,      # attention output proj
        ones_h, zeros_h,         # ln1_g, ln1_b
        stk('w1'), zeros_ffn,    # ffn in
        stk('w2'), zeros_h,      # ffn out
        ones_h, zeros_h,         # ln2_g, ln2_b
    )
    return tok_emb, pos_emb, emb_g, emb_b, stacked


if __name__ == "__main__":
    key = jax.random.PRNGKey(0)
    k_param, k_tok = jax.random.split(key)

    params = init_params(k_param)

    # TODO(synk): string tokenization (HuggingFace tokenizer) has no Pallas equivalent;
    # we feed deterministic integer token ids + attention mask instead of raw sentences.
    token_ids = jax.random.randint(k_tok, (B, S), 0, VOCAB)
    attention_mask = jnp.array(
        [[1, 1, 1, 1, 1, 1, 1, 1],
         [1, 1, 1, 1, 1, 0, 0, 0]], dtype=jnp.float32)

    emb = sentence_bert_forward(params, token_ids, attention_mask)
    emb = jax.block_until_ready(emb)
    assert emb.shape == (B, H) and emb.dtype == jnp.float32
    assert bool(jnp.all(jnp.isfinite(emb)))
    print("KERNEL_OK")
</pallas_src>

<mosaic_0001>
module attributes {stable_mosaic.version = 11 : i64} {
  func.func @sentence_bert_kernel(%arg0: memref<16x1xi32, #tpu.memory_space<vmem>>, %arg1: memref<2x8xf32, #tpu.memory_space<vmem>>, %arg2: memref<64x128xbf16, #tpu.memory_space<vmem>>, %arg3: memref<8x128xf32, #tpu.memory_space<vmem>>, %arg4: memref<1x128xf32, #tpu.memory_space<vmem>>, %arg5: memref<1x128xf32, #tpu.memory_space<vmem>>, %arg6: memref<2x128x384xbf16, #tpu.memory_space<vmem>>, %arg7: memref<2x1x384xf32, #tpu.memory_space<vmem>>, %arg8: memref<2x128x128xbf16, #tpu.memory_space<vmem>>, %arg9: memref<2x1x128xf32, #tpu.memory_space<vmem>>, %arg10: memref<2x1x128xf32, #tpu.memory_space<vmem>>, %arg11: memref<2x1x128xf32, #tpu.memory_space<vmem>>, %arg12: memref<2x128x256xbf16, #tpu.memory_space<vmem>>, %arg13: memref<2x1x256xf32, #tpu.memory_space<vmem>>, %arg14: memref<2x256x128xbf16, #tpu.memory_space<vmem>>, %arg15: memref<2x1x128xf32, #tpu.memory_space<vmem>>, %arg16: memref<2x1x128xf32, #tpu.memory_space<vmem>>, %arg17: memref<2x1x128xf32, #tpu.memory_space<vmem>>, %arg18: memref<2x128xf32, #tpu.memory_space<vmem>>) attributes {dimension_semantics = [], scalar_prefetch = 0 : i64, scratch_operands = 0 : i64, tpu.core_type = #tpu.core_type<tc>} {
    %c0 = arith.constant 0 : index
    %c0_0 = arith.constant 0 : index
    %0 = vector.load %arg0[%c0, %c0_0] : memref<16x1xi32, #tpu.memory_space<vmem>>, vector<16x1xi32>
    %1 = tpu.iota {dimensions = array<i32: 1>} : vector<16x64xi32>
    %2 = vector.broadcast %0 : vector<16x1xi32> to vector<16x64xi32>
    %3 = arith.cmpi eq, %1, %2 : vector<16x64xi32>
    %4 = arith.extui %3 : vector<16x64xi1> to vector<16x64xi32>
    %5 = arith.sitofp %4 : vector<16x64xi32> to vector<16x64xf32>
    %6 = arith.truncf %5 : vector<16x64xf32> to vector<16x64xbf16>
    %c0_1 = arith.constant 0 : index
    %c0_2 = arith.constant 0 : index
    %7 = vector.load %arg2[%c0_1, %c0_2] : memref<64x128xbf16, #tpu.memory_space<vmem>>, vector<64x128xbf16>
    %cst = arith.constant dense<0.000000e+00> : vector<16x128xf32>
    %8 = tpu.matmul %6, %7, %cst {dimension_numbers = #tpu.dot_dimension_numbers<[1], [0], [0], [1], [0, 0, 1, 1], [], []>} : vector<16x64xbf16>, vector<64x128xbf16>, vector<16x128xf32> -> vector<16x128xf32>
    %9 = vector.shape_cast %8 : vector<16x128xf32> to vector<2x8x128xf32>
    %c0_3 = arith.constant 0 : index
    %c0_4 = arith.constant 0 : index
    %10 = vector.load %arg3[%c0_3, %c0_4] : memref<8x128xf32, #tpu.memory_space<vmem>>, vector<8x128xf32>
    %11 = vector.shape_cast %10 : vector<8x128xf32> to vector<1x8x128xf32>
    %12 = vector.broadcast %11 : vector<1x8x128xf32> to vector<2x8x128xf32>
    %13 = arith.addf %9, %12 : vector<2x8x128xf32>
    %14 = vector.shape_cast %13 : vector<2x8x128xf32> to vector<16x128xf32>
    %c0_5 = arith.constant 0 : index
    %c0_6 = arith.constant 0 : index
    %15 = vector.load %arg4[%c0_5, %c0_6] : memref<1x128xf32, #tpu.memory_space<vmem>>, vector<1x128xf32>
    %c0_7 = arith.constant 0 : index
    %c0_8 = arith.constant 0 : index
    %16 = vector.load %arg5[%c0_7, %c0_8] : memref<1x128xf32, #tpu.memory_space<vmem>>, vector<1x128xf32>
    %cst_9 = arith.constant dense<0.000000e+00> : vector<16xf32>
    %17 = vector.multi_reduction <add>, %14, %cst_9 [1] : vector<16x128xf32> to vector<16xf32>
    %18 = vector.shape_cast %17 : vector<16xf32> to vector<16x1xf32>
    %cst_10 = arith.constant 1.280000e+02 : f32
    %19 = vector.broadcast %cst_10 : f32 to vector<16x1xf32>
    %20 = arith.divf %18, %19 : vector<16x1xf32>
    %21 = vector.broadcast %20 : vector<16x1xf32> to vector<16x128xf32>
    %22 = arith.subf %14, %21 : vector<16x128xf32>
    %23 = arith.mulf %22, %22 : vector<16x128xf32>
    %cst_11 = arith.constant dense<0.000000e+00> : vector<16xf32>
    %24 = vector.multi_reduction <add>, %23, %cst_11 [1] : vector<16x128xf32> to vector<16xf32>
    %25 = vector.shape_cast %24 : vector<16xf32> to vector<16x1xf32>
    %cst_12 = arith.constant 1.280000e+02 : f32
    %26 = vector.broadcast %cst_12 : f32 to vector<16x1xf32>
    %27 = arith.divf %25, %26 : vector<16x1xf32>
    %28 = vector.broadcast %20 : vector<16x1xf32> to vector<16x128xf32>
    %29 = arith.subf %14, %28 : vector<16x128xf32>
    %cst_13 = arith.constant 9.99999996E-13 : f32
    %30 = vector.broadcast %cst_13 : f32 to vector<16x1xf32>
    %31 = arith.addf %27, %30 : vector<16x1xf32>
    %32 = math.rsqrt %31 : vector<16x1xf32>
    %33 = vector.broadcast %32 : vector<16x1xf32> to vector<16x128xf32>
    %34 = arith.mulf %29, %33 : vector<16x128xf32>
    %35 = vector.broadcast %15 : vector<1x128xf32> to vector<16x128xf32>
    %36 = arith.mulf %34, %35 : vector<16x128xf32>
    %37 = vector.broadcast %16 : vector<1x128xf32> to vector<16x128xf32>
    %38 = arith.addf %36, %37 : vector<16x128xf32>
    %c0_14 = arith.constant 0 : index
    %c0_15 = arith.constant 0 : index
    %39 = vector.load %arg1[%c0_14, %c0_15] : memref<2x8xf32, #tpu.memory_space<vmem>>, vector<2x8xf32>
    %cst_16 = arith.constant 1.000000e+00 : f32
    %40 = vector.broadcast %cst_16 : f32 to vector<2x8xf32>
    %41 = arith.subf %39, %40 : vector<2x8xf32>
    %cst_17 = arith.constant 1.000000e+09 : f32
    %42 = vector.broadcast %cst_17 : f32 to vector<2x8xf32>
    %43 = arith.mulf %41, %42 : vector<2x8xf32>
    %44 = vector.shape_cast %43 : vector<2x8xf32> to vector<2x1x8xf32>
    %45 = tpu.concatenate %44, %44, %44, %44 in 0 : vector<2x1x8xf32>, vector<2x1x8xf32>, vector<2x1x8xf32>, vector<2x1x8xf32> -> vector<8x1x8xf32>
    %46 = arith.truncf %38 : vector<16x128xf32> to vector<16x128xbf16>
    %c0_18 = arith.constant 0 : index
    %c0_19 = arith.constant 0 : index
    %c0_20 = arith.constant 0 : index
    %47 = vector.load %arg6[%c0_18, %c0_19, %c0_20] : memref<2x128x384xbf16, #tpu.memory_space<vmem>>, vector<1x128x384xbf16>
    %48 = vector.shape_cast %47 : vector<1x128x384xbf16> to vector<128x384xbf16>
    %cst_21 = arith.constant dense<0.000000e+00> : vector<16x384xf32>
    %49 = tpu.matmul %46, %48, %cst_21 {dimension_numbers = #tpu.dot_dimension_numbers<[1], [0], [0], [1], [0, 0, 1, 1], [], []>} : vector<16x128xbf16>, vector<128x384xbf16>, vector<16x384xf32> -> vector<16x384xf32>
    %c0_22 = arith.constant 0 : index
    %c0_23 = arith.constant 0 : index
    %c0_24 = arith.constant 0 : index
    %50 = vector.load %arg7[%c0_22, %c0_23, %c0_24] : memref<2x1x384xf32, #tpu.memory_space<vmem>>, vector<1x1x384xf32>
    %51 = vector.shape_cast %50 : vector<1x1x384xf32> to vector<1x384xf32>
    %52 = vector.broadcast %51 : vector<1x384xf32> to vector<16x384xf32>
    %53 = arith.addf %49, %52 : vector<16x384xf32>
    %54 = vector.extract_strided_slice %53 {offsets = [0, 0], sizes = [16, 128], strides = [1, 1]} : vector<16x384xf32> to vector<16x128xf32>
    %55 = arith.truncf %54 : vector<16x128xf32> to vector<16x128xbf16>
    %56 = vector.extract_strided_slice %55 {offsets = [0, 0], sizes = [16, 32], strides = [1, 1]} : vector<16x128xbf16> to vector<16x32xbf16>
    %57 = vector.shape_cast %56 : vector<16x32xbf16> to vector<2x8x32xbf16>
    %58 = vector.extract_strided_slice %55 {offsets = [0, 32], sizes = [16, 32], strides = [1, 1]} : vector<16x128xbf16> to vector<16x32xbf16>
    %59 = vector.shape_cast %58 : vector<16x32xbf16> to vector<2x8x32xbf16>
    %60 = vector.extract_strided_slice %55 {offsets = [0, 64], sizes = [16, 32], strides = [1, 1]} : vector<16x128xbf16> to vector<16x32xbf16>
    %61 = vector.shape_cast %60 : vector<16x32xbf16> to vector<2x8x32xbf16>
    %62 = vector.extract_strided_slice %55 {offsets = [0, 96], sizes = [16, 32], strides = [1, 1]} : vector<16x128xbf16> to vector<16x32xbf16>
    %63 = vector.shape_cast %62 : vector<16x32xbf16> to vector<2x8x32xbf16>
    %64 = tpu.concatenate %57, %59, %61, %63 in 0 : vector<2x8x32xbf16>, vector<2x8x32xbf16>, vector<2x8x32xbf16>, vector<2x8x32xbf16> -> vector<8x8x32xbf16>
    %65 = vector.extract_strided_slice %53 {offsets = [0, 128], sizes = [16, 128], strides = [1, 1]} : vector<16x384xf32> to vector<16x128xf32>
    %66 = arith.truncf %65 : vector<16x128xf32> to vector<16x128xbf16>
    %67 = vector.extract_strided_slice %66 {offsets = [0, 0], sizes = [16, 32], strides = [1, 1]} : vector<16x128xbf16> to vector<16x32xbf16>
    %68 = vector.shape_cast %67 : vector<16x32xbf16> to vector<2x8x32xbf16>
    %69 = vector.extract_strided_slice %66 {offsets = [0, 32], sizes = [16, 32], strides = [1, 1]} : vector<16x128xbf16> to vector<16x32xbf16>
    %70 = vector.shape_cast %69 : vector<16x32xbf16> to vector<2x8x32xbf16>
    %71 = vector.extract_strided_slice %66 {offsets = [0, 64], sizes = [16, 32], strides = [1, 1]} : vector<16x128xbf16> to vector<16x32xbf16>
    %72 = vector.shape_cast %71 : vector<16x32xbf16> to vector<2x8x32xbf16>
    %73 = vector.extract_strided_slice %66 {offsets = [0, 96], sizes = [16, 32], strides = [1, 1]} : vector<16x128xbf16> to vector<16x32xbf16>
    %74 = vector.shape_cast %73 : vector<16x32xbf16> to vector<2x8x32xbf16>
    %75 = tpu.concatenate %68, %70, %72, %74 in 0 : vector<2x8x32xbf16>, vector<2x8x32xbf16>, vector<2x8x32xbf16>, vector<2x8x32xbf16> -> vector<8x8x32xbf16>
    %76 = vector.extract_strided_slice %53 {offsets = [0, 256], sizes = [16, 128], strides = [1, 1]} : vector<16x384xf32> to vector<16x128xf32>
    %77 = arith.truncf %76 : vector<16x128xf32> to vector<16x128xbf16>
    %78 = vector.extract_strided_slice %77 {offsets = [0, 0], sizes = [16, 32], strides = [1, 1]} : vector<16x128xbf16> to vector<16x32xbf16>
    %79 = vector.shape_cast %78 : vector<16x32xbf16> to vector<2x8x32xbf16>
    %80 = vector.extract_strided_slice %77 {offsets = [0, 32], sizes = [16, 32], strides = [1, 1]} : vector<16x128xbf16> to vector<16x32xbf16>
    %81 = vector.shape_cast %80 : vector<16x32xbf16> to vector<2x8x32xbf16>
    %82 = vector.extract_strided_slice %77 {offsets = [0, 64], sizes = [16, 32], strides = [1, 1]} : vector<16x128xbf16> to vector<16x32xbf16>
    %83 = vector.shape_cast %82 : vector<16x32xbf16> to vector<2x8x32xbf16>
    %84 = vector.extract_strided_slice %77 {offsets = [0, 96], sizes = [16, 32], strides = [1, 1]} : vector<16x128xbf16> to vector<16x32xbf16>
    %85 = vector.shape_cast %84 : vector<16x32xbf16> to vector<2x8x32xbf16>
    %86 = tpu.concatenate %79, %81, %83, %85 in 0 : vector<2x8x32xbf16>, vector<2x8x32xbf16>, vector<2x8x32xbf16>, vector<2x8x32xbf16> -> vector<8x8x32xbf16>
    "tpu.trace_start"() <{level = 10 : i32, message = "bqd,bkd->bqk"}> : () -> ()
    %cst_25 = arith.constant dense<0.000000e+00> : vector<8x8x8xf32>
    %87 = tpu.matmul %64, %75, %cst_25 {dimension_numbers = #tpu.dot_dimension_numbers<[2], [2], [1], [1], [0, 0, 0, 1, 1, 1], [0], [0]>} : vector<8x8x32xbf16>, vector<8x8x32xbf16>, vector<8x8x8xf32> -> vector<8x8x8xf32>
    "tpu.trace_stop"() : () -> ()
    %88 = vector.broadcast %45 : vector<8x1x8xf32> to vector<8x8x8xf32>
    %89 = arith.addf %87, %88 : vector<8x8x8xf32>
    %cst_26 = arith.constant dense<0xFF800000> : vector<8x8xf32>
    %90 = vector.multi_reduction <maximumf>, %89, %cst_26 [2] : vector<8x8x8xf32> to vector<8x8xf32>
    %91 = vector.shape_cast %90 : vector<8x8xf32> to vector<8x8x1xf32>
    %92 = vector.broadcast %91 : vector<8x8x1xf32> to vector<8x8x8xf32>
    %93 = arith.subf %89, %92 : vector<8x8x8xf32>
    %94 = math.exp %93 : vector<8x8x8xf32>
    %cst_27 = arith.constant dense<0.000000e+00> : vector<8x8xf32>
    %95 = vector.multi_reduction <add>, %94, %cst_27 [2] : vector<8x8x8xf32> to vector<8x8xf32>
    %96 = vector.shape_cast %95 : vector<8x8xf32> to vector<8x8x1xf32>
    %97 = tpu.reciprocal %96 {approx = true} : vector<8x8x1xf32> -> vector<8x8x1xf32>
    %98 = vector.broadcast %97 : vector<8x8x1xf32> to vector<8x8x8xf32>
    %99 = arith.mulf %94, %98 : vector<8x8x8xf32>
    %100 = arith.truncf %99 : vector<8x8x8xf32> to vector<8x8x8xbf16>
    "tpu.trace_start"() <{level = 10 : i32, message = "bqk,bkd->bqd"}> : () -> ()
    %cst_28 = arith.constant dense<0.000000e+00> : vector<8x8x32xf32>
    %101 = tpu.matmul %100, %86, %cst_28 {dimension_numbers = #tpu.dot_dimension_numbers<[2], [1], [1], [2], [0, 0, 0, 1, 1, 2], [0], [0]>} : vector<8x8x8xbf16>, vector<8x8x32xbf16>, vector<8x8x32xf32> -> vector<8x8x32xf32>
    "tpu.trace_stop"() : () -> ()
    %102 = vector.extract_strided_slice %101 {offsets = [0, 0, 0], sizes = [2, 8, 32], strides = [1, 1, 1]} : vector<8x8x32xf32> to vector<2x8x32xf32>
    %103 = vector.shape_cast %102 : vector<2x8x32xf32> to vector<16x32xf32>
    %104 = vector.extract_strided_slice %101 {offsets = [2, 0, 0], sizes = [2, 8, 32], strides = [1, 1, 1]} : vector<8x8x32xf32> to vector<2x8x32xf32>
    %105 = vector.shape_cast %104 : vector<2x8x32xf32> to vector<16x32xf32>
    %106 = vector.extract_strided_slice %101 {offsets = [4, 0, 0], sizes = [2, 8, 32], strides = [1, 1, 1]} : vector<8x8x32xf32> to vector<2x8x32xf32>
    %107 = vector.shape_cast %106 : vector<2x8x32xf32> to vector<16x32xf32>
    %108 = vector.extract_strided_slice %101 {offsets = [6, 0, 0], sizes = [2, 8, 32], strides = [1, 1, 1]} : vector<8x8x32xf32> to vector<2x8x32xf32>
    %109 = vector.shape_cast %108 : vector<2x8x32xf32> to vector<16x32xf32>
    %110 = tpu.concatenate %103, %105, %107, %109 in 1 : vector<16x32xf32>, vector<16x32xf32>, vector<16x32xf32>, vector<16x32xf32> -> vector<16x128xf32>
    %111 = arith.truncf %110 : vector<16x128xf32> to vector<16x128xbf16>
    %c0_29 = arith.constant 0 : index
    %c0_30 = arith.constant 0 : index
    %c0_31 = arith.constant 0 : index
    %112 = vector.load %arg8[%c0_29, %c0_30, %c0_31] : memref<2x128x128xbf16, #tpu.memory_space<vmem>>, vector<1x128x128xbf16>
    %113 = vector.shape_cast %112 : vector<1x128x128xbf16> to vector<128x128xbf16>
    %cst_32 = arith.constant dense<0.000000e+00> : vector<16x128xf32>
    %114 = tpu.matmul %111, %113, %cst_32 {dimension_numbers = #tpu.dot_dimension_numbers<[1], [0], [0], [1], [0, 0, 1, 1], [], []>} : vector<16x128xbf16>, vector<128x128xbf16>, vector<16x128xf32> -> vector<16x128xf32>
    %c0_33 = arith.constant 0 : index
    %c0_34 = arith.constant 0 : index
    %c0_35 = arith.constant 0 : index
    %115 = vector.load %arg9[%c0_33, %c0_34, %c0_35] : memref<2x1x128xf32, #tpu.memory_space<vmem>>, vector<1x1x128xf32>
    %116 = vector.shape_cast %115 : vector<1x1x128xf32> to vector<1x128xf32>
    %117 = vector.broadcast %116 : vector<1x128xf32> to vector<16x128xf32>
    %118 = arith.addf %114, %117 : vector<16x128xf32>
    %119 = arith.addf %38, %118 : vector<16x128xf32>
    %c0_36 = arith.constant 0 : index
    %c0_37 = arith.constant 0 : index
    %c0_38 = arith.constant 0 : index
    %120 = vector.load %arg10[%c0_36, %c0_37, %c0_38] : memref<2x1x128xf32, #tpu.memory_space<vmem>>, vector<1x1x128xf32>
    %121 = vector.shape_cast %120 : vector<1x1x128xf32> to vector<1x128xf32>
    %c0_39 = arith.constant 0 : index
    %c0_40 = arith.constant 0 : index
    %c0_41 = arith.constant 0 : index
    %122 = vector.load %arg11[%c0_39, %c0_40, %c0_41] : memref<2x1x128xf32, #tpu.memory_space<vmem>>, vector<1x1x128xf32>
    %123 = vector.shape_cast %122 : vector<1x1x128xf32> to vector<1x128xf32>
    %cst_42 = arith.constant dense<0.000000e+00> : vector<16xf32>
    %124 = vector.multi_reduction <add>, %119, %cst_42 [1] : vector<16x128xf32> to vector<16xf32>
    %125 = vector.shape_cast %124 : vector<16xf32> to vector<16x1xf32>
    %cst_43 = arith.constant 1.280000e+02 : f32
    %126 = vector.broadcast %cst_43 : f32 to vector<16x1xf32>
    %127 = arith.divf %125, %126 : vector<16x1xf32>
    %128 = vector.broadcast %127 : vector<16x1xf32> to vector<16x128xf32>
    %129 = arith.subf %119, %128 : vector<16x128xf32>
    %130 = arith.mulf %129, %129 : vector<16x128xf32>
    %cst_44 = arith.constant dense<0.000000e+00> : vector<16xf32>
    %131 = vector.multi_reduction <add>, %130, %cst_44 [1] : vector<16x128xf32> to vector<16xf32>
    %132 = vector.shape_cast %131 : vector<16xf32> to vector<16x1xf32>
    %cst_45 = arith.constant 1.280000e+02 : f32
    %133 = vector.broadcast %cst_45 : f32 to vector<16x1xf32>
    %134 = arith.divf %132, %133 : vector<16x1xf32>
    %135 = vector.broadcast %127 : vector<16x1xf32> to vector<16x128xf32>
    %136 = arith.subf %119, %135 : vector<16x128xf32>
    %cst_46 = arith.constant 9.99999996E-13 : f32
    %137 = vector.broadcast %cst_46 : f32 to vector<16x1xf32>
    %138 = arith.addf %134, %137 : vector<16x1xf32>
    %139 = math.rsqrt %138 : vector<16x1xf32>
    %140 = vector.broadcast %139 : vector<16x1xf32> to vector<16x128xf32>
    %141 = arith.mulf %136, %140 : vector<16x128xf32>
    %142 = vector.broadcast %121 : vector<1x128xf32> to vector<16x128xf32>
    %143 = arith.mulf %141, %142 : vector<16x128xf32>
    %144 = vector.broadcast %123 : vector<1x128xf32> to vector<16x128xf32>
    %145 = arith.addf %143, %144 : vector<16x128xf32>
    %146 = arith.truncf %145 : vector<16x128xf32> to vector<16x128xbf16>
    %c0_47 = arith.constant 0 : index
    %c0_48 = arith.constant 0 : index
    %c0_49 = arith.constant 0 : index
    %147 = vector.load %arg12[%c0_47, %c0_48, %c0_49] : memref<2x128x256xbf16, #tpu.memory_space<vmem>>, vector<1x128x256xbf16>
    %148 = vector.shape_cast %147 : vector<1x128x256xbf16> to vector<128x256xbf16>
    %cst_50 = arith.constant dense<0.000000e+00> : vector<16x256xf32>
    %149 = tpu.matmul %146, %148, %cst_50 {dimension_numbers = #tpu.dot_dimension_numbers<[1], [0], [0], [1], [0, 0, 1, 1], [], []>} : vector<16x128xbf16>, vector<128x256xbf16>, vector<16x256xf32> -> vector<16x256xf32>
    %c0_51 = arith.constant 0 : index
    %c0_52 = arith.constant 0 : index
    %c0_53 = arith.constant 0 : index
    %150 = vector.load %arg13[%c0_51, %c0_52, %c0_53] : memref<2x1x256xf32, #tpu.memory_space<vmem>>, vector<1x1x256xf32>
    %151 = vector.shape_cast %150 : vector<1x1x256xf32> to vector<1x256xf32>
    %152 = vector.broadcast %151 : vector<1x256xf32> to vector<16x256xf32>
    %153 = arith.addf %149, %152 : vector<16x256xf32>
    %154 = arith.mulf %153, %153 : vector<16x256xf32>
    %155 = arith.mulf %153, %154 : vector<16x256xf32>
    %cst_54 = arith.constant 4.471500e-02 : f32
    %156 = vector.broadcast %cst_54 : f32 to vector<16x256xf32>
    %157 = arith.mulf %156, %155 : vector<16x256xf32>
    %158 = arith.addf %153, %157 : vector<16x256xf32>
    %cst_55 = arith.constant 0.797884583 : f32
    %159 = vector.broadcast %cst_55 : f32 to vector<16x256xf32>
    %160 = arith.mulf %159, %158 : vector<16x256xf32>
    %161 = math.tanh %160 : vector<16x256xf32>
    %cst_56 = arith.constant 1.000000e+00 : f32
    %162 = vector.broadcast %cst_56 : f32 to vector<16x256xf32>
    %163 = arith.addf %162, %161 : vector<16x256xf32>
    %cst_57 = arith.constant 5.000000e-01 : f32
    %164 = vector.broadcast %cst_57 : f32 to vector<16x256xf32>
    %165 = arith.mulf %164, %163 : vector<16x256xf32>
    %166 = arith.mulf %153, %165 : vector<16x256xf32>
    %167 = arith.truncf %166 : vector<16x256xf32> to vector<16x256xbf16>
    %c0_58 = arith.constant 0 : index
    %c0_59 = arith.constant 0 : index
    %c0_60 = arith.constant 0 : index
    %168 = vector.load %arg14[%c0_58, %c0_59, %c0_60] : memref<2x256x128xbf16, #tpu.memory_space<vmem>>, vector<1x256x128xbf16>
    %169 = vector.shape_cast %168 : vector<1x256x128xbf16> to vector<256x128xbf16>
    %cst_61 = arith.constant dense<0.000000e+00> : vector<16x128xf32>
    %170 = tpu.matmul %167, %169, %cst_61 {dimension_numbers = #tpu.dot_dimension_numbers<[1], [0], [0], [1], [0, 0, 1, 1], [], []>} : vector<16x256xbf16>, vector<256x128xbf16>, vector<16x128xf32> -> vector<16x128xf32>
    %c0_62 = arith.constant 0 : index
    %c0_63 = arith.constant 0 : index
    %c0_64 = arith.constant 0 : index
    %171 = vector.load %arg15[%c0_62, %c0_63, %c0_64] : memref<2x1x128xf32, #tpu.memory_space<vmem>>, vector<1x1x128xf32>
    %172 = vector.shape_cast %171 : vector<1x1x128xf32> to vector<1x128xf32>
    %173 = vector.broadcast %172 : vector<1x128xf32> to vector<16x128xf32>
    %174 = arith.addf %170, %173 : vector<16x128xf32>
    %175 = arith.addf %145, %174 : vector<16x128xf32>
    %c0_65 = arith.constant 0 : index
    %c0_66 = arith.constant 0 : index
    %c0_67 = arith.constant 0 : index
    %176 = vector.load %arg16[%c0_65, %c0_66, %c0_67] : memref<2x1x128xf32, #tpu.memory_space<vmem>>, vector<1x1x128xf32>
    %177 = vector.shape_cast %176 : vector<1x1x128xf32> to vector<1x128xf32>
    %c0_68 = arith.constant 0 : index
    %c0_69 = arith.constant 0 : index
    %c0_70 = arith.constant 0 : index
    %178 = vector.load %arg17[%c0_68, %c0_69, %c0_70] : memref<2x1x128xf32, #tpu.memory_space<vmem>>, vector<1x1x128xf32>
    %179 = vector.shape_cast %178 : vector<1x1x128xf32> to vector<1x128xf32>
    %cst_71 = arith.constant dense<0.000000e+00> : vector<16xf32>
    %180 = vector.multi_reduction <add>, %175, %cst_71 [1] : vector<16x128xf32> to vector<16xf32>
    %181 = vector.shape_cast %180 : vector<16xf32> to vector<16x1xf32>
    %cst_72 = arith.constant 1.280000e+02 : f32
    %182 = vector.broadcast %cst_72 : f32 to vector<16x1xf32>
    %183 = arith.divf %181, %182 : vector<16x1xf32>
    %184 = vector.broadcast %183 : vector<16x1xf32> to vector<16x128xf32>
    %185 = arith.subf %175, %184 : vector<16x128xf32>
    %186 = arith.mulf %185, %185 : vector<16x128xf32>
    %cst_73 = arith.constant dense<0.000000e+00> : vector<16xf32>
    %187 = vector.multi_reduction <add>, %186, %cst_73 [1] : vector<16x128xf32> to vector<16xf32>
    %188 = vector.shape_cast %187 : vector<16xf32> to vector<16x1xf32>
    %cst_74 = arith.constant 1.280000e+02 : f32
    %189 = vector.broadcast %cst_74 : f32 to vector<16x1xf32>
    %190 = arith.divf %188, %189 : vector<16x1xf32>
    %191 = vector.broadcast %183 : vector<16x1xf32> to vector<16x128xf32>
    %192 = arith.subf %175, %191 : vector<16x128xf32>
    %cst_75 = arith.constant 9.99999996E-13 : f32
    %193 = vector.broadcast %cst_75 : f32 to vector<16x1xf32>
    %194 = arith.addf %190, %193 : vector<16x1xf32>
    %195 = math.rsqrt %194 : vector<16x1xf32>
    %196 = vector.broadcast %195 : vector<16x1xf32> to vector<16x128xf32>
    %197 = arith.mulf %192, %196 : vector<16x128xf32>
    %198 = vector.broadcast %177 : vector<1x128xf32> to vector<16x128xf32>
    %199 = arith.mulf %197, %198 : vector<16x128xf32>
    %200 = vector.broadcast %179 : vector<1x128xf32> to vector<16x128xf32>
    %201 = arith.addf %199, %200 : vector<16x128xf32>
    %202 = arith.truncf %201 : vector<16x128xf32> to vector<16x128xbf16>
    %c1 = arith.constant 1 : index
    %c0_76 = arith.constant 0 : index
    %c0_77 = arith.constant 0 : index
    %203 = vector.load %arg6[%c1, %c0_76, %c0_77] : memref<2x128x384xbf16, #tpu.memory_space<vmem>>, vector<1x128x384xbf16>
    %204 = vector.shape_cast %203 : vector<1x128x384xbf16> to vector<128x384xbf16>
    %cst_78 = arith.constant dense<0.000000e+00> : vector<16x384xf32>
    %205 = tpu.matmul %202, %204, %cst_78 {dimension_numbers = #tpu.dot_dimension_numbers<[1], [0], [0], [1], [0, 0, 1, 1], [], []>} : vector<16x128xbf16>, vector<128x384xbf16>, vector<16x384xf32> -> vector<16x384xf32>
    %c1_79 = arith.constant 1 : index
    %c0_80 = arith.constant 0 : index
    %c0_81 = arith.constant 0 : index
    %206 = vector.load %arg7[%c1_79, %c0_80, %c0_81] : memref<2x1x384xf32, #tpu.memory_space<vmem>>, vector<1x1x384xf32>
    %207 = vector.shape_cast %206 : vector<1x1x384xf32> to vector<1x384xf32>
    %208 = vector.broadcast %207 : vector<1x384xf32> to vector<16x384xf32>
    %209 = arith.addf %205, %208 : vector<16x384xf32>
    %210 = vector.extract_strided_slice %209 {offsets = [0, 0], sizes = [16, 128], strides = [1, 1]} : vector<16x384xf32> to vector<16x128xf32>
    %211 = arith.truncf %210 : vector<16x128xf32> to vector<16x128xbf16>
    %212 = vector.extract_strided_slice %211 {offsets = [0, 0], sizes = [16, 32], strides = [1, 1]} : vector<16x128xbf16> to vector<16x32xbf16>
    %213 = vector.shape_cast %212 : vector<16x32xbf16> to vector<2x8x32xbf16>
    %214 = vector.extract_strided_slice %211 {offsets = [0, 32], sizes = [16, 32], strides = [1, 1]} : vector<16x128xbf16> to vector<16x32xbf16>
    %215 = vector.shape_cast %214 : vector<16x32xbf16> to vector<2x8x32xbf16>
    %216 = vector.extract_strided_slice %211 {offsets = [0, 64], sizes = [16, 32], strides = [1, 1]} : vector<16x128xbf16> to vector<16x32xbf16>
    %217 = vector.shape_cast %216 : vector<16x32xbf16> to vector<2x8x32xbf16>
    %218 = vector.extract_strided_slice %211 {offsets = [0, 96], sizes = [16, 32], strides = [1, 1]} : vector<16x128xbf16> to vector<16x32xbf16>
    %219 = vector.shape_cast %218 : vector<16x32xbf16> to vector<2x8x32xbf16>
    %220 = tpu.concatenate %213, %215, %217, %219 in 0 : vector<2x8x32xbf16>, vector<2x8x32xbf16>, vector<2x8x32xbf16>, vector<2x8x32xbf16> -> vector<8x8x32xbf16>
    %221 = vector.extract_strided_slice %209 {offsets = [0, 128], sizes = [16, 128], strides = [1, 1]} : vector<16x384xf32> to vector<16x128xf32>
    %222 = arith.truncf %221 : vector<16x128xf32> to vector<16x128xbf16>
    %223 = vector.extract_strided_slice %222 {offsets = [0, 0], sizes = [16, 32], strides = [1, 1]} : vector<16x128xbf16> to vector<16x32xbf16>
    %224 = vector.shape_cast %223 : vector<16x32xbf16> to vector<2x8x32xbf16>
    %225 = vector.extract_strided_slice %222 {offsets = [0, 32], sizes = [16, 32], strides = [1, 1]} : vector<16x128xbf16> to vector<16x32xbf16>
    %226 = vector.shape_cast %225 : vector<16x32xbf16> to vector<2x8x32xbf16>
    %227 = vector.extract_strided_slice %222 {offsets = [0, 64], sizes = [16, 32], strides = [1, 1]} : vector<16x128xbf16> to vector<16x32xbf16>
    %228 = vector.shape_cast %227 : vector<16x32xbf16> to vector<2x8x32xbf16>
    %229 = vector.extract_strided_slice %222 {offsets = [0, 96], sizes = [16, 32], strides = [1, 1]} : vector<16x128xbf16> to vector<16x32xbf16>
    %230 = vector.shape_cast %229 : vector<16x32xbf16> to vector<2x8x32xbf16>
    %231 = tpu.concatenate %224, %226, %228, %230 in 0 : vector<2x8x32xbf16>, vector<2x8x32xbf16>, vector<2x8x32xbf16>, vector<2x8x32xbf16> -> vector<8x8x32xbf16>
    %232 = vector.extract_strided_slice %209 {offsets = [0, 256], sizes = [16, 128], strides = [1, 1]} : vector<16x384xf32> to vector<16x128xf32>
    %233 = arith.truncf %232 : vector<16x128xf32> to vector<16x128xbf16>
    %234 = vector.extract_strided_slice %233 {offsets = [0, 0], sizes = [16, 32], strides = [1, 1]} : vector<16x128xbf16> to vector<16x32xbf16>
    %235 = vector.shape_cast %234 : vector<16x32xbf16> to vector<2x8x32xbf16>
    %236 = vector.extract_strided_slice %233 {offsets = [0, 32], sizes = [16, 32], strides = [1, 1]} : vector<16x128xbf16> to vector<16x32xbf16>
    %237 = vector.shape_cast %236 : vector<16x32xbf16> to vector<2x8x32xbf16>
    %238 = vector.extract_strided_slice %233 {offsets = [0, 64], sizes = [16, 32], strides = [1, 1]} : vector<16x128xbf16> to vector<16x32xbf16>
    %239 = vector.shape_cast %238 : vector<16x32xbf16> to vector<2x8x32xbf16>
    %240 = vector.extract_strided_slice %233 {offsets = [0, 96], sizes = [16, 32], strides = [1, 1]} : vector<16x128xbf16> to vector<16x32xbf16>
    %241 = vector.shape_cast %240 : vector<16x32xbf16> to vector<2x8x32xbf16>
    %242 = tpu.concatenate %235, %237, %239, %241 in 0 : vector<2x8x32xbf16>, vector<2x8x32xbf16>, vector<2x8x32xbf16>, vector<2x8x32xbf16> -> vector<8x8x32xbf16>
    "tpu.trace_start"() <{level = 10 : i32, message = "bqd,bkd->bqk"}> : () -> ()
    %cst_82 = arith.constant dense<0.000000e+00> : vector<8x8x8xf32>
    %243 = tpu.matmul %220, %231, %cst_82 {dimension_numbers = #tpu.dot_dimension_numbers<[2], [2], [1], [1], [0, 0, 0, 1, 1, 1], [0], [0]>} : vector<8x8x32xbf16>, vector<8x8x32xbf16>, vector<8x8x8xf32> -> vector<8x8x8xf32>
    "tpu.trace_stop"() : () -> ()
    %244 = vector.broadcast %45 : vector<8x1x8xf32> to vector<8x8x8xf32>
    %245 = arith.addf %243, %244 : vector<8x8x8xf32>
    %cst_83 = arith.constant dense<0xFF800000> : vector<8x8xf32>
    %246 = vector.multi_reduction <maximumf>, %245, %cst_83 [2] : vector<8x8x8xf32> to vector<8x8xf32>
    %247 = vector.shape_cast %246 : vector<8x8xf32> to vector<8x8x1xf32>
    %248 = vector.broadcast %247 : vector<8x8x1xf32> to vector<8x8x8xf32>
    %249 = arith.subf %245, %248 : vector<8x8x8xf32>
    %250 = math.exp %249 : vector<8x8x8xf32>
    %cst_84 = arith.constant dense<0.000000e+00> : vector<8x8xf32>
    %251 = vector.multi_reduction <add>, %250, %cst_84 [2] : vector<8x8x8xf32> to vector<8x8xf32>
    %252 = vector.shape_cast %251 : vector<8x8xf32> to vector<8x8x1xf32>
    %253 = tpu.reciprocal %252 {approx = true} : vector<8x8x1xf32> -> vector<8x8x1xf32>
    %254 = vector.broadcast %253 : vector<8x8x1xf32> to vector<8x8x8xf32>
    %255 = arith.mulf %250, %254 : vector<8x8x8xf32>
    %256 = arith.truncf %255 : vector<8x8x8xf32> to vector<8x8x8xbf16>
    "tpu.trace_start"() <{level = 10 : i32, message = "bqk,bkd->bqd"}> : () -> ()
    %cst_85 = arith.constant dense<0.000000e+00> : vector<8x8x32xf32>
    %257 = tpu.matmul %256, %242, %cst_85 {dimension_numbers = #tpu.dot_dimension_numbers<[2], [1], [1], [2], [0, 0, 0, 1, 1, 2], [0], [0]>} : vector<8x8x8xbf16>, vector<8x8x32xbf16>, vector<8x8x32xf32> -> vector<8x8x32xf32>
    "tpu.trace_stop"() : () -> ()
    %258 = vector.extract_strided_slice %257 {offsets = [0, 0, 0], sizes = [2, 8, 32], strides = [1, 1, 1]} : vector<8x8x32xf32> to vector<2x8x32xf32>
    %259 = vector.shape_cast %258 : vector<2x8x32xf32> to vector<16x32xf32>
    %260 = vector.extract_strided_slice %257 {offsets = [2, 0, 0], sizes = [2, 8, 32], strides = [1, 1, 1]} : vector<8x8x32xf32> to vector<2x8x32xf32>
    %261 = vector.shape_cast %260 : vector<2x8x32xf32> to vector<16x32xf32>
    %262 = vector.extract_strided_slice %257 {offsets = [4, 0, 0], sizes = [2, 8, 32], strides = [1, 1, 1]} : vector<8x8x32xf32> to vector<2x8x32xf32>
    %263 = vector.shape_cast %262 : vector<2x8x32xf32> to vector<16x32xf32>
    %264 = vector.extract_strided_slice %257 {offsets = [6, 0, 0], sizes = [2, 8, 32], strides = [1, 1, 1]} : vector<8x8x32xf32> to vector<2x8x32xf32>
    %265 = vector.shape_cast %264 : vector<2x8x32xf32> to vector<16x32xf32>
    %266 = tpu.concatenate %259, %261, %263, %265 in 1 : vector<16x32xf32>, vector<16x32xf32>, vector<16x32xf32>, vector<16x32xf32> -> vector<16x128xf32>
    %267 = arith.truncf %266 : vector<16x128xf32> to vector<16x128xbf16>
    %c1_86 = arith.constant 1 : index
    %c0_87 = arith.constant 0 : index
    %c0_88 = arith.constant 0 : index
    %268 = vector.load %arg8[%c1_86, %c0_87, %c0_88] : memref<2x128x128xbf16, #tpu.memory_space<vmem>>, vector<1x128x128xbf16>
    %269 = vector.shape_cast %268 : vector<1x128x128xbf16> to vector<128x128xbf16>
    %cst_89 = arith.constant dense<0.000000e+00> : vector<16x128xf32>
    %270 = tpu.matmul %267, %269, %cst_89 {dimension_numbers = #tpu.dot_dimension_numbers<[1], [0], [0], [1], [0, 0, 1, 1], [], []>} : vector<16x128xbf16>, vector<128x128xbf16>, vector<16x128xf32> -> vector<16x128xf32>
    %c1_90 = arith.constant 1 : index
    %c0_91 = arith.constant 0 : index
    %c0_92 = arith.constant 0 : index
    %271 = vector.load %arg9[%c1_90, %c0_91, %c0_92] : memref<2x1x128xf32, #tpu.memory_space<vmem>>, vector<1x1x128xf32>
    %272 = vector.shape_cast %271 : vector<1x1x128xf32> to vector<1x128xf32>
    %273 = vector.broadcast %272 : vector<1x128xf32> to vector<16x128xf32>
    %274 = arith.addf %270, %273 : vector<16x128xf32>
    %275 = arith.addf %201, %274 : vector<16x128xf32>
    %c1_93 = arith.constant 1 : index
    %c0_94 = arith.constant 0 : index
    %c0_95 = arith.constant 0 : index
    %276 = vector.load %arg10[%c1_93, %c0_94, %c0_95] : memref<2x1x128xf32, #tpu.memory_space<vmem>>, vector<1x1x128xf32>
    %277 = vector.shape_cast %276 : vector<1x1x128xf32> to vector<1x128xf32>
    %c1_96 = arith.constant 1 : index
    %c0_97 = arith.constant 0 : index
    %c0_98 = arith.constant 0 : index
    %278 = vector.load %arg11[%c1_96, %c0_97, %c0_98] : memref<2x1x128xf32, #tpu.memory_space<vmem>>, vector<1x1x128xf32>
    %279 = vector.shape_cast %278 : vector<1x1x128xf32> to vector<1x128xf32>
    %cst_99 = arith.constant dense<0.000000e+00> : vector<16xf32>
    %280 = vector.multi_reduction <add>, %275, %cst_99 [1] : vector<16x128xf32> to vector<16xf32>
    %281 = vector.shape_cast %280 : vector<16xf32> to vector<16x1xf32>
    %cst_100 = arith.constant 1.280000e+02 : f32
    %282 = vector.broadcast %cst_100 : f32 to vector<16x1xf32>
    %283 = arith.divf %281, %282 : vector<16x1xf32>
    %284 = vector.broadcast %283 : vector<16x1xf32> to vector<16x128xf32>
    %285 = arith.subf %275, %284 : vector<16x128xf32>
    %286 = arith.mulf %285, %285 : vector<16x128xf32>
    %cst_101 = arith.constant dense<0.000000e+00> : vector<16xf32>
    %287 = vector.multi_reduction <add>, %286, %cst_101 [1] : vector<16x128xf32> to vector<16xf32>
    %288 = vector.shape_cast %287 : vector<16xf32> to vector<16x1xf32>
    %cst_102 = arith.constant 1.280000e+02 : f32
    %289 = vector.broadcast %cst_102 : f32 to vector<16x1xf32>
    %290 = arith.divf %288, %289 : vector<16x1xf32>
    %291 = vector.broadcast %283 : vector<16x1xf32> to vector<16x128xf32>
    %292 = arith.subf %275, %291 : vector<16x128xf32>
    %cst_103 = arith.constant 9.99999996E-13 : f32
    %293 = vector.broadcast %cst_103 : f32 to vector<16x1xf32>
    %294 = arith.addf %290, %293 : vector<16x1xf32>
    %295 = math.rsqrt %294 : vector<16x1xf32>
    %296 = vector.broadcast %295 : vector<16x1xf32> to vector<16x128xf32>
    %297 = arith.mulf %292, %296 : vector<16x128xf32>
    %298 = vector.broadcast %277 : vector<1x128xf32> to vector<16x128xf32>
    %299 = arith.mulf %297, %298 : vector<16x128xf32>
    %300 = vector.broadcast %279 : vector<1x128xf32> to vector<16x128xf32>
    %301 = arith.addf %299, %300 : vector<16x128xf32>
    %302 = arith.truncf %301 : vector<16x128xf32> to vector<16x128xbf16>
    %c1_104 = arith.constant 1 : index
    %c0_105 = arith.constant 0 : index
    %c0_106 = arith.constant 0 : index
    %303 = vector.load %arg12[%c1_104, %c0_105, %c0_106] : memref<2x128x256xbf16, #tpu.memory_space<vmem>>, vector<1x128x256xbf16>
    %304 = vector.shape_cast %303 : vector<1x128x256xbf16> to vector<128x256xbf16>
    %cst_107 = arith.constant dense<0.000000e+00> : vector<16x256xf32>
    %305 = tpu.matmul %302, %304, %cst_107 {dimension_numbers = #tpu.dot_dimension_numbers<[1], [0], [0], [1], [0, 0, 1, 1], [], []>} : vector<16x128xbf16>, vector<128x256xbf16>, vector<16x256xf32> -> vector<16x256xf32>
    %c1_108 = arith.constant 1 : index
    %c0_109 = arith.constant 0 : index
    %c0_110 = arith.constant 0 : index
    %306 = vector.load %arg13[%c1_108, %c0_109, %c0_110] : memref<2x1x256xf32, #tpu.memory_space<vmem>>, vector<1x1x256xf32>
    %307 = vector.shape_cast %306 : vector<1x1x256xf32> to vector<1x256xf32>
    %308 = vector.broadcast %307 : vector<1x256xf32> to vector<16x256xf32>
    %309 = arith.addf %305, %308 : vector<16x256xf32>
    %310 = arith.mulf %309, %309 : vector<16x256xf32>
    %311 = arith.mulf %309, %310 : vector<16x256xf32>
    %cst_111 = arith.constant 4.471500e-02 : f32
    %312 = vector.broadcast %cst_111 : f32 to vector<16x256xf32>
    %313 = arith.mulf %312, %311 : vector<16x256xf32>
    %314 = arith.addf %309, %313 : vector<16x256xf32>
    %cst_112 = arith.constant 0.797884583 : f32
    %315 = vector.broadcast %cst_112 : f32 to vector<16x256xf32>
    %316 = arith.mulf %315, %314 : vector<16x256xf32>
    %317 = math.tanh %316 : vector<16x256xf32>
    %cst_113 = arith.constant 1.000000e+00 : f32
    %318 = vector.broadcast %cst_113 : f32 to vector<16x256xf32>
    %319 = arith.addf %318, %317 : vector<16x256xf32>
    %cst_114 = arith.constant 5.000000e-01 : f32
    %320 = vector.broadcast %cst_114 : f32 to vector<16x256xf32>
    %321 = arith.mulf %320, %319 : vector<16x256xf32>
    %322 = arith.mulf %309, %321 : vector<16x256xf32>
    %323 = arith.truncf %322 : vector<16x256xf32> to vector<16x256xbf16>
    %c1_115 = arith.constant 1 : index
    %c0_116 = arith.constant 0 : index
    %c0_117 = arith.constant 0 : index
    %324 = vector.load %arg14[%c1_115, %c0_116, %c0_117] : memref<2x256x128xbf16, #tpu.memory_space<vmem>>, vector<1x256x128xbf16>
    %325 = vector.shape_cast %324 : vector<1x256x128xbf16> to vector<256x128xbf16>
    %cst_118 = arith.constant dense<0.000000e+00> : vector<16x128xf32>
    %326 = tpu.matmul %323, %325, %cst_118 {dimension_numbers = #tpu.dot_dimension_numbers<[1], [0], [0], [1], [0, 0, 1, 1], [], []>} : vector<16x256xbf16>, vector<256x128xbf16>, vector<16x128xf32> -> vector<16x128xf32>
    %c1_119 = arith.constant 1 : index
    %c0_120 = arith.constant 0 : index
    %c0_121 = arith.constant 0 : index
    %327 = vector.load %arg15[%c1_119, %c0_120, %c0_121] : memref<2x1x128xf32, #tpu.memory_space<vmem>>, vector<1x1x128xf32>
    %328 = vector.shape_cast %327 : vector<1x1x128xf32> to vector<1x128xf32>
    %329 = vector.broadcast %328 : vector<1x128xf32> to vector<16x128xf32>
    %330 = arith.addf %326, %329 : vector<16x128xf32>
    %331 = arith.addf %301, %330 : vector<16x128xf32>
    %c1_122 = arith.constant 1 : index
    %c0_123 = arith.constant 0 : index
    %c0_124 = arith.constant 0 : index
    %332 = vector.load %arg16[%c1_122, %c0_123, %c0_124] : memref<2x1x128xf32, #tpu.memory_space<vmem>>, vector<1x1x128xf32>
    %333 = vector.shape_cast %332 : vector<1x1x128xf32> to vector<1x128xf32>
    %c1_125 = arith.constant 1 : index
    %c0_126 = arith.constant 0 : index
    %c0_127 = arith.constant 0 : index
    %334 = vector.load %arg17[%c1_125, %c0_126, %c0_127] : memref<2x1x128xf32, #tpu.memory_space<vmem>>, vector<1x1x128xf32>
    %335 = vector.shape_cast %334 : vector<1x1x128xf32> to vector<1x128xf32>
    %cst_128 = arith.constant dense<0.000000e+00> : vector<16xf32>
    %336 = vector.multi_reduction <add>, %331, %cst_128 [1] : vector<16x128xf32> to vector<16xf32>
    %337 = vector.shape_cast %336 : vector<16xf32> to vector<16x1xf32>
    %cst_129 = arith.constant 1.280000e+02 : f32
    %338 = vector.broadcast %cst_129 : f32 to vector<16x1xf32>
    %339 = arith.divf %337, %338 : vector<16x1xf32>
    %340 = vector.broadcast %339 : vector<16x1xf32> to vector<16x128xf32>
    %341 = arith.subf %331, %340 : vector<16x128xf32>
    %342 = arith.mulf %341, %341 : vector<16x128xf32>
    %cst_130 = arith.constant dense<0.000000e+00> : vector<16xf32>
    %343 = vector.multi_reduction <add>, %342, %cst_130 [1] : vector<16x128xf32> to vector<16xf32>
    %344 = vector.shape_cast %343 : vector<16xf32> to vector<16x1xf32>
    %cst_131 = arith.constant 1.280000e+02 : f32
    %345 = vector.broadcast %cst_131 : f32 to vector<16x1xf32>
    %346 = arith.divf %344, %345 : vector<16x1xf32>
    %347 = vector.broadcast %339 : vector<16x1xf32> to vector<16x128xf32>
    %348 = arith.subf %331, %347 : vector<16x128xf32>
    %cst_132 = arith.constant 9.99999996E-13 : f32
    %349 = vector.broadcast %cst_132 : f32 to vector<16x1xf32>
    %350 = arith.addf %346, %349 : vector<16x1xf32>
    %351 = math.rsqrt %350 : vector<16x1xf32>
    %352 = vector.broadcast %351 : vector<16x1xf32> to vector<16x128xf32>
    %353 = arith.mulf %348, %352 : vector<16x128xf32>
    %354 = vector.broadcast %333 : vector<1x128xf32> to vector<16x128xf32>
    %355 = arith.mulf %353, %354 : vector<16x128xf32>
    %356 = vector.broadcast %335 : vector<1x128xf32> to vector<16x128xf32>
    %357 = arith.addf %355, %356 : vector<16x128xf32>
    %358 = vector.shape_cast %357 : vector<16x128xf32> to vector<2x8x128xf32>
    %359 = vector.shape_cast %39 : vector<2x8xf32> to vector<2x8x1xf32>
    %360 = vector.broadcast %359 : vector<2x8x1xf32> to vector<2x8x128xf32>
    %361 = arith.mulf %358, %360 : vector<2x8x128xf32>
    %cst_133 = arith.constant dense<0.000000e+00> : vector<2x128xf32>
    %362 = vector.multi_reduction <add>, %361, %cst_133 [1] : vector<2x8x128xf32> to vector<2x128xf32>
    %cst_134 = arith.constant dense<0.000000e+00> : vector<2xf32>
    %363 = vector.multi_reduction <add>, %39, %cst_134 [1] : vector<2x8xf32> to vector<2xf32>
    %364 = vector.shape_cast %363 : vector<2xf32> to vector<2x1xf32>
    %cst_135 = arith.constant 9.99999971E-10 : f32
    %365 = vector.broadcast %cst_135 : f32 to vector<2x1xf32>
    %366 = arith.maximumf %364, %365 : vector<2x1xf32>
    %367 = vector.broadcast %366 : vector<2x1xf32> to vector<2x128xf32>
    %368 = arith.divf %362, %367 : vector<2x128xf32>
    %c0_136 = arith.constant 0 : index
    %c0_137 = arith.constant 0 : index
    %369 = vector.load %arg18[%c0_136, %c0_137] : memref<2x128xf32, #tpu.memory_space<vmem>>, vector<2x128xf32>
    tpu.vector_store %arg18[%c0_136, %c0_137], %368 {strides = array<i32>} : memref<2x128xf32, #tpu.memory_space<vmem>>, vector<2x128xf32>,
    return
  }
}

</mosaic_0001>

<bundles_post_ra>
// kernel: sentence_bert_forward.1
= control target key start
LH: loop header
LB: loop body
LE: loop exit
PB: predicated region body
PF: predicated region fallthrough
CT: control target
= control target key end

     0   :  { %s5781_s0 = inlined_call_operand.vmem [shape: s32[16,1], index: 0, kind: input, shape index: {}]   ;;  %s5782_s1 = inlined_call_operand.vmem [shape: f32[2,8], index: 1, kind: input, shape index: {}]   ;;  %s5783_s2 = inlined_call_operand.hbm [shape: bf16[64,128], index: 2, kind: input, shape index: {}]   ;;  %s5784_s3 = inlined_call_operand.vmem [shape: f32[8,128], index: 3, kind: input, shape index: {}]   ;;  %s5785_s4 = inlined_call_operand.vmem [shape: f32[1,128], index: 4, kind: input, shape index: {}]   ;;  %s5786_s5 = inlined_call_operand.hbm [shape: f32[1,128], index: 5, kind: input, shape index: {}]   ;;  %s5787_s6 = inlined_call_operand.hbm [shape: bf16[2,128,384], index: 6, kind: input, shape index: {}]   ;;  %s5788_s7 = inlined_call_operand.vmem [shape: f32[2,1,384], index: 7, kind: input, shape index: {}]   ;;  %s5789_s8 = inlined_call_operand.hbm [shape: bf16[2,128,128], index: 8, kind: input, shape index: {}]   ;;  %s5790_s9 = inlined_call_operand.vmem [shape: f32[2,1,128], index: 9, kind: input, shape index: {}]   ;;  %s5791_s10 = inlined_call_operand.vmem [shape: f32[2,1,128], index: 10, kind: input, shape index: {}]   ;;  %s5792_s11 = inlined_call_operand.vmem [shape: f32[2,1,128], index: 11, kind: input, shape index: {}]   ;;  %s5793_s12 = inlined_call_operand.hbm [shape: bf16[2,128,256], index: 12, kind: input, shape index: {}]   ;;  %s5794_s13 = inlined_call_operand.vmem [shape: f32[2,1,256], index: 13, kind: input, shape index: {}]   ;;  %s5795_s14 = inlined_call_operand.hbm [shape: bf16[2,256,128], index: 14, kind: input, shape index: {}]   ;;  %s5796_s15 = inlined_call_operand.vmem [shape: f32[2,1,128], index: 15, kind: input, shape index: {}]   ;;  %s5797_s16 = inlined_call_operand.vmem [shape: f32[2,1,128], index: 16, kind: input, shape index: {}]   ;;  %s5798_s17 = inlined_call_operand.vmem [shape: f32[2,1,128], index: 17, kind: input, shape index: {}]   ;;  %s5799_s18 = inlined_call_operand.hbm [shape: f32[2,128], index: 18, kind: output, shape index: {}]  }
   0x1   :  { %5803 = sst [smem:[#allocation19_spill]] %s5781_s0 }
   0x2   :  { %5804 = sst [smem:[#allocation20_spill]] %s5782_s1 }
   0x3   :  { %5805 = sst [smem:[#allocation21_spill]] %s5783_s2 }
   0x4   :  { %23 = vsyncpa [#allocation3], 0 }
   0x5   :  { %24 = vsyncpa [#allocation6], 0 }
   0x6   :  { %25 = vsyncpa [#allocation9], 0 }
   0x7   :  { %26 = vsyncpa [#allocation12], 0 }
   0x8   :  { %27 = vsyncpa [#allocation4], 0  ;;  %s5009_s27 = smov [#allocation5]   ;;  %s4845_s0 = scalar_lea.hbm %s5786_s5, 16 }
   0x9   :  { %s54_s28 = sshll.u32 %s5009_s27, 4  ;;  %p4846_p0 = scmp.ne.s32.totalorder %s5786_s5, %s4845_s0  ;;  %s55_s28 = int_to_ptr.vmem [resolvable:$true] %s54_s28 }
   0xa   :  { %p4849_p1 = scmp.lt.u32.totalorder %s4845_s0, %s5786_s5 }
   0xc   :  { %p4851_p2 = pnand %p4849_p1, %p4846_p0 }
   0xe   :  { %4854 = shalt.err (!%p4851_p2)
}
   0xf   :  { %s4855_s22 = scalar_lea.vmem %s55_s28, 16  ;;  %s4859_s2 = scalar_lea.vmem %s55_s28, 32 }
  0x10   :  { %p4856_p3 = scmp.ne.s32.totalorder %s55_s28, %s4855_s22  ;;  %p4860_p4 = scmp.lt.s32.totalorder %s55_s28, %s55_s28 }
  0x11   :  { %p4861_p5 = scmp.lt.s32.totalorder %s4859_s2, %s4855_s22 }
  0x13   :  { %p4862_p6 = por %p4861_p5, %p4860_p4 }
  0x15   :  { %p4863_p7 = pnand %p4862_p6, %p4856_p3 }
  0x17   :  { %4866 = shalt.err (!%p4863_p7)
}
  0x18   :  { %57 = dma.hbm_to_vmem [thread:$0]  %s5786_s5, 16, %s55_s28, [#allocation6]  }
  0x19   :  { %s5010_s25 = smov [#allocation8]   ;;  %s5011_s27 = smov [#allocation2]  }
  0x1a   :  { %s77_s26 = sshll.u32 %s5010_s25, 4  ;;  %s37_s29 = sshll.u32 %s5011_s27, 4  ;;  %s78_s26 = int_to_ptr.vmem [resolvable:$true] %s77_s26  ;;  %s38_s29 = int_to_ptr.vmem [resolvable:$true] %s37_s29 }
  0x1b   :  { %s4867_s19 = scalar_lea.hbm %s5789_s8, 2048 }
  0x1c   :  { %p4868_p8 = scmp.ne.s32.totalorder %s5789_s8, %s4867_s19  ;;  %p4871_p9 = scmp.lt.u32.totalorder %s4867_s19, %s5789_s8 }
  0x1e   :  { %p4873_p10 = pnand %p4871_p9, %p4868_p8 }
  0x20   :  { %4876 = shalt.err (!%p4873_p10)
}
  0x21   :  { %s4877_s5 = scalar_lea.vmem %s78_s26, 2048  ;;  %p4882_p12 = scmp.lt.s32.totalorder %s78_s26, %s78_s26 }
  0x22   :  { %p4878_p11 = scmp.ne.s32.totalorder %s78_s26, %s4877_s5  ;;  %p4883_p13 = scmp.lt.s32.totalorder %s4877_s5, %s4877_s5 }
  0x24   :  { %p4884_p0 = por %p4883_p13, %p4882_p12 }
  0x26   :  { %p4885_p1 = pnand %p4884_p0, %p4878_p11 }
  0x28   :  { %4888 = shalt.err (!%p4885_p1)
}
  0x29   :  { %s5012_s28 = smov 64   ;;  %s5013_s2 = smov 4  }
  0x2a   :  { %83 = dma.hbm_to_vmem [thread:$0]  %s5789_s8, 2048, %s78_s26, [#allocation9], %s5012_s28, %s5012_s28, %s5013_s2  }
  0x2b   :  { %s5806_s30 = sld [smem:[#allocation21_spill]] }
  0x31   :  { %s4889_s0 = scalar_lea.hbm %s5806_s30, 512 }
  0x32   :  { %p4890_p2 = scmp.ne.s32.totalorder %s5806_s30, %s4889_s0  ;;  %p4893_p3 = scmp.lt.u32.totalorder %s4889_s0, %s5806_s30 }
  0x34   :  { %p4895_p4 = pnand %p4893_p3, %p4890_p2 }
  0x36   :  { %4898 = shalt.err (!%p4895_p4)
}
  0x37   :  { %s4899_s22 = scalar_lea.vmem %s38_s29, 512  ;;  %p4904_p6 = scmp.lt.s32.totalorder %s38_s29, %s38_s29 }
  0x38   :  { %p4900_p5 = scmp.ne.s32.totalorder %s38_s29, %s4899_s22  ;;  %p4905_p7 = scmp.lt.s32.totalorder %s4899_s22, %s4899_s22 }
  0x3a   :  { %p4906_p8 = por %p4905_p7, %p4904_p6 }
  0x3c   :  { %p4907_p9 = pnand %p4906_p8, %p4900_p5 }
  0x3e   :  { %4910 = shalt.err (!%p4907_p9)
}
  0x3f   :  { %43 = dma.hbm_to_vmem [thread:$0]  %s5806_s30, 512, %s38_s29, [#allocation3], %s5012_s28, %s5012_s28, %s5013_s2  }
  0x40   :  { %s5014_s5 = smov [#allocation7]   ;;  %s4911_s27 = scalar_lea.hbm %s5787_s6, 6144 }
  0x41   :  { %s63_s23 = sshll.u32 %s5014_s5, 4  ;;  %p4912_p10 = scmp.ne.s32.totalorder %s5787_s6, %s4911_s27  ;;  %s64_s23 = int_to_ptr.vmem [resolvable:$true] %s63_s23 }
  0x42   :  { %p4915_p11 = scmp.lt.u32.totalorder %s4911_s27, %s5787_s6 }
  0x44   :  { %p4917_p12 = pnand %p4915_p11, %p4912_p10 }
  0x46   :  { %4920 = shalt.err (!%p4917_p12)
}
  0x47   :  { %s4921_s21 = scalar_lea.vmem %s64_s23, 6144  ;;  %p4926_p0 = scmp.lt.s32.totalorder %s64_s23, %s64_s23 }
  0x48   :  { %p4922_p13 = scmp.ne.s32.totalorder %s64_s23, %s4921_s21  ;;  %p4927_p1 = scmp.lt.s32.totalorder %s4921_s21, %s4921_s21 }
  0x4a   :  { %p4928_p2 = por %p4927_p1, %p4926_p0 }
  0x4c   :  { %p4929_p3 = pnand %p4928_p2, %p4922_p13 }
  0x4e   :  { %4932 = shalt.err (!%p4929_p3)
}
  0x4f   :  { %s5015_s29 = smov 192   ;;  %s5016_s30 = smov 12  }
  0x50   :  { %69 = dma.hbm_to_vmem [thread:$0]  %s5787_s6, 6144, %s64_s23, [#allocation6], %s5015_s29, %s5015_s29, %s5016_s30  }
  0x51   :  { %s5017_s26 = smov [#allocation10]   ;;  %s4933_s27 = scalar_lea.hbm %s5793_s12, 4096 }
  0x52   :  { %s95_s5 = sshll.u32 %s5017_s26, 4  ;;  %p4934_p4 = scmp.ne.s32.totalorder %s5793_s12, %s4933_s27  ;;  %s96_s5 = int_to_ptr.vmem [resolvable:$true] %s95_s5 }
  0x53   :  { %p4937_p5 = scmp.lt.u32.totalorder %s4933_s27, %s5793_s12 }
  0x55   :  { %p4939_p6 = pnand %p4937_p5, %p4934_p4 }
  0x57   :  { %4942 = shalt.err (!%p4939_p6)
}
  0x58   :  { %s4943_s21 = scalar_lea.vmem %s96_s5, 4096  ;;  %p4948_p8 = scmp.lt.s32.totalorder %s96_s5, %s96_s5 }
  0x59   :  { %p4944_p7 = scmp.ne.s32.totalorder %s96_s5, %s4943_s21  ;;  %p4949_p9 = scmp.lt.s32.totalorder %s4943_s21, %s4943_s21 }
  0x5b   :  { %p4950_p10 = por %p4949_p9, %p4948_p8 }
  0x5d   :  { %p4951_p11 = pnand %p4950_p10, %p4944_p7 }
  0x5f   :  { %4954 = shalt.err (!%p4951_p11)
}
  0x60   :  { %s5018_s6 = smov 128   ;;  %s5019_s23 = smov 8  }
  0x61   :  { %101 = dma.hbm_to_vmem [thread:$0]  %s5793_s12, 4096, %s96_s5, [#allocation9], %s5018_s6, %s5018_s6, %s5019_s23  }
  0x62   :  { %s5020_s22 = smov [#allocation11]   ;;  %s4955_s25 = scalar_lea.hbm %s5795_s14, 4096 }
  0x63   :  { %s109_s8 = sshll.u32 %s5020_s22, 4  ;;  %p4956_p12 = scmp.ne.s32.totalorder %s5795_s14, %s4955_s25  ;;  %s110_s8 = int_to_ptr.vmem [resolvable:$true] %s109_s8 }
  0x64   :  { %p4959_p13 = scmp.lt.u32.totalorder %s4955_s25, %s5795_s14 }
  0x66   :  { %p4961_p0 = pnand %p4959_p13, %p4956_p12 }
  0x68   :  { %4964 = shalt.err (!%p4961_p0)
}
  0x69   :  { %s4965_s20 = scalar_lea.vmem %s110_s8, 4096  ;;  %p4970_p2 = scmp.lt.s32.totalorder %s110_s8, %s110_s8 }
  0x6a   :  { %p4966_p1 = scmp.ne.s32.totalorder %s110_s8, %s4965_s20  ;;  %p4971_p3 = scmp.lt.s32.totalorder %s4965_s20, %s4965_s20 }
  0x6c   :  { %p4972_p4 = por %p4971_p3, %p4970_p2 }
  0x6e   :  { %p4973_p5 = pnand %p4972_p4, %p4966_p1 }
  0x70   :  { %4976 = shalt.err (!%p4973_p5)
}
  0x71   :  { %115 = dma.hbm_to_vmem [thread:$0]  %s5795_s14, 4096, %s110_s8, [#allocation12], %s5012_s28, %s5012_s28, %s5013_s2  }
  0x72   :  { %4999 = dma.done.wait [#allocation3], 512  }
  0x73   :  { %5000 = vsyncadd [#allocation3], 4294966784 }
  0x74   :  { %5001 = dma.done.wait [#allocation6], 6160  }
  0x75   :  { %5002 = vsyncadd [#allocation6], 4294961136 }
  0x76   :  { %5003 = dma.done.wait [#allocation9], 6144  }
  0x77   :  { %5004 = vsyncadd [#allocation9], 4294961152 }
  0x78   :  { %5005 = dma.done.wait [#allocation12], 4096  }
  0x79   :  { %5006 = vsyncadd [#allocation12], 4294963200  ;;  %v5021_v0 = vmov 0   ;;  %v5022_v1 = vmov 0.0   ;;  %s5807_s23 = sld [smem:[#allocation19_spill]]  ;;  %v4576_v3 = vld [vmem:[#allocation2] sm:$0xff]   ;;  %v143_v8 = vlaneseq }
  0x7a   :  { %4545 = vset.pattern.permute.xlu0 %v5021_v0  ;;  %4242 = vmatprep.subr.bf16.mxu1 %v5022_v1  ;;  %v4577_v5 = vld [vmem:[#allocation2 + $0x8] sm:$0xff]   ;;  %v4578_v6 = vld [vmem:[#allocation2 + $0x10] sm:$0xff]   ;;  %vm5023_vm0 = vmmov 0   ;;  %v4579_v7 = vld [vmem:[#allocation2 + $0x18] sm:$0xff]   ;;  %vm190_vm3 = vcmask 523264   ;;  %vm631_vm4 = vcmask 261120  }
  0x7b   :  { %4254 = vmatprep.subr.bf16.mxu0 %v5022_v1  ;;  %4243 = vmatpush3.bf16.msra.mxu1 %v4576_v3  ;;  %v144_v9 = vand.u32 127, %v143_v8  ;;  %v235_v15 = vld [vmem:[%s5784_s3] sm:$0xff]  ;;  %v4583_v24 = vld [vmem:[#allocation7 + $0x8] ss:$12 sps:$4 sm:$0xff]   ;;  %v4594_v39 = vld [vmem:[#allocation7 + $0x4c] ss:$12 sps:$4 sm:$0xff]  }
  0x7c   :  { %4244 = vmatprep.subr.bf16.mxu1 %v5022_v1  ;;  %4250 = vmatprep.mubr.msk.bf16.mxu1 %vm5023_vm0, %v5022_v1  ;;  %v4580_v22 = vld [vmem:[#allocation7] ss:$12 sps:$4 sm:$0xff]   ;;  %v4582_v23 = vld [vmem:[#allocation7 + $0x4] ss:$12 sps:$4 sm:$0xff]   ;;  %v4586_v25 = vld [vmem:[#allocation7 + $0x1c] ss:$12 sps:$4 sm:$0xff]  }
  0x7d   :  { %4270 = vmatprep.mubr.msk.bf16.mxu0 %vm5023_vm0, %v5022_v1  ;;  %4255 = vmatpush3.bf16.msra.mxu0 %v4583_v24  ;;  %v4584_v26 = vld [vmem:[#allocation7 + $0x18] ss:$12 sps:$4 sm:$0xff]   ;;  %v4587_v35 = vld [vmem:[#allocation7 + $0x20] ss:$12 sps:$4 sm:$0xff]   ;;  %v4588_v37 = vld [vmem:[#allocation7 + $0x30] ss:$12 sps:$4 sm:$0xff]  }
  0x7e   :  { %4256 = vmatprep.subr.bf16.mxu0 %v5022_v1  ;;  %v4590_v36 = vld [vmem:[#allocation7 + $0x34] ss:$12 sps:$4 sm:$0xff]   ;;  %v4591_v38 = vld [vmem:[#allocation7 + $0x38] ss:$12 sps:$4 sm:$0xff]   ;;  %v4595_v41 = vld [vmem:[#allocation7 + $0x50] ss:$12 sps:$4 sm:$0xff]  }
  0x7f   :  { %v141_v2 = vld [vmem:[%s5807_s23] sm:$0xff]  ;;  %v142_v4 = vld [vmem:[%s5807_s23 + $0x8] sm:$0xff]  ;;  %4245 = vmatpush3.bf16.msra.mxu1 %v4577_v5  ;;  %s5024_s26 = smov 96   ;;  %s5025_s24 = smov 32   ;;  %vm1100_vm5 = vcmask 1043456   ;;  %vm1000_vm6 = vcmask 64512  }
  0x80   :  { %146 = vperm.xlu0 %4545, %v141_v2   ;;  %4246 = vmatprep.subr.bf16.mxu1 %v5022_v1  ;;  %v4592_v40 = vld [vmem:[#allocation7 + $0x48] ss:$12 sps:$4 sm:$0xff]   ;;  %v4598_v42 = vld [vmem:[#allocation7 + $0x64] ss:$12 sps:$4 sm:$0xff]   ;;  %v4596_v43 = vld [vmem:[#allocation7 + $0x60] ss:$12 sps:$4 sm:$0xff]  }
  0x81   :  { %4257 = vmatpush3.bf16.msra.mxu0 %v4587_v35  ;;  %v4599_v44 = vld [vmem:[#allocation7 + $0x68] ss:$12 sps:$4 sm:$0xff]   ;;  %v4600_v46 = vld [vmem:[#allocation7 + $0x78] ss:$12 sps:$4 sm:$0xff]   ;;  %v4603_v47 = vld [vmem:[#allocation7 + $0x80] ss:$12 sps:$4 sm:$0xff]  }
  0x82   :  { %4258 = vmatprep.subr.bf16.mxu0 %v5022_v1  ;;  %v4602_v45 = vld [vmem:[#allocation7 + $0x7c] ss:$12 sps:$4 sm:$0xff]   ;;  %v4606_v48 = vld [vmem:[#allocation7 + $0x94] ss:$12 sps:$4 sm:$0xff]   ;;  %v4607_v50 = vld [vmem:[#allocation7 + $0x98] ss:$12 sps:$4 sm:$0xff]  }
  0x83   :  { %4247 = vmatpush3.bf16.msra.mxu1 %v4578_v6  ;;  %v4604_v49 = vld [vmem:[#allocation7 + $0x90] ss:$12 sps:$4 sm:$0xff]   ;;  %v4610_v51 = vld [vmem:[#allocation7 + $0xac] ss:$12 sps:$4 sm:$0xff]   ;;  %v4608_v52 = vld [vmem:[#allocation7 + $0xa8] ss:$12 sps:$4 sm:$0xff]  }
  0x84   :  { %149 = vperm.xlu0 %4545, %v142_v4   ;;  %4248 = vmatprep.subr.bf16.mxu1 %v5022_v1  ;;  %v4611_v53 = vld [vmem:[#allocation7 + $0xb0] ss:$12 sps:$4 sm:$0xff]   ;;  %s5808_s0 = sld [smem:[#allocation20_spill]]  ;;  %vm1494_vm7 = vcmask 785408   ;;  %vm3841_vm8 = vcmask 58368   ;;  %vm3857_vm9 = vcmask 1041409  }
  0x85   :  { %4259 = vmatpush3.bf16.msra.mxu0 %v4591_v38  ;;  %v3886_v62 = vld [vmem:[%s5785_s4] ss:$0 sm:$0xff] }
  0x86   :  { %4260 = vmatprep.subr.bf16.mxu0 %v5022_v1  ;;  %v3887_v4 = vld [vmem:[#allocation5] ss:$0 sm:$0xff] }
  0x87   :  { %4249 = vmatpush3.bf16.msra.mxu1 %v4579_v7 }
  0x88   :  { %483 = vmatprep.subr.bf16.mxu1 %v4582_v23 }
  0x89   :  { %4261 = vmatpush3.bf16.msra.mxu0 %v4595_v41 }
  0x8a   :  { %4262 = vmatprep.subr.bf16.mxu0 %v5022_v1 }
  0x8d   :  { %4263 = vmatpush3.bf16.msra.mxu0 %v4599_v44 }
  0x8e   :  { %4264 = vmatprep.subr.bf16.mxu0 %v5022_v1 }
  0x91   :  { %4265 = vmatpush3.bf16.msra.mxu0 %v4603_v47 }
  0x92   :  { %4266 = vmatprep.subr.bf16.mxu0 %v5022_v1 }
  0x95   :  { %4267 = vmatpush3.bf16.msra.mxu0 %v4607_v50 }
  0x96   :  { %4268 = vmatprep.subr.bf16.mxu0 %v5022_v1 }
  0x99   :  { %4269 = vmatpush3.bf16.msra.mxu0 %v4611_v53 }
  0x9a   :  { %4286 = vmatprep.subr.bf16.mxu0 %v5022_v1 }
  0xff   :  { %v147_v10 = vpop.permute.xlu0 %146 }
 0x100   :  { %vm151_vm1 = vcmp.eq.s32.totalorder %v144_v9, %v147_v10  ;;  %v5256_v10 = vshrl.u32 %v143_v8, 7 }
 0x101   :  { %v3879_v12 = vsel %vm151_vm1, 1.0, %v5022_v1 }
 0x103   :  { %v150_v11 = vpop.permute.xlu0 %149 }
 0x104   :  { %vm152_vm2 = vcmp.eq.s32.totalorder %v144_v9, %v150_v11  ;;  %v5259_v11 = vsub.s32 0, %v5256_v10 }
 0x105   :  { %v3880_v13 = vsel %vm152_vm2, 1.0, %v5022_v1 }
 0x106   :  { %v157_v14 = vpack.c.bf16 %v3880_v13, %v3879_v12  ;;  %v5262_v12 = vsub.s32 1, %v5256_v10  ;;  %v5267_v13 = vld [vmem:[%s5788_s7] sm:$0x7] }
 0x108   :  { %4251 = vmatmul.mubr.msk.bf16.vlgmr.msra.gmra.mrb[0].mxu1 %vm190_vm3, %v157_v14  ;;  %v343_v14 = vrot.slane %v5267_v13, %v5259_v11 }
 0x109   :  { %515 = vmatprep.mubr.bf16.mxu1 %v5021_v0  ;;  %484 = vmatpush1.bf16.msra.mxu1 %v4580_v22 }
 0x10a   :  { %485 = vmatprep.subr.bf16.mxu1 %v4586_v25 }
 0x10d   :  { %486 = vmatpush1.bf16.msra.mxu1 %v4584_v26 }
 0x10e   :  { %487 = vmatprep.subr.bf16.mxu1 %v4590_v36 }
 0x111   :  { %488 = vmatpush1.bf16.msra.mxu1 %v4588_v37 }
 0x112   :  { %489 = vmatprep.subr.bf16.mxu1 %v4594_v39 }
 0x115   :  { %490 = vmatpush1.bf16.msra.mxu1 %v4592_v40 }
 0x116   :  { %491 = vmatprep.subr.bf16.mxu1 %v4598_v42 }
 0x119   :  { %492 = vmatpush1.bf16.msra.mxu1 %v4596_v43  ;;  %v350_v43 = vsub.s32 2, %v5256_v10 }
 0x11a   :  { %493 = vmatprep.subr.bf16.mxu1 %v4602_v45 }
 0x11b   :  { %v351_v45 = vrot.slane %v5267_v13, %v350_v43 }
 0x11d   :  { %494 = vmatpush1.bf16.msra.mxu1 %v4600_v46 }
 0x11e   :  { %495 = vmatprep.subr.bf16.mxu1 %v4606_v48 }
 0x121   :  { %496 = vmatpush1.bf16.msra.mxu1 %v4604_v49 }
 0x122   :  { %497 = vmatprep.subr.bf16.mxu1 %v4610_v51 }
 0x125   :  { %498 = vmatpush1.bf16.msra.mxu1 %v4608_v52 }
 0x126   :  { %4274 = vmatprep.subr.bf16.mxu1 %v5022_v1 }
 0x1db   :  { %v228_v16 = vpop.f32.mrb[0].mxu1 }
 0x1dc   :  { %v236_v17 = vadd.f32 %v235_v15, %v228_v16  ;;  %v4252_v18 = vpop.f32.mrb[1].mxu1 }
 0x1dd   :  { %v231_v19 = vpop.f32.mrb[2].mxu1 }
 0x1de   :  { %240 = vadd.xlane.f32.xlu1 %v236_v17  ;;  %v4253_v20 = vpop.f32.mrb[3].mxu1  ;;  %v237_v21 = vadd.f32 %v235_v15, %v231_v19  ;;  %v347_v15 = vrot.slane %v5267_v13, %v5262_v12 }
 0x1e2   :  { %242 = vadd.xlane.f32.xlu1 %v237_v21 }
 0x26b   :  { %v241_v27 = vpop.xlane.xlu1 %240 }
 0x26c   :  { %v245_v28 = vmul.f32 0.0078125, %v241_v27 }
 0x26e   :  { %v5229_v29 = vsub.f32 %v236_v17, %v245_v28 }
 0x26f   :  { %v243_v30 = vpop.xlane.xlu1 %242 }
 0x270   :  { %v246_v31 = vmul.f32 0.0078125, %v243_v30  ;;  %v249_v32 = vmul.f32 %v5229_v29, %v5229_v29 }
 0x272   :  { %251 = vadd.xlane.f32.xlu0 %v249_v32  ;;  %v248_v33 = vsub.f32 %v237_v21, %v246_v31 }
 0x274   :  { %v250_v34 = vmul.f32 %v248_v33, %v248_v33 }
 0x276   :  { %253 = vadd.xlane.f32.xlu1 %v250_v34 }
 0x2ff   :  { %v252_v54 = vpop.xlane.xlu0 %251 }
 0x300   :  { %v255_v55 = vmul.f32 0.0078125, %v252_v54 }
 0x302   :  { %v257_v56 = vadd.f32 1e-12, %v255_v55 }
 0x303   :  { %v254_v57 = vpop.xlane.xlu1 %253 }
 0x304   :  { %4740 = vrsqrt.f32 %v257_v56  ;;  %v256_v58 = vmul.f32 0.0078125, %v254_v57 }
 0x306   :  { %v258_v59 = vadd.f32 1e-12, %v256_v58 }
 0x308   :  { %4742 = vrsqrt.f32 %v258_v59  ;;  %v5026_v59 = vmov 1966171168  }
 0x30e   :  { %v4741_v60 = vpop.eup %4740 }
 0x30f   :  { %v261_v61 = vmul.f32 %v4741_v60, %v5229_v29  ;;  %v284_v60 = vunpack.c.l.s4 %v5026_v59 }
 0x311   :  { %v269_v3 = vmul.f32 %v3886_v62, %v261_v61  ;;  %v279_v61 = vld [vmem:[%s5808_s0] sm:$0x3] }
 0x312   :  { %v4743_v63 = vpop.eup %4742 }
 0x313   :  { %v262_v2 = vmul.f32 %v4743_v63, %v248_v33  ;;  %v5245_v6 = vadd.f32 %v3887_v4, %v269_v3  ;;  %v285_v63 = vunpack.c.0.s8 %v284_v60 }
 0x315   :  { %v270_v5 = vmul.f32 %v3886_v62, %v262_v2  ;;  %v3888_v62 = vadd.f32 -1.0, %v279_v61  ;;  %v288_v3 = vsub.s32 %v285_v63, %v5256_v10 }
 0x317   :  { %v5247_v7 = vadd.f32 %v3887_v4, %v270_v5  ;;  %v281_v2 = vmul.f32 1e+09, %v3888_v62 }
 0x319   :  { %v305_v9 = vpack.c.bf16 %v5247_v7, %v5245_v6  ;;  %v289_v4 = vrot.slane %v281_v2, %v288_v3 }
 0x31b   :  { %516 = vmatmul.mubr.bf16.vlgmr.msra.gmra.mrb[4].mxu1 %v305_v9  ;;  %4271 = vmatmul.mubr.bf16.vlgmr.msra.gmra.mrb[0].mxu0 %v305_v9  ;;  %v297_v5 = vrot.slane %v289_v4, %v288_v3  ;;  %v290_v9 = vcombine.high %v289_v4, %v289_v4 }
 0x31c   :  { %4276 = vmatprep.mubr.msk.bf16.mxu1 %vm5023_vm0, %v5022_v1  ;;  %4288 = vmatprep.mubr.msk.bf16.mxu0 %vm5023_vm0, %v5022_v1 }
 0x31d   :  { %v5350_v13 = vrot.slane %v297_v5, %v5259_v11 }
 0x3ee   :  { %v517_v16 = vpop.f32.mrb[4].mxu1  ;;  %v5273_v8 = vpop.f32.mrb[0].mxu0 }
 0x3ef   :  { %v518_v17 = vadd.f32 %v517_v16, %v343_v14  ;;  %v519_v18 = vpop.f32.mrb[5].mxu1  ;;  %v4272_v19 = vpop.f32.mrb[1].mxu0  ;;  %v561_v48 = vadd.f32 %v5273_v8, %v351_v45 }
 0x3f0   :  { %v520_v20 = vadd.f32 %v519_v18, %v347_v15  ;;  %v521_v21 = vpop.f32.mrb[6].mxu1  ;;  %v5275_v22 = vpop.f32.mrb[2].mxu0 }
 0x3f1   :  { %v4081_v23 = vpack.c.bf16 %v518_v17, %v518_v17  ;;  %v523_v24 = vpop.f32.mrb[7].mxu1  ;;  %v4273_v25 = vpop.f32.mrb[3].mxu0  ;;  %v522_v30 = vadd.f32 %v521_v21, %v343_v14  ;;  %v5323_v51 = vpack.c.bf16 %v561_v48, %v561_v48  ;;  %v564_v52 = vadd.f32 %v5275_v22, %v351_v45 }
 0x3f2   :  { %v4083_v26 = vpack.c.bf16 %v520_v20, %v520_v20  ;;  %v524_v27 = vadd.f32 %v523_v24, %v347_v15  ;;  %v304_v15 = vrot.slane %v290_v9, %v288_v3 }
 0x3f3   :  { %573 = vrot.lane.b32.xlu1 %v4081_v23, %s5024_s26  ;;  %v4082_v32 = vpack.c.bf16 %v522_v30, %v522_v30  ;;  %v5331_v55 = vpack.c.bf16 %v564_v52, %v564_v52  ;;  %v1102_v56 = vsel %vm1100_vm5, %v5323_v51, 0 }
 0x3f4   :  { %595 = vrot.lane.b32.xlu0 %v4083_v26, %s5012_s28  ;;  %v636_v28 = vsel %vm631_vm4, %v4083_v26, 0  ;;  %v4084_v29 = vpack.c.bf16 %v524_v27, %v524_v27  ;;  %v5358_v20 = vrot.slane %v304_v15, %v5259_v11 }
 0x3f5   :  { %4275 = vmatpush3.bf16.xpose.msra.mxu1 %v636_v28  ;;  %v1148_v58 = vsel %vm1100_vm5, %v5331_v55, 0 }
 0x3f6   :  { %4280 = vmatprep.subr.bf16.mxu1 %v5022_v1  ;;  %v682_v31 = vsel %vm631_vm4, %v4084_v29, 0 }
 0x3f7   :  { %591 = vrot.lane.b32.xlu1 %v4083_v26, %s5024_s26 }
 0x3f8   :  { %581 = vrot.lane.b32.xlu0 %v4081_v23, %s5025_s24 }
 0x3fb   :  { %577 = vrot.lane.b32.xlu1 %v4081_v23, %s5012_s28 }
 0x3fc   :  { %4277 = vmatmul.mubr.msk.bf16.vlgmr.msra.gmra.mrb[8].mxu1 %vm631_vm4, %v4081_v23 }
 0x3fd   :  { %4281 = vmatpush3.bf16.xpose.msra.mxu1 %v682_v31  ;;  %4282 = vmatprep.mubr.msk.bf16.mxu1 %vm5023_vm0, %v5022_v1 }
 0x3fe   :  { %4292 = vmatprep.subr.bf16.mxu1 %v5022_v1 }
 0x3ff   :  { %575 = vrot.lane.b32.xlu1 %v4082_v32, %s5024_s26 }
 0x403   :  { %593 = vrot.lane.b32.xlu1 %v4084_v29, %s5024_s26 }
 0x404   :  { %4283 = vmatmul.mubr.msk.bf16.vlgmr.msra.gmra.mrb[12].mxu1 %vm631_vm4, %v4082_v32 }
 0x405   :  { %4294 = vmatprep.mubr.msk.bf16.mxu1 %vm5023_vm0, %v5022_v1 }
 0x407   :  { %579 = vrot.lane.b32.xlu1 %v4082_v32, %s5012_s28 }
 0x40b   :  { %597 = vrot.lane.b32.xlu1 %v4084_v29, %s5012_s28 }
 0x40f   :  { %599 = vrot.lane.b32.xlu1 %v4083_v26, %s5025_s24 }
 0x413   :  { %601 = vrot.lane.b32.xlu1 %v4084_v29, %s5025_s24 }
 0x417   :  { %583 = vrot.lane.b32.xlu1 %v4082_v32, %s5025_s24 }
 0x465   :  { %v574_v33 = vpop.permute.xlu1 %573 }
 0x466   :  { %v596_v37 = vpop.permute.xlu0 %595 }
 0x467   :  { %v820_v39 = vsel %vm631_vm4, %v596_v37, 0 }
 0x469   :  { %v592_v34 = vpop.permute.xlu1 %591 }
 0x46a   :  { %v728_v35 = vsel %vm631_vm4, %v592_v34, 0  ;;  %v582_v54 = vpop.permute.xlu0 %581 }
 0x46b   :  { %4287 = vmatpush3.bf16.xpose.msra.mxu0 %v728_v35 }
 0x46c   :  { %4298 = vmatprep.subr.bf16.mxu0 %v5022_v1 }
 0x46d   :  { %v578_v36 = vpop.permute.xlu1 %577 }
 0x471   :  { %v576_v38 = vpop.permute.xlu1 %575 }
 0x472   :  { %4289 = vmatmul.mubr.msk.bf16.vlgmr.msra.gmra.mrb[4].mxu0 %vm631_vm4, %v574_v33 }
 0x473   :  { %4299 = vmatpush3.bf16.xpose.msra.mxu0 %v820_v39  ;;  %4300 = vmatprep.mubr.msk.bf16.mxu0 %vm5023_vm0, %v5022_v1 }
 0x474   :  { %4310 = vmatprep.subr.bf16.mxu0 %v5022_v1 }
 0x475   :  { %v594_v40 = vpop.permute.xlu1 %593 }
 0x476   :  { %v774_v41 = vsel %vm631_vm4, %v594_v40, 0 }
 0x477   :  { %4293 = vmatpush3.bf16.xpose.msra.mxu1 %v774_v41 }
 0x478   :  { %4304 = vmatprep.subr.bf16.mxu1 %v5022_v1 }
 0x479   :  { %v580_v42 = vpop.permute.xlu1 %579 }
 0x47a   :  { %4301 = vmatmul.mubr.msk.bf16.vlgmr.msra.gmra.mrb[8].mxu0 %vm631_vm4, %v578_v36 }
 0x47b   :  { %4312 = vmatprep.mubr.msk.bf16.mxu0 %vm5023_vm0, %v5022_v1 }
 0x47d   :  { %v598_v44 = vpop.permute.xlu1 %597 }
 0x47e   :  { %v866_v46 = vsel %vm631_vm4, %v598_v44, 0  ;;  %4295 = vmatmul.mubr.msk.bf16.vlgmr.msra.gmra.mrb[16].mxu1 %vm631_vm4, %v576_v38 }
 0x47f   :  { %4305 = vmatpush3.bf16.xpose.msra.mxu1 %v866_v46  ;;  %4306 = vmatprep.mubr.msk.bf16.mxu1 %vm5023_vm0, %v5022_v1 }
 0x480   :  { %4316 = vmatprep.subr.bf16.mxu1 %v5022_v1 }
 0x481   :  { %v600_v47 = vpop.permute.xlu1 %599 }
 0x482   :  { %v912_v49 = vsel %vm631_vm4, %v600_v47, 0 }
 0x483   :  { %4311 = vmatpush3.bf16.xpose.msra.mxu0 %v912_v49 }
 0x484   :  { %4322 = vmatprep.subr.bf16.mxu0 %v5022_v1 }
 0x485   :  { %v602_v50 = vpop.permute.xlu1 %601 }
 0x486   :  { %v958_v53 = vsel %vm631_vm4, %v602_v50, 0  ;;  %4307 = vmatmul.mubr.msk.bf16.vlgmr.msra.gmra.mrb[20].mxu1 %vm631_vm4, %v580_v42 }
 0x487   :  { %4317 = vmatpush3.bf16.xpose.msra.mxu1 %v958_v53  ;;  %4318 = vmatprep.mubr.msk.bf16.mxu1 %vm5023_vm0, %v5022_v1 }
 0x488   :  { %4328 = vmatprep.subr.bf16.mxu1 %v5022_v1 }
 0x489   :  { %v584_v57 = vpop.permute.xlu1 %583 }
 0x48a   :  { %4313 = vmatmul.mubr.msk.bf16.vlgmr.msra.gmra.mrb[12].mxu0 %vm631_vm4, %v582_v54 }
 0x48b   :  { %4323 = vmatpush3.bf16.msra.mxu0 %v1102_v56  ;;  %4324 = vmatprep.mubr.msk.bf16.mxu0 %vm5023_vm0, %v5022_v1 }
 0x48c   :  { %4334 = vmatprep.subr.bf16.mxu0 %v5022_v1 }
 0x48e   :  { %4319 = vmatmul.mubr.msk.bf16.vlgmr.msra.gmra.mrb[24].mxu1 %vm631_vm4, %v584_v57 }
 0x48f   :  { %4329 = vmatpush3.bf16.msra.mxu1 %v1148_v58  ;;  %4330 = vmatprep.mubr.msk.bf16.mxu1 %vm5023_vm0, %v5022_v1 }
 0x490   :  { %4340 = vmatprep.subr.bf16.mxu1 %v5022_v1 }
 0x4cf   :  { %v672_v14 = vpop.f32.mrb[8].mxu1 }
 0x4d0   :  { %v5353_v16 = vadd.f32 %v672_v14, %v5350_v13  ;;  %v4278_v8 = vpop.f32.mrb[9].mxu1 }
 0x4d1   :  { %v675_v17 = vpop.f32.mrb[10].mxu1 }
 0x4d2   :  { %v4279_v18 = vpop.f32.mrb[11].mxu1  ;;  %v1001_v19 = vsel %vm1000_vm6, %v5353_v16, -inf }
 0x4d3   :  { %1002 = vmax.xlane.f32.xlu0 %v1001_v19 }
 0x4d7   :  { %v718_v21 = vpop.f32.mrb[12].mxu1 }
 0x4d8   :  { %v719_v22 = vadd.f32 %v718_v21, %v5358_v20  ;;  %v4284_v23 = vpop.f32.mrb[13].mxu1 }
 0x4d9   :  { %v721_v24 = vpop.f32.mrb[14].mxu1 }
 0x4da   :  { %v4285_v25 = vpop.f32.mrb[15].mxu1  ;;  %v1004_v26 = vsel %vm1000_vm6, %v719_v22, -inf }
 0x4db   :  { %1005 = vmax.xlane.f32.xlu1 %v1004_v26 }
 0x545   :  { %v764_v27 = vpop.f32.mrb[4].mxu0 }
 0x546   :  { %v765_v28 = vadd.f32 %v764_v27, %v5350_v13  ;;  %v4290_v29 = vpop.f32.mrb[5].mxu0 }
 0x547   :  { %v767_v30 = vpop.f32.mrb[6].mxu0 }
 0x548   :  { %v4291_v31 = vpop.f32.mrb[7].mxu0  ;;  %v1007_v32 = vsel %vm1000_vm6, %v765_v28, -inf }
 0x549   :  { %1008 = vmax.xlane.f32.xlu0 %v1007_v32 }
 0x54d   :  { %v856_v33 = vpop.f32.mrb[8].mxu0 }
 0x54e   :  { %v5365_v34 = vadd.f32 %v856_v33, %v5350_v13  ;;  %v4302_v35 = vpop.f32.mrb[9].mxu0 }
 0x54f   :  { %v859_v36 = vpop.f32.mrb[10].mxu0 }
 0x550   :  { %v4303_v37 = vpop.f32.mrb[11].mxu0  ;;  %v1013_v38 = vsel %vm1000_vm6, %v5365_v34, -inf }
 0x551   :  { %1014 = vmax.xlane.f32.xlu1 %v1013_v38  ;;  %v810_v39 = vpop.f32.mrb[16].mxu1 }
 0x552   :  { %v811_v40 = vadd.f32 %v810_v39, %v5358_v20  ;;  %v4296_v41 = vpop.f32.mrb[17].mxu1 }
 0x553   :  { %v813_v42 = vpop.f32.mrb[18].mxu1 }
 0x554   :  { %v4297_v44 = vpop.f32.mrb[19].mxu1  ;;  %v1010_v45 = vsel %vm1000_vm6, %v811_v40, -inf }
 0x555   :  { %1011 = vmax.xlane.f32.xlu0 %v1010_v45 }
 0x559   :  { %v902_v46 = vpop.f32.mrb[20].mxu1 }
 0x55a   :  { %v5372_v47 = vadd.f32 %v902_v46, %v5358_v20  ;;  %v4308_v48 = vpop.f32.mrb[21].mxu1 }
 0x55b   :  { %v905_v49 = vpop.f32.mrb[22].mxu1 }
 0x55c   :  { %v4309_v50 = vpop.f32.mrb[23].mxu1  ;;  %v1016_v52 = vsel %vm1000_vm6, %v5372_v47, -inf }
 0x55d   :  { %v948_v53 = vpop.f32.mrb[12].mxu0  ;;  %1017 = vmax.xlane.f32.xlu0 %v1016_v52 }
 0x55e   :  { %v949_v54 = vadd.f32 %v948_v53, %v5350_v13  ;;  %v4314_v56 = vpop.f32.mrb[13].mxu0 }
 0x55f   :  { %v951_v57 = vpop.f32.mrb[14].mxu0 }
 0x560   :  { %v4315_v58 = vpop.f32.mrb[15].mxu0  ;;  %v1019_v59 = vsel %vm1000_vm6, %v949_v54, -inf  ;;  %v1003_v8 = vpop.xlane.xlu0 %1002 }
 0x561   :  { %1020 = vmax.xlane.f32.xlu1 %v1019_v59  ;;  %v994_v60 = vpop.f32.mrb[24].mxu1  ;;  %v1025_v17 = vsub.f32 %v5353_v16, %v1003_v8 }
 0x562   :  { %v995_v61 = vadd.f32 %v994_v60, %v5358_v20  ;;  %v4320_v62 = vpop.f32.mrb[25].mxu1 }
 0x563   :  { %v997_v63 = vpop.f32.mrb[26].mxu1  ;;  %v1033_v18 = vmul.f32 1.442695, %v1025_v17 }
 0x564   :  { %v4321_v2 = vpop.f32.mrb[27].mxu1  ;;  %v1022_v3 = vsel %vm1000_vm6, %v995_v61, -inf }
 0x565   :  { %1023 = vmax.xlane.f32.xlu0 %v1022_v3 }
 0x568   :  { %v1006_v4 = vpop.xlane.xlu1 %1005 }
 0x569   :  { %v1026_v5 = vsub.f32 %v719_v22, %v1006_v4 }
 0x56b   :  { %v1035_v9 = vmul.f32 1.442695, %v1026_v5 }
 0x56d   :  { %4744 = vpow2.f32 %v1035_v9 }
 0x56e   :  { %4746 = vpow2.f32 %v1033_v18 }
 0x572   :  { %609 = vrot.lane.b32.xlu1 %v5323_v51, %s5024_s26 }
 0x577   :  { %v4745_v14 = vpop.eup %4744 }
 0x578   :  { %v1052_v15 = vsel %vm1000_vm6, %v4745_v14, 0.0  ;;  %v4747_v19 = vpop.eup %4746 }
 0x579   :  { %1053 = vadd.xlane.f32.xlu0 %v1052_v15  ;;  %v1049_v21 = vsel %vm1000_vm6, %v4747_v19, 0.0 }
 0x596   :  { %1050 = vadd.xlane.f32.xlu1 %v1049_v21 }
 0x5d6   :  { %v1009_v23 = vpop.xlane.xlu0 %1008 }
 0x5d7   :  { %v1027_v22 = vsub.f32 %v765_v28, %v1009_v23 }
 0x5d9   :  { %v1037_v24 = vmul.f32 1.442695, %v1027_v22 }
 0x5db   :  { %4748 = vpow2.f32 %v1037_v24 }
 0x5de   :  { %v1015_v35 = vpop.xlane.xlu1 %1014 }
 0x5df   :  { %v1029_v36 = vsub.f32 %v5365_v34, %v1015_v35 }
 0x5e1   :  { %v1041_v38 = vmul.f32 1.442695, %v1029_v36 }
 0x5e2   :  { %v1012_v25 = vpop.xlane.xlu0 %1011 }
 0x5e3   :  { %v1028_v26 = vsub.f32 %v811_v40, %v1012_v25 }
 0x5e5   :  { %v4749_v27 = vpop.eup %4748  ;;  %v1039_v29 = vmul.f32 1.442695, %v1028_v26 }
 0x5e6   :  { %v1055_v30 = vsel %vm1000_vm6, %v4749_v27, 0.0 }
 0x5e7   :  { %4750 = vpow2.f32 %v1039_v29  ;;  %1056 = vadd.xlane.f32.xlu1 %v1055_v30 }
 0x5ea   :  { %v1018_v28 = vpop.xlane.xlu0 %1017 }
 0x5eb   :  { %v1030_v41 = vsub.f32 %v5372_v47, %v1018_v28 }
 0x5ed   :  { %v1043_v46 = vmul.f32 1.442695, %v1030_v41 }
 0x5ee   :  { %v1021_v37 = vpop.xlane.xlu1 %1020 }
 0x5ef   :  { %v1031_v39 = vsub.f32 %v949_v54, %v1021_v37 }
 0x5f1   :  { %v5386_v31 = vpop.eup %4750  ;;  %v1045_v42 = vmul.f32 1.442695, %v1031_v39 }
 0x5f2   :  { %v1058_v16 = vsel %vm1000_vm6, %v5386_v31, 0.0  ;;  %v1024_v32 = vpop.xlane.xlu0 %1023  ;;  %v610_v50 = vpop.permute.xlu1 %609 }
 0x5f3   :  { %1059 = vadd.xlane.f32.xlu0 %v1058_v16  ;;  %v1032_v48 = vsub.f32 %v995_v61, %v1024_v32  ;;  %v1194_v63 = vsel %vm1100_vm5, %v610_v50, 0 }
 0x5f5   :  { %v1047_v34 = vmul.f32 1.442695, %v1032_v48 }
 0x5f8   :  { %613 = vrot.lane.b32.xlu1 %v5323_v51, %s5012_s28 }
 0x5fc   :  { %615 = vrot.lane.b32.xlu1 %v5331_v55, %s5012_s28 }
 0x606   :  { %v1054_v33 = vpop.xlane.xlu0 %1053 }
 0x607   :  { %4752 = vrcp.f32 %v1054_v33 }
 0x608   :  { %4754 = vpow2.f32 %v1041_v38 }
 0x609   :  { %611 = vrot.lane.b32.xlu0 %v5331_v55, %s5024_s26  ;;  %4756 = vpow2.f32 %v1045_v42 }
 0x60a   :  { %4758 = vpow2.f32 %v1043_v46 }
 0x60b   :  { %4760 = vpow2.f32 %v1047_v34 }
 0x611   :  { %v4753_v40 = vpop.eup %4752 }
 0x612   :  { %v1082_v44 = vmul.f32 %v4753_v40, %v4745_v14  ;;  %v4755_v49 = vpop.eup %4754 }
 0x613   :  { %v1061_v52 = vsel %vm1000_vm6, %v4755_v49, 0.0  ;;  %v5402_v53 = vpop.eup %4756 }
 0x614   :  { %v1090_v45 = vpack.c.bf16 %v1082_v44, %v1082_v44  ;;  %v1067_v54 = vsel %vm1000_vm6, %v5402_v53, 0.0  ;;  %v5406_v56 = vpop.eup %4758 }
 0x615   :  { %v1064_v57 = vsel %vm1000_vm6, %v5406_v56, 0.0  ;;  %v5410_v58 = vpop.eup %4760 }
 0x616   :  { %4331 = vmatmul.mubr.msk.bf16.vlgmr.msra.gmra.mrb[28].mxu1 %vm1000_vm6, %v1090_v45  ;;  %v1070_v59 = vsel %vm1000_vm6, %v5410_v58, 0.0 }
 0x617   :  { %4342 = vmatprep.mubr.msk.bf16.mxu1 %vm5023_vm0, %v5022_v1 }
 0x620   :  { %1062 = vadd.xlane.f32.xlu1 %v1061_v52 }
 0x623   :  { %v1051_v47 = vpop.xlane.xlu1 %1050 }
 0x624   :  { %4762 = vrcp.f32 %v1051_v47  ;;  %1068 = vadd.xlane.f32.xlu1 %v1067_v54 }
 0x628   :  { %1065 = vadd.xlane.f32.xlu0 %v1064_v57  ;;  %v4613_v57 = vld [vmem:[#allocation8 + $0x8] sm:$0xff]  }
 0x62c   :  { %1071 = vadd.xlane.f32.xlu0 %v1070_v59 }
 0x62e   :  { %v4763_v60 = vpop.eup %4762 }
 0x62f   :  { %v1081_v61 = vmul.f32 %v4763_v60, %v4747_v19 }
 0x631   :  { %v1089_v62 = vpack.c.bf16 %v1081_v61, %v1081_v61 }
 0x633   :  { %4325 = vmatmul.mubr.msk.bf16.vlgmr.msra.gmra.mrb[16].mxu0 %vm1000_vm6, %v1089_v62 }
 0x634   :  { %4335 = vmatpush3.bf16.msra.mxu0 %v1194_v63  ;;  %4336 = vmatprep.mubr.msk.bf16.mxu0 %vm5023_vm0, %v5022_v1  ;;  %v4615_v63 = vld [vmem:[#allocation8 + $0x18] sm:$0xff]  }
 0x635   :  { %619 = vrot.lane.b32.xlu1 %v5331_v55, %s5025_s24  ;;  %4346 = vmatprep.subr.bf16.mxu0 %v5022_v1 }
 0x642   :  { %617 = vrot.lane.b32.xlu0 %v5323_v51, %s5025_s24 }
 0x674   :  { %v1057_v2 = vpop.xlane.xlu1 %1056 }
 0x675   :  { %4764 = vrcp.f32 %v1057_v2 }
 0x678   :  { %v614_v9 = vpop.permute.xlu1 %613 }
 0x679   :  { %v1286_v15 = vsel %vm1100_vm5, %v614_v9, 0 }
 0x67c   :  { %v616_v18 = vpop.permute.xlu1 %615 }
 0x67d   :  { %v1332_v21 = vsel %vm1100_vm5, %v616_v18, 0 }
 0x67f   :  { %v4765_v3 = vpop.eup %4764 }
 0x680   :  { %v1083_v4 = vmul.f32 %v4765_v3, %v4749_v27  ;;  %v1060_v5 = vpop.xlane.xlu0 %1059  ;;  %v4616_v3 = vld [vmem:[#allocation8 + $0x20] sm:$0xff]  }
 0x681   :  { %4766 = vrcp.f32 %v1060_v5 }
 0x682   :  { %v1091_v14 = vpack.c.bf16 %v1083_v4, %v1083_v4  ;;  %v4617_v4 = vld [vmem:[#allocation8 + $0x28] sm:$0xff]  }
 0x684   :  { %4337 = vmatmul.mubr.msk.bf16.vlgmr.msra.gmra.mrb[20].mxu0 %vm1000_vm6, %v1091_v14  ;;  %v612_v8 = vpop.permute.xlu0 %611  ;;  %v4618_v14 = vld [vmem:[#allocation8 + $0x30] sm:$0xff]  }
 0x685   :  { %4347 = vmatpush3.bf16.msra.mxu0 %v1286_v15  ;;  %v1240_v55 = vsel %vm1100_vm5, %v612_v8, 0  ;;  %4348 = vmatprep.mubr.msk.bf16.mxu0 %vm5023_vm0, %v5022_v1 }
 0x686   :  { %4341 = vmatpush3.bf16.msra.mxu1 %v1240_v55  ;;  %4358 = vmatprep.subr.bf16.mxu0 %v5022_v1  ;;  %v4619_v55 = vld [vmem:[#allocation8 + $0x38] sm:$0xff]  }
 0x687   :  { %4352 = vmatprep.subr.bf16.mxu1 %v5022_v1 }
 0x68b   :  { %v4767_v51 = vpop.eup %4766 }
 0x68c   :  { %v1084_v17 = vmul.f32 %v4767_v51, %v5386_v31 }
 0x68e   :  { %v1092_v19 = vpack.c.bf16 %v1084_v17, %v1084_v17 }
 0x690   :  { %4343 = vmatmul.mubr.msk.bf16.vlgmr.msra.gmra.mrb[32].mxu1 %vm1000_vm6, %v1092_v19 }
 0x691   :  { %4353 = vmatpush3.bf16.msra.mxu1 %v1332_v21  ;;  %4354 = vmatprep.mubr.msk.bf16.mxu1 %vm5023_vm0, %v5022_v1 }
 0x692   :  { %4364 = vmatprep.subr.bf16.mxu1 %v5022_v1 }
 0x6ad   :  { %v1063_v23 = vpop.xlane.xlu1 %1062 }
 0x6ae   :  { %4768 = vrcp.f32 %v1063_v23 }
 0x6b1   :  { %v1069_v22 = vpop.xlane.xlu1 %1068 }
 0x6b2   :  { %4770 = vrcp.f32 %v1069_v22 }
 0x6b5   :  { %v1066_v24 = vpop.xlane.xlu0 %1065  ;;  %v620_v35 = vpop.permute.xlu1 %619 }
 0x6b6   :  { %4772 = vrcp.f32 %v1066_v24  ;;  %v1424_v39 = vsel %vm1100_vm5, %v620_v35, 0 }
 0x6b8   :  { %v4769_v25 = vpop.eup %4768 }
 0x6b9   :  { %v1085_v26 = vmul.f32 %v4769_v25, %v4755_v49  ;;  %v1072_v27 = vpop.xlane.xlu0 %1071 }
 0x6ba   :  { %4774 = vrcp.f32 %v1072_v27 }
 0x6bb   :  { %v1093_v29 = vpack.c.bf16 %v1085_v26, %v1085_v26 }
 0x6bc   :  { %v4771_v30 = vpop.eup %4770 }
 0x6bd   :  { %4349 = vmatmul.mubr.msk.bf16.vlgmr.msra.gmra.mrb[24].mxu0 %vm1000_vm6, %v1093_v29  ;;  %v618_v31 = vpop.permute.xlu0 %617  ;;  %v1087_v28 = vmul.f32 %v4771_v30, %v5402_v53 }
 0x6be   :  { %v1378_v16 = vsel %vm1100_vm5, %v618_v31, 0  ;;  %4360 = vmatprep.mubr.msk.bf16.mxu0 %vm5023_vm0, %v5022_v1 }
 0x6bf   :  { %4359 = vmatpush3.bf16.msra.mxu0 %v1378_v16  ;;  %v1095_v37 = vpack.c.bf16 %v1087_v28, %v1087_v28 }
 0x6c0   :  { %v4773_v32 = vpop.eup %4772  ;;  %4370 = vmatprep.subr.bf16.mxu0 %v5022_v1 }
 0x6c1   :  { %v1086_v33 = vmul.f32 %v4773_v32, %v5406_v56  ;;  %v4612_v56 = vld [vmem:[#allocation8] sm:$0xff]  }
 0x6c3   :  { %v1094_v36 = vpack.c.bf16 %v1086_v33, %v1086_v33 }
 0x6c4   :  { %v4775_v38 = vpop.eup %4774 }
 0x6c5   :  { %4355 = vmatmul.mubr.msk.bf16.vlgmr.msra.gmra.mrb[36].mxu1 %vm1000_vm6, %v1094_v36  ;;  %4361 = vmatmul.mubr.msk.bf16.vlgmr.msra.gmra.mrb[28].mxu0 %vm1000_vm6, %v1095_v37  ;;  %v1088_v40 = vmul.f32 %v4775_v38, %v5410_v58  ;;  %v4614_v58 = vld [vmem:[#allocation8 + $0x10] sm:$0xff]  }
 0x6c6   :  { %4365 = vmatpush3.bf16.msra.mxu1 %v1424_v39  ;;  %4366 = vmatprep.mubr.msk.bf16.mxu1 %vm5023_vm0, %v5022_v1 }
 0x6c7   :  { %4386 = vmatprep.mubr.msk.bf16.mxu0 %vm5023_vm0, %v5022_v1  ;;  %v1096_v41 = vpack.c.bf16 %v1088_v40, %v1088_v40  ;;  %4371 = vmatpush3.bf16.msra.mxu0 %v4612_v56 }
 0x6c8   :  { %4372 = vmatprep.subr.bf16.mxu0 %v5022_v1 }
 0x6cb   :  { %4373 = vmatpush3.bf16.msra.mxu0 %v4613_v57 }
 0x6cc   :  { %4374 = vmatprep.subr.bf16.mxu0 %v5022_v1 }
 0x6cd   :  { %4367 = vmatmul.mubr.msk.bf16.vlgmr.msra.gmra.mrb[40].mxu1 %vm1000_vm6, %v1096_v41 }
 0x6ce   :  { %1793 = vmatprep.mubr.bf16.mxu1 %v5021_v0 }
 0x6cf   :  { %4375 = vmatpush3.bf16.msra.mxu0 %v4614_v58  ;;  %v4620_v58 = vld [vmem:[#allocation10] ss:$8 sps:$4 sm:$0xff]  }
 0x6d0   :  { %4376 = vmatprep.subr.bf16.mxu0 %v5022_v1 }
 0x6d3   :  { %4377 = vmatpush3.bf16.msra.mxu0 %v4615_v63 }
 0x6d4   :  { %4378 = vmatprep.subr.bf16.mxu0 %v5022_v1 }
 0x6d7   :  { %4379 = vmatpush3.bf16.msra.mxu0 %v4616_v3 }
 0x6d8   :  { %4380 = vmatprep.subr.bf16.mxu0 %v5022_v1 }
 0x6db   :  { %4381 = vmatpush3.bf16.msra.mxu0 %v4617_v4 }
 0x6dc   :  { %4382 = vmatprep.subr.bf16.mxu0 %v5022_v1 }
 0x6df   :  { %4383 = vmatpush3.bf16.msra.mxu0 %v4618_v14  ;;  %v4626_v14 = vld [vmem:[#allocation10 + $0x20] ss:$8 sps:$4 sm:$0xff]  }
 0x6e0   :  { %4384 = vmatprep.subr.bf16.mxu0 %v5022_v1 }
 0x6e3   :  { %4385 = vmatpush3.bf16.msra.mxu0 %v4619_v55  ;;  %v4634_v55 = vld [vmem:[#allocation10 + $0x44] ss:$8 sps:$4 sm:$0xff]  }
 0x6e9   :  { %v5453_v42 = vpop.f32.mrb[28].mxu1 }
 0x6ea   :  { %v4332_v44 = vpop.f32.mrb[29].mxu1 }
 0x6eb   :  { %v1187_v45 = vpop.f32.mrb[30].mxu1 }
 0x6ec   :  { %v4333_v46 = vpop.f32.mrb[31].mxu1 }
 0x706   :  { %v5455_v48 = vpop.f32.mrb[16].mxu0 }
 0x707   :  { %v4326_v34 = vpop.f32.mrb[17].mxu0 }
 0x708   :  { %v1141_v49 = vpop.f32.mrb[18].mxu0 }
 0x709   :  { %v4327_v50 = vpop.f32.mrb[19].mxu0 }
 0x70a   :  { %v3935_v50 = vld [vmem:[%s5790_s9] ss:$0 sm:$0xff] }
 0x757   :  { %v1230_v52 = vpop.f32.mrb[20].mxu0 }
 0x758   :  { %v4338_v53 = vpop.f32.mrb[21].mxu0 }
 0x759   :  { %v1233_v47 = vpop.f32.mrb[22].mxu0 }
 0x75a   :  { %v4339_v54 = vpop.f32.mrb[23].mxu0 }
 0x763   :  { %v1276_v59 = vpop.f32.mrb[32].mxu1 }
 0x764   :  { %v4546_v60 = vpack.i.bf16 %v1276_v59, %v1230_v52  ;;  %v4344_v61 = vpop.f32.mrb[33].mxu1  ;;  %v4622_v59 = vld [vmem:[#allocation10 + $0x4] ss:$8 sps:$4 sm:$0xff]  }
 0x765   :  { %v1279_v62 = vpop.f32.mrb[34].mxu1  ;;  %1761 = vmatprep.subr.bf16.mxu1 %v4622_v59  ;;  %v4623_v61 = vld [vmem:[#allocation10 + $0x10] ss:$8 sps:$4 sm:$0xff]   ;;  %v1669_v59 = vld [vmem:[%s5794_s13] sm:$0x3] }
 0x766   :  { %4547 = vrot.lane.b32.xlu0 %v4546_v60, %s5025_s24  ;;  %v4345_v2 = vpop.f32.mrb[35].mxu1  ;;  %v4625_v60 = vld [vmem:[#allocation10 + $0x14] ss:$8 sps:$4 sm:$0xff]   ;;  %1762 = vmatpush1.bf16.msra.mxu1 %v4620_v58 }
 0x767   :  { %1763 = vmatprep.subr.bf16.mxu1 %v4625_v60  ;;  %v4659_v58 = vld [vmem:[#allocation11 + $0x38] sm:$0xff]   ;;  %v1674_v60 = vrot.slane %v1669_v59, %v5259_v11 }
 0x76a   :  { %1764 = vmatpush1.bf16.msra.mxu1 %v4623_v61  ;;  %v1678_v61 = vrot.slane %v1669_v59, %v5262_v12 }
 0x790   :  { %v1322_v5 = vpop.f32.mrb[24].mxu0 }
 0x791   :  { %v4350_v9 = vpop.f32.mrb[25].mxu0 }
 0x792   :  { %v1325_v15 = vpop.f32.mrb[26].mxu0 }
 0x793   :  { %v4351_v8 = vpop.f32.mrb[27].mxu0  ;;  %v4631_v15 = vld [vmem:[#allocation10 + $0x34] ss:$8 sps:$4 sm:$0xff]  }
 0x794   :  { %v4629_v8 = vld [vmem:[#allocation10 + $0x30] ss:$8 sps:$4 sm:$0xff]  }
 0x798   :  { %v1368_v51 = vpop.f32.mrb[36].mxu1  ;;  %v1414_v17 = vpop.f32.mrb[28].mxu0 }
 0x799   :  { %v4551_v18 = vpack.i.bf16 %v1368_v51, %v1322_v5  ;;  %v4356_v19 = vpop.f32.mrb[37].mxu1  ;;  %v4362_v21 = vpop.f32.mrb[29].mxu0  ;;  %v4632_v51 = vld [vmem:[#allocation10 + $0x40] ss:$8 sps:$4 sm:$0xff]  }
 0x79a   :  { %v1371_v23 = vpop.f32.mrb[38].mxu1  ;;  %v1417_v22 = vpop.f32.mrb[30].mxu0  ;;  %v4640_v19 = vld [vmem:[#allocation10 + $0x64] ss:$8 sps:$4 sm:$0xff]   ;;  %v4638_v21 = vld [vmem:[#allocation10 + $0x60] ss:$8 sps:$4 sm:$0xff]  }
 0x79b   :  { %v4363_v24 = vpop.f32.mrb[31].mxu0  ;;  %4552 = vrot.lane.b32.xlu1 %v4551_v18, %s5012_s28  ;;  %v4357_v25 = vpop.f32.mrb[39].mxu1  ;;  %v4635_v18 = vld [vmem:[#allocation10 + $0x50] ss:$8 sps:$4 sm:$0xff]   ;;  %v4643_v23 = vld [vmem:[#allocation10 + $0x74] ss:$8 sps:$4 sm:$0xff]  }
 0x79c   :  { %v4641_v22 = vld [vmem:[#allocation10 + $0x70] ss:$8 sps:$4 sm:$0xff]  }
 0x7a0   :  { %v1460_v26 = vpop.f32.mrb[40].mxu1 }
 0x7a1   :  { %v4556_v27 = vpack.i.bf16 %v1460_v26, %v1414_v17  ;;  %v4368_v29 = vpop.f32.mrb[41].mxu1  ;;  %v4637_v17 = vld [vmem:[#allocation10 + $0x54] ss:$8 sps:$4 sm:$0xff]  }
 0x7a2   :  { %v1463_v30 = vpop.f32.mrb[42].mxu1 }
 0x7a3   :  { %4557 = vrot.lane.b32.xlu0 %v4556_v27, %s5024_s26  ;;  %v4369_v31 = vpop.f32.mrb[43].mxu1 }
 0x7d8   :  { %v4548_v16 = vpop.permute.xlu0 %4547 }
 0x7d9   :  { %v4550_v32 = vunpack.i.h.bf16 %v4548_v16  ;;  %v4549_v33 = vunpack.i.l.bf16 %v4548_v16  ;;  %v3944_v16 = vld [vmem:[%s5791_s10] ss:$0 sm:$0xff] }
 0x7db   :  { %v1491_v38 = vsel %vm631_vm4, %v5453_v42, %v4550_v32  ;;  %v1490_v39 = vsel %vm631_vm4, %v5455_v48, %v4549_v33 }
 0x80d   :  { %v4553_v28 = vpop.permute.xlu1 %4552 }
 0x80e   :  { %v4555_v35 = vunpack.i.h.bf16 %v4553_v28  ;;  %v4554_v36 = vunpack.i.l.bf16 %v4553_v28 }
 0x810   :  { %v1493_v44 = vsel %vm190_vm3, %v1491_v38, %v4555_v35  ;;  %v1492_v45 = vsel %vm190_vm3, %v1490_v39, %v4554_v36  ;;  %v3945_v36 = vld [vmem:[%s5792_s11] ss:$0 sm:$0xff] }
 0x815   :  { %v4558_v37 = vpop.permute.xlu0 %4557 }
 0x816   :  { %v4560_v40 = vunpack.i.h.bf16 %v4558_v37  ;;  %v4559_v41 = vunpack.i.l.bf16 %v4558_v37 }
 0x818   :  { %v1496_v46 = vsel %vm1494_vm7, %v1493_v44, %v4560_v40  ;;  %v1495_v34 = vsel %vm1494_vm7, %v1492_v45, %v4559_v41  ;;  %v4644_v41 = vld [vmem:[#allocation11 + $0x40] sm:$0xff]   ;;  %v4646_v45 = vld [vmem:[#allocation11 + $0x48] sm:$0xff]  }
 0x819   :  { %v1497_v49 = vpack.c.bf16 %v1496_v46, %v1495_v34  ;;  %v4645_v44 = vld [vmem:[#allocation11] sm:$0xff]   ;;  %4148 = vmatprep.subr.bf16.mxu0 %v4644_v41  ;;  %v4647_v46 = vld [vmem:[#allocation11 + $0x8] sm:$0xff]   ;;  %v4648_v34 = vld [vmem:[#allocation11 + $0x50] sm:$0xff]  }
 0x81b   :  { %4387 = vmatmul.mubr.bf16.vlgmr.msra.gmra.mrb[32].mxu0 %v1497_v49  ;;  %v4649_v49 = vld [vmem:[#allocation11 + $0x10] sm:$0xff]  }
 0x81c   :  { %4149 = vmatpush3.bf16.msra.mxu0 %v4645_v44 }
 0x81d   :  { %4150 = vmatprep.subr.bf16.mxu0 %v4646_v45 }
 0x820   :  { %4151 = vmatpush3.bf16.msra.mxu0 %v4647_v46 }
 0x821   :  { %4152 = vmatprep.subr.bf16.mxu0 %v4648_v34 }
 0x824   :  { %4153 = vmatpush3.bf16.msra.mxu0 %v4649_v49 }
 0x8ee   :  { %v1603_v42 = vpop.f32.mrb[32].mxu0 }
 0x8ef   :  { %v1604_v52 = vadd.f32 %v3935_v50, %v1603_v42  ;;  %v4388_v53 = vpop.f32.mrb[33].mxu0  ;;  %v4651_v42 = vld [vmem:[#allocation11 + $0x18] sm:$0xff]  }
 0x8f0   :  { %v1606_v48 = vpop.f32.mrb[34].mxu0  ;;  %v4653_v53 = vld [vmem:[#allocation11 + $0x20] sm:$0xff]  }
 0x8f1   :  { %v1607_v47 = vadd.f32 %v3935_v50, %v1606_v48  ;;  %v4389_v54 = vpop.f32.mrb[35].mxu0  ;;  %v1610_v56 = vadd.f32 %v1604_v52, %v5245_v6  ;;  %v4650_v50 = vld [vmem:[#allocation11 + $0x58] sm:$0xff]   ;;  %v4652_v52 = vld [vmem:[#allocation11 + $0x60] sm:$0xff]   ;;  %v4654_v48 = vld [vmem:[#allocation11 + $0x68] sm:$0xff]  }
 0x8f2   :  { %4154 = vmatprep.subr.bf16.mxu0 %v4650_v50  ;;  %v4656_v54 = vld [vmem:[#allocation11 + $0x70] sm:$0xff]  }
 0x8f3   :  { %1614 = vadd.xlane.f32.xlu1 %v1610_v56  ;;  %v1611_v57 = vadd.f32 %v1607_v47, %v5247_v7  ;;  %v4628_v7 = vld [vmem:[#allocation10 + $0x24] ss:$8 sps:$4 sm:$0xff]   ;;  %4155 = vmatpush3.bf16.msra.mxu0 %v4651_v42 }
 0x8f4   :  { %1765 = vmatprep.subr.bf16.mxu1 %v4628_v7  ;;  %4156 = vmatprep.subr.bf16.mxu0 %v4652_v52  ;;  %v4655_v47 = vld [vmem:[#allocation11 + $0x28] sm:$0xff]  }
 0x8f5   :  { %1616 = vadd.xlane.f32.xlu0 %v1611_v57  ;;  %1766 = vmatpush1.bf16.msra.mxu1 %v4626_v14 }
 0x8f6   :  { %1767 = vmatprep.subr.bf16.mxu1 %v4631_v15 }
 0x8f7   :  { %4157 = vmatpush3.bf16.msra.mxu0 %v4653_v53 }
 0x8f8   :  { %4158 = vmatprep.subr.bf16.mxu0 %v4654_v48 }
 0x8f9   :  { %1768 = vmatpush1.bf16.msra.mxu1 %v4629_v8 }
 0x8fa   :  { %1769 = vmatprep.subr.bf16.mxu1 %v4634_v55 }
 0x8fb   :  { %4159 = vmatpush3.bf16.msra.mxu0 %v4655_v47 }
 0x8fc   :  { %4160 = vmatprep.subr.bf16.mxu0 %v4656_v54  ;;  %v3962_v54 = vld [vmem:[%s5796_s15] ss:$0 sm:$0xff] }
 0x8fd   :  { %1770 = vmatpush1.bf16.msra.mxu1 %v4632_v51 }
 0x8fe   :  { %1771 = vmatprep.subr.bf16.mxu1 %v4637_v17 }
 0x901   :  { %1772 = vmatpush1.bf16.msra.mxu1 %v4635_v18 }
 0x902   :  { %1773 = vmatprep.subr.bf16.mxu1 %v4640_v19 }
 0x905   :  { %1774 = vmatpush1.bf16.msra.mxu1 %v4638_v21 }
 0x906   :  { %1775 = vmatprep.subr.bf16.mxu1 %v4643_v23 }
 0x909   :  { %1776 = vmatpush1.bf16.msra.mxu1 %v4641_v22 }
 0x980   :  { %v1615_v62 = vpop.xlane.xlu1 %1614 }
 0x981   :  { %v1618_v63 = vmul.f32 0.0078125, %v1615_v62 }
 0x982   :  { %v1617_v2 = vpop.xlane.xlu0 %1616 }
 0x983   :  { %v1620_v3 = vsub.f32 %v1610_v56, %v1618_v63  ;;  %v1619_v4 = vmul.f32 0.0078125, %v1617_v2  ;;  %v4657_v56 = vld [vmem:[#allocation11 + $0x30] sm:$0xff]  }
 0x984   :  { %4161 = vmatpush3.bf16.msra.mxu0 %v4657_v56 }
 0x985   :  { %v1621_v5 = vsub.f32 %v1611_v57, %v1619_v4  ;;  %v1622_v9 = vmul.f32 %v1620_v3, %v1620_v3  ;;  %v4658_v57 = vld [vmem:[#allocation11 + $0x78] sm:$0xff]  }
 0x986   :  { %4162 = vmatprep.subr.bf16.mxu0 %v4658_v57 }
 0x987   :  { %1624 = vadd.xlane.f32.xlu0 %v1622_v9  ;;  %v1623_v6 = vmul.f32 %v1621_v5, %v1621_v5 }
 0x988   :  { %4163 = vmatpush3.bf16.msra.mxu0 %v4659_v58 }
 0x989   :  { %1626 = vadd.xlane.f32.xlu1 %v1623_v6  ;;  %4390 = vmatprep.subr.bf16.mxu0 %v5022_v1 }
 0xa14   :  { %v1625_v24 = vpop.xlane.xlu0 %1624 }
 0xa15   :  { %v1628_v25 = vmul.f32 0.0078125, %v1625_v24 }
 0xa16   :  { %v1627_v26 = vpop.xlane.xlu1 %1626 }
 0xa17   :  { %v1630_v27 = vadd.f32 1e-12, %v1628_v25  ;;  %v1629_v29 = vmul.f32 0.0078125, %v1627_v26 }
 0xa19   :  { %4776 = vrsqrt.f32 %v1630_v27  ;;  %v1631_v30 = vadd.f32 1e-12, %v1629_v29 }
 0xa1b   :  { %4778 = vrsqrt.f32 %v1631_v30 }
 0xa23   :  { %v4777_v31 = vpop.eup %4776 }
 0xa24   :  { %v1634_v28 = vmul.f32 %v4777_v31, %v1620_v3 }
 0xa25   :  { %v4779_v32 = vpop.eup %4778 }
 0xa26   :  { %v1635_v33 = vmul.f32 %v4779_v32, %v1621_v5  ;;  %v1642_v35 = vmul.f32 %v3944_v16, %v1634_v28 }
 0xa28   :  { %v1643_v37 = vmul.f32 %v3944_v16, %v1635_v33  ;;  %v5486_v38 = vadd.f32 %v3945_v36, %v1642_v35 }
 0xa2a   :  { %v5488_v39 = vadd.f32 %v3945_v36, %v1643_v37 }
 0xa2c   :  { %v1652_v40 = vpack.c.bf16 %v5488_v39, %v5486_v38 }
 0xa2e   :  { %1794 = vmatmul.mubr.bf16.vlgmr.msra.gmra.mrb[44].mxu1 %v1652_v40 }
 0xa2f   :  { %2272 = vmatprep.mubr.bf16.mxu1 %v5021_v0 }
 0xb01   :  { %v1795_v62 = vpop.f32.mrb[44].mxu1 }
 0xb02   :  { %v1796_v63 = vadd.f32 %v1795_v62, %v1674_v60  ;;  %v1797_v2 = vpop.f32.mrb[45].mxu1 }
 0xb03   :  { %v1798_v3 = vadd.f32 %v1797_v2, %v1678_v61  ;;  %v1799_v4 = vpop.f32.mrb[46].mxu1 }
 0xb04   :  { %v1804_v5 = vmul.f32 %v1796_v63, %v1796_v63  ;;  %v1800_v9 = vadd.f32 %v1799_v4, %v1674_v60  ;;  %v1801_v6 = vpop.f32.mrb[47].mxu1  ;;  %v4662_v4 = vld [vmem:[#allocation7 + $0xc4] ss:$12 sps:$4 sm:$0xff]  }
 0xb05   :  { %v1805_v7 = vmul.f32 %v1798_v3, %v1798_v3  ;;  %v1802_v14 = vadd.f32 %v1801_v6, %v1678_v61  ;;  %2240 = vmatprep.subr.bf16.mxu1 %v4662_v4  ;;  %v4667_v6 = vld [vmem:[#allocation7 + $0xe0] ss:$12 sps:$4 sm:$0xff]  }
 0xb06   :  { %v1808_v15 = vmul.f32 %v1804_v5, %v1796_v63  ;;  %v1806_v8 = vmul.f32 %v1800_v9, %v1800_v9  ;;  %v4663_v5 = vld [vmem:[#allocation7 + $0xc8] ss:$12 sps:$4 sm:$0xff]  }
 0xb07   :  { %v1809_v55 = vmul.f32 %v1805_v7, %v1798_v3  ;;  %v1807_v51 = vmul.f32 %v1802_v14, %v1802_v14  ;;  %v4664_v7 = vld [vmem:[#allocation7 + $0xd8] ss:$12 sps:$4 sm:$0xff]  }
 0xb08   :  { %v1812_v17 = vmul.f32 0.044715, %v1808_v15  ;;  %v1810_v18 = vmul.f32 %v1806_v8, %v1800_v9 }
 0xb09   :  { %v1813_v19 = vmul.f32 0.044715, %v1809_v55  ;;  %v1811_v21 = vmul.f32 %v1807_v51, %v1802_v14 }
 0xb0a   :  { %v1816_v23 = vadd.f32 %v1812_v17, %v1796_v63  ;;  %v1814_v22 = vmul.f32 0.044715, %v1810_v18  ;;  %v4670_v18 = vld [vmem:[#allocation7 + $0xf4] ss:$12 sps:$4 sm:$0xff]  }
 0xb0b   :  { %v1817_v24 = vadd.f32 %v1813_v19, %v1798_v3  ;;  %v1815_v25 = vmul.f32 0.044715, %v1811_v21  ;;  %v4668_v19 = vld [vmem:[#allocation7 + $0xf0] ss:$12 sps:$4 sm:$0xff]   ;;  %v4671_v21 = vld [vmem:[#allocation7 + $0xf8] ss:$12 sps:$4 sm:$0xff]  }
 0xb0c   :  { %v1820_v26 = vmul.f32 0.7978846, %v1816_v23  ;;  %v1818_v27 = vadd.f32 %v1814_v22, %v1800_v9  ;;  %v4674_v23 = vld [vmem:[#allocation7 + $0x10c] ss:$12 sps:$4 sm:$0xff]   ;;  %v4672_v22 = vld [vmem:[#allocation7 + $0x108] ss:$12 sps:$4 sm:$0xff]  }
 0xb0d   :  { %v1821_v29 = vmul.f32 0.7978846, %v1817_v24  ;;  %v1819_v30 = vadd.f32 %v1815_v25, %v1802_v14  ;;  %v4675_v24 = vld [vmem:[#allocation7 + $0x110] ss:$12 sps:$4 sm:$0xff]  }
 0xb0e   :  { %4780 = vtanh.f32 %v1820_v26  ;;  %v1822_v31 = vmul.f32 0.7978846, %v1818_v27  ;;  %v4678_v25 = vld [vmem:[#allocation7 + $0x124] ss:$12 sps:$4 sm:$0xff]   ;;  %v4676_v26 = vld [vmem:[#allocation7 + $0x120] ss:$12 sps:$4 sm:$0xff]  }
 0xb0f   :  { %4782 = vtanh.f32 %v1821_v29  ;;  %v1823_v16 = vmul.f32 0.7978846, %v1819_v30  ;;  %v4679_v27 = vld [vmem:[#allocation7 + $0x128] ss:$12 sps:$4 sm:$0xff]   ;;  %v4680_v30 = vld [vmem:[#allocation7 + $0x138] ss:$12 sps:$4 sm:$0xff]  }
 0xb10   :  { %4784 = vtanh.f32 %v1822_v31  ;;  %v4682_v29 = vld [vmem:[#allocation7 + $0x13c] ss:$12 sps:$4 sm:$0xff]   ;;  %v4683_v31 = vld [vmem:[#allocation7 + $0x140] ss:$12 sps:$4 sm:$0xff]  }
 0xb11   :  { %4786 = vtanh.f32 %v1823_v16  ;;  %v4686_v16 = vld [vmem:[#allocation7 + $0x154] ss:$12 sps:$4 sm:$0xff]  }
 0xb18   :  { %v4781_v28 = vpop.eup %4780 }
 0xb19   :  { %v4783_v32 = vpop.eup %4782  ;;  %v1828_v33 = vadd.f32 1.0, %v4781_v28  ;;  %v4684_v28 = vld [vmem:[#allocation7 + $0x150] ss:$12 sps:$4 sm:$0xff]  }
 0xb1a   :  { %v4785_v35 = vpop.eup %4784  ;;  %v1829_v36 = vadd.f32 1.0, %v4783_v32  ;;  %v4687_v32 = vld [vmem:[#allocation7 + $0x158] ss:$12 sps:$4 sm:$0xff]  }
 0xb1b   :  { %v4787_v37 = vpop.eup %4786  ;;  %v1832_v40 = vmul.f32 0.5, %v1828_v33  ;;  %v1830_v41 = vadd.f32 1.0, %v4785_v35  ;;  %v4690_v33 = vld [vmem:[#allocation7 + $0x16c] ss:$12 sps:$4 sm:$0xff]   ;;  %v4688_v35 = vld [vmem:[#allocation7 + $0x168] ss:$12 sps:$4 sm:$0xff]  }
 0xb1c   :  { %v1831_v44 = vadd.f32 1.0, %v4787_v37  ;;  %v1833_v45 = vmul.f32 0.5, %v1829_v36  ;;  %v4691_v36 = vld [vmem:[#allocation7 + $0x170] ss:$12 sps:$4 sm:$0xff]  }
 0xb1d   :  { %v1834_v46 = vmul.f32 0.5, %v1830_v41  ;;  %v1836_v49 = vmul.f32 %v1832_v40, %v1796_v63 }
 0xb1e   :  { %v1835_v34 = vmul.f32 0.5, %v1831_v44  ;;  %v1837_v42 = vmul.f32 %v1833_v45, %v1798_v3  ;;  %v4660_v3 = vld [vmem:[#allocation7 + $0xc0] ss:$12 sps:$4 sm:$0xff]  }
 0xb1f   :  { %v1838_v50 = vmul.f32 %v1834_v46, %v1800_v9  ;;  %v4666_v9 = vld [vmem:[#allocation7 + $0xdc] ss:$12 sps:$4 sm:$0xff]   ;;  %2241 = vmatpush1.bf16.msra.mxu1 %v4660_v3 }
 0xb20   :  { %v1839_v52 = vmul.f32 %v1835_v34, %v1802_v14  ;;  %2242 = vmatprep.subr.bf16.mxu1 %v4666_v9 }
 0xb21   :  { %v1840_v53 = vpack.c.bf16 %v1838_v50, %v1836_v49  ;;  %v3979_v49 = vld [vmem:[%s5797_s16] ss:$0 sm:$0xff] }
 0xb22   :  { %v1841_v48 = vpack.c.bf16 %v1839_v52, %v1837_v42 }
 0xb23   :  { %2243 = vmatpush1.bf16.msra.mxu1 %v4664_v7 }
 0xb24   :  { %2009 = vmatprep.mubr.bf16.mxu0 %v1841_v48  ;;  %2244 = vmatprep.subr.bf16.mxu1 %v4670_v18  ;;  %v3980_v48 = vld [vmem:[%s5798_s17] ss:$0 sm:$0xff] }
 0xb25   :  { %2010 = vmatmul.mubr.bf16.vlgmr.msra.gmra.mrb[36].mxu0 %v1840_v53 }
 0xb26   :  { %4406 = vmatprep.mubr.msk.bf16.mxu0 %vm5023_vm0, %v5022_v1  ;;  %4391 = vmatpush3.bf16.msra.mxu0 %v4663_v5 }
 0xb27   :  { %4392 = vmatprep.subr.bf16.mxu0 %v5022_v1  ;;  %2245 = vmatpush1.bf16.msra.mxu1 %v4668_v19 }
 0xb28   :  { %2246 = vmatprep.subr.bf16.mxu1 %v4674_v23 }
 0xb2a   :  { %4393 = vmatpush3.bf16.msra.mxu0 %v4667_v6 }
 0xb2b   :  { %4394 = vmatprep.subr.bf16.mxu0 %v5022_v1  ;;  %2247 = vmatpush1.bf16.msra.mxu1 %v4672_v22 }
 0xb2c   :  { %2248 = vmatprep.subr.bf16.mxu1 %v4678_v25 }
 0xb2e   :  { %4395 = vmatpush3.bf16.msra.mxu0 %v4671_v21 }
 0xb2f   :  { %4396 = vmatprep.subr.bf16.mxu0 %v5022_v1  ;;  %2249 = vmatpush1.bf16.msra.mxu1 %v4676_v26 }
 0xb30   :  { %2250 = vmatprep.subr.bf16.mxu1 %v4682_v29 }
 0xb32   :  { %4397 = vmatpush3.bf16.msra.mxu0 %v4675_v24 }
 0xb33   :  { %4398 = vmatprep.subr.bf16.mxu0 %v5022_v1  ;;  %2251 = vmatpush1.bf16.msra.mxu1 %v4680_v30 }
 0xb34   :  { %2252 = vmatprep.subr.bf16.mxu1 %v4686_v16 }
 0xb36   :  { %4399 = vmatpush3.bf16.msra.mxu0 %v4679_v27 }
 0xb37   :  { %4400 = vmatprep.subr.bf16.mxu0 %v5022_v1  ;;  %2253 = vmatpush1.bf16.msra.mxu1 %v4684_v28 }
 0xb38   :  { %2254 = vmatprep.subr.bf16.mxu1 %v4690_v33 }
 0xb3a   :  { %4401 = vmatpush3.bf16.msra.mxu0 %v4683_v31 }
 0xb3b   :  { %4402 = vmatprep.subr.bf16.mxu0 %v5022_v1  ;;  %2255 = vmatpush1.bf16.msra.mxu1 %v4688_v35 }
 0xb3c   :  { %4410 = vmatprep.subr.bf16.mxu1 %v5022_v1 }
 0xb3e   :  { %4403 = vmatpush3.bf16.msra.mxu0 %v4687_v32 }
 0xb3f   :  { %4404 = vmatprep.subr.bf16.mxu0 %v5022_v1 }
 0xb42   :  { %4405 = vmatpush3.bf16.msra.mxu0 %v4691_v36 }
 0xb43   :  { %4434 = vmatprep.subr.bf16.mxu0 %v5022_v1 }
 0xbf8   :  { %v4164_v47 = vpop.f32.mrb[36].mxu0 }
 0xbf9   :  { %v4165_v56 = vpop.f32.mrb[37].mxu0 }
 0xbfa   :  { %v4166_v57 = vadd.f32 %v4165_v56, %v4164_v47  ;;  %v4167_v58 = vpop.f32.mrb[38].mxu0 }
 0xbfb   :  { %v4168_v59 = vpop.f32.mrb[39].mxu0 }
 0xbfc   :  { %v2012_v60 = vadd.f32 %v4166_v57, %v3962_v54  ;;  %v4169_v61 = vadd.f32 %v4168_v59, %v4167_v58  ;;  %v3981_v58 = vld [vmem:[%s5788_s7 + $0x3] sm:$0x7] }
 0xbfd   :  { %v2100_v59 = vrot.slane %v3981_v58, %v5259_v11  ;;  %v2108_v30 = vrot.slane %v3981_v58, %v350_v43 }
 0xbfe   :  { %v2015_v62 = vadd.f32 %v4169_v61, %v3962_v54  ;;  %v2018_v63 = vadd.f32 %v2012_v60, %v5486_v38  ;;  %v2104_v60 = vrot.slane %v3981_v58, %v5262_v12 }
 0xc00   :  { %2022 = vadd.xlane.f32.xlu0 %v2018_v63  ;;  %v2019_v2 = vadd.f32 %v2015_v62, %v5488_v39 }
 0xc02   :  { %2024 = vadd.xlane.f32.xlu1 %v2019_v2 }
 0xc8d   :  { %v2023_v38 = vpop.xlane.xlu0 %2022 }
 0xc8e   :  { %v2026_v14 = vmul.f32 0.0078125, %v2023_v38 }
 0xc8f   :  { %v2025_v39 = vpop.xlane.xlu1 %2024 }
 0xc90   :  { %v2028_v15 = vsub.f32 %v2018_v63, %v2026_v14  ;;  %v2027_v8 = vmul.f32 0.0078125, %v2025_v39 }
 0xc92   :  { %v2029_v55 = vsub.f32 %v2019_v2, %v2027_v8  ;;  %v2030_v51 = vmul.f32 %v2028_v15, %v2028_v15 }
 0xc94   :  { %2032 = vadd.xlane.f32.xlu0 %v2030_v51  ;;  %v2031_v17 = vmul.f32 %v2029_v55, %v2029_v55 }
 0xc96   :  { %2034 = vadd.xlane.f32.xlu1 %v2031_v17 }
 0xd21   :  { %v2033_v37 = vpop.xlane.xlu0 %2032 }
 0xd22   :  { %v2036_v40 = vmul.f32 0.0078125, %v2033_v37 }
 0xd23   :  { %v2035_v41 = vpop.xlane.xlu1 %2034 }
 0xd24   :  { %v2038_v44 = vadd.f32 1e-12, %v2036_v40  ;;  %v2037_v45 = vmul.f32 0.0078125, %v2035_v41 }
 0xd26   :  { %4788 = vrsqrt.f32 %v2038_v44  ;;  %v2039_v46 = vadd.f32 1e-12, %v2037_v45 }
 0xd28   :  { %4790 = vrsqrt.f32 %v2039_v46 }
 0xd30   :  { %v4789_v34 = vpop.eup %4788 }
 0xd31   :  { %v2042_v50 = vmul.f32 %v4789_v34, %v2028_v15 }
 0xd32   :  { %v4791_v42 = vpop.eup %4790 }
 0xd33   :  { %v2043_v52 = vmul.f32 %v4791_v42, %v2029_v55  ;;  %v2050_v53 = vmul.f32 %v3979_v49, %v2042_v50 }
 0xd35   :  { %v2051_v47 = vmul.f32 %v3979_v49, %v2043_v52  ;;  %v5521_v54 = vadd.f32 %v3980_v48, %v2050_v53 }
 0xd37   :  { %v5523_v56 = vadd.f32 %v3980_v48, %v2051_v47 }
 0xd39   :  { %v2060_v57 = vpack.c.bf16 %v5523_v56, %v5521_v54 }
 0xd3b   :  { %2273 = vmatmul.mubr.bf16.vlgmr.msra.gmra.mrb[48].mxu1 %v2060_v57  ;;  %4407 = vmatmul.mubr.bf16.vlgmr.msra.gmra.mrb[40].mxu0 %v2060_v57 }
 0xd3c   :  { %4412 = vmatprep.mubr.msk.bf16.mxu1 %vm5023_vm0, %v5022_v1  ;;  %4436 = vmatprep.mubr.msk.bf16.mxu0 %vm5023_vm0, %v5022_v1 }
 0xe0e   :  { %v2274_v61 = vpop.f32.mrb[48].mxu1  ;;  %v2317_v62 = vpop.f32.mrb[40].mxu0 }
 0xe0f   :  { %v2275_v63 = vadd.f32 %v2274_v61, %v2100_v59  ;;  %v2276_v2 = vpop.f32.mrb[49].mxu1  ;;  %v4408_v3 = vpop.f32.mrb[41].mxu0  ;;  %v2318_v16 = vadd.f32 %v2317_v62, %v2108_v30 }
 0xe10   :  { %v2277_v4 = vadd.f32 %v2276_v2, %v2104_v60  ;;  %v2278_v5 = vpop.f32.mrb[50].mxu1  ;;  %v5536_v9 = vpop.f32.mrb[42].mxu0 }
 0xe11   :  { %v4087_v6 = vpack.c.bf16 %v2275_v63, %v2275_v63  ;;  %v2280_v7 = vpop.f32.mrb[51].mxu1  ;;  %v4409_v38 = vpop.f32.mrb[43].mxu0  ;;  %v2279_v39 = vadd.f32 %v2278_v5, %v2100_v59  ;;  %v5580_v10 = vpack.c.bf16 %v2318_v16, %v2318_v16  ;;  %v2321_v37 = vadd.f32 %v5536_v9, %v2108_v30 }
 0xe12   :  { %v4089_v14 = vpack.c.bf16 %v2277_v4, %v2277_v4  ;;  %v2281_v15 = vadd.f32 %v2280_v7, %v2104_v60 }
 0xe13   :  { %2330 = vrot.lane.b32.xlu1 %v4087_v6, %s5024_s26  ;;  %v4088_v51 = vpack.c.bf16 %v2279_v39, %v2279_v39  ;;  %v2846_v36 = vsel %vm1100_vm5, %v5580_v10, 0  ;;  %v5595_v41 = vpack.c.bf16 %v2321_v37, %v2321_v37 }
 0xe14   :  { %v4090_v8 = vpack.c.bf16 %v2281_v15, %v2281_v15  ;;  %2348 = vrot.lane.b32.xlu0 %v4089_v14, %s5024_s26  ;;  %v2382_v55 = vsel %vm631_vm4, %v4089_v14, 0 }
 0xe15   :  { %4411 = vmatpush3.bf16.xpose.msra.mxu1 %v2382_v55  ;;  %v2892_v45 = vsel %vm1100_vm5, %v5595_v41, 0 }
 0xe16   :  { %4416 = vmatprep.subr.bf16.mxu1 %v5022_v1  ;;  %v2428_v17 = vsel %vm631_vm4, %v4090_v8, 0 }
 0xe17   :  { %2350 = vrot.lane.b32.xlu1 %v4090_v8, %s5024_s26 }
 0xe18   :  { %2332 = vrot.lane.b32.xlu0 %v4088_v51, %s5024_s26 }
 0xe1b   :  { %2352 = vrot.lane.b32.xlu1 %v4089_v14, %s5012_s28 }
 0xe1c   :  { %2354 = vrot.lane.b32.xlu0 %v4090_v8, %s5012_s28  ;;  %4413 = vmatmul.mubr.msk.bf16.vlgmr.msra.gmra.mrb[52].mxu1 %vm631_vm4, %v4087_v6 }
 0xe1d   :  { %4417 = vmatpush3.bf16.xpose.msra.mxu1 %v2428_v17  ;;  %4418 = vmatprep.mubr.msk.bf16.mxu1 %vm5023_vm0, %v5022_v1 }
 0xe1e   :  { %4422 = vmatprep.subr.bf16.mxu1 %v5022_v1 }
 0xe1f   :  { %2334 = vrot.lane.b32.xlu1 %v4087_v6, %s5012_s28 }
 0xe20   :  { %2336 = vrot.lane.b32.xlu0 %v4088_v51, %s5012_s28 }
 0xe23   :  { %2356 = vrot.lane.b32.xlu1 %v4089_v14, %s5025_s24 }
 0xe24   :  { %2358 = vrot.lane.b32.xlu0 %v4090_v8, %s5025_s24  ;;  %4419 = vmatmul.mubr.msk.bf16.vlgmr.msra.gmra.mrb[56].mxu1 %vm631_vm4, %v4088_v51 }
 0xe25   :  { %4424 = vmatprep.mubr.msk.bf16.mxu1 %vm5023_vm0, %v5022_v1 }
 0xe27   :  { %2338 = vrot.lane.b32.xlu1 %v4087_v6, %s5025_s24 }
 0xe28   :  { %2340 = vrot.lane.b32.xlu0 %v4088_v51, %s5025_s24 }
 0xe85   :  { %v2331_v18 = vpop.permute.xlu1 %2330 }
 0xe86   :  { %v2349_v19 = vpop.permute.xlu0 %2348 }
 0xe87   :  { %v2474_v21 = vsel %vm631_vm4, %v2349_v19, 0 }
 0xe88   :  { %4423 = vmatpush3.bf16.xpose.msra.mxu1 %v2474_v21 }
 0xe89   :  { %v2351_v23 = vpop.permute.xlu1 %2350  ;;  %4428 = vmatprep.subr.bf16.mxu1 %v5022_v1 }
 0xe8a   :  { %v2333_v22 = vpop.permute.xlu0 %2332  ;;  %v2520_v26 = vsel %vm631_vm4, %v2351_v23, 0 }
 0xe8d   :  { %v2353_v24 = vpop.permute.xlu1 %2352 }
 0xe8e   :  { %v2566_v25 = vsel %vm631_vm4, %v2353_v24, 0  ;;  %v2355_v27 = vpop.permute.xlu0 %2354 }
 0xe8f   :  { %4425 = vmatmul.mubr.msk.bf16.vlgmr.msra.gmra.mrb[60].mxu1 %vm631_vm4, %v2331_v18  ;;  %4435 = vmatpush3.bf16.xpose.msra.mxu0 %v2566_v25  ;;  %v2612_v33 = vsel %vm631_vm4, %v2355_v27, 0 }
 0xe90   :  { %4429 = vmatpush3.bf16.xpose.msra.mxu1 %v2520_v26  ;;  %4430 = vmatprep.mubr.msk.bf16.mxu1 %vm5023_vm0, %v5022_v1 }
 0xe91   :  { %v2335_v29 = vpop.permute.xlu1 %2334  ;;  %4446 = vmatprep.subr.bf16.mxu0 %v5022_v1  ;;  %4440 = vmatprep.subr.bf16.mxu1 %v5022_v1 }
 0xe92   :  { %v2337_v28 = vpop.permute.xlu0 %2336 }
 0xe95   :  { %v2357_v31 = vpop.permute.xlu1 %2356 }
 0xe96   :  { %v2658_v32 = vsel %vm631_vm4, %v2357_v31, 0  ;;  %4437 = vmatmul.mubr.msk.bf16.vlgmr.msra.gmra.mrb[44].mxu0 %vm631_vm4, %v2335_v29  ;;  %v2359_v43 = vpop.permute.xlu0 %2358 }
 0xe97   :  { %4431 = vmatmul.mubr.msk.bf16.vlgmr.msra.gmra.mrb[64].mxu1 %vm631_vm4, %v2333_v22  ;;  %4447 = vmatpush3.bf16.xpose.msra.mxu0 %v2658_v32  ;;  %v2704_v40 = vsel %vm631_vm4, %v2359_v43, 0 }
 0xe98   :  { %4441 = vmatpush3.bf16.xpose.msra.mxu1 %v2612_v33  ;;  %4448 = vmatprep.mubr.msk.bf16.mxu0 %vm5023_vm0, %v5022_v1 }
 0xe99   :  { %4442 = vmatprep.mubr.msk.bf16.mxu1 %vm5023_vm0, %v5022_v1  ;;  %4458 = vmatprep.subr.bf16.mxu0 %v5022_v1  ;;  %v2339_v35 = vpop.permute.xlu1 %2338 }
 0xe9a   :  { %4452 = vmatprep.subr.bf16.mxu1 %v5022_v1  ;;  %v2341_v44 = vpop.permute.xlu0 %2340 }
 0xe9e   :  { %4449 = vmatmul.mubr.msk.bf16.vlgmr.msra.gmra.mrb[48].mxu0 %vm631_vm4, %v2339_v35 }
 0xe9f   :  { %4443 = vmatmul.mubr.msk.bf16.vlgmr.msra.gmra.mrb[68].mxu1 %vm631_vm4, %v2337_v28  ;;  %4459 = vmatpush3.bf16.msra.mxu0 %v2846_v36 }
 0xea0   :  { %4453 = vmatpush3.bf16.xpose.msra.mxu1 %v2704_v40  ;;  %4454 = vmatprep.mubr.msk.bf16.mxu1 %vm5023_vm0, %v5022_v1 }
 0xea1   :  { %4464 = vmatprep.subr.bf16.mxu1 %v5022_v1  ;;  %4460 = vmatprep.mubr.msk.bf16.mxu0 %vm5023_vm0, %v5022_v1 }
 0xea2   :  { %4470 = vmatprep.subr.bf16.mxu0 %v5022_v1 }
 0xea7   :  { %4455 = vmatmul.mubr.msk.bf16.vlgmr.msra.gmra.mrb[72].mxu1 %vm631_vm4, %v2341_v44 }
 0xea8   :  { %4465 = vmatpush3.bf16.msra.mxu1 %v2892_v45  ;;  %4466 = vmatprep.mubr.msk.bf16.mxu1 %vm5023_vm0, %v5022_v1 }
 0xea9   :  { %4476 = vmatprep.subr.bf16.mxu1 %v5022_v1 }
 0xeef   :  { %v2418_v46 = vpop.f32.mrb[52].mxu1 }
 0xef0   :  { %v2419_v34 = vadd.f32 %v2418_v46, %v5350_v13  ;;  %v4414_v49 = vpop.f32.mrb[53].mxu1 }
 0xef1   :  { %v2421_v50 = vpop.f32.mrb[54].mxu1 }
 0xef2   :  { %v4415_v42 = vpop.f32.mrb[55].mxu1  ;;  %v2746_v52 = vsel %vm1000_vm6, %v2419_v34, -inf }
 0xef3   :  { %2747 = vmax.xlane.f32.xlu1 %v2746_v52 }
 0xef7   :  { %v2464_v53 = vpop.f32.mrb[56].mxu1 }
 0xef8   :  { %v2465_v48 = vadd.f32 %v2464_v53, %v5358_v20  ;;  %v4420_v47 = vpop.f32.mrb[57].mxu1 }
 0xef9   :  { %v2467_v57 = vpop.f32.mrb[58].mxu1 }
 0xefa   :  { %v4421_v58 = vpop.f32.mrb[59].mxu1  ;;  %v2749_v59 = vsel %vm1000_vm6, %v2465_v48, -inf }
 0xefb   :  { %2750 = vmax.xlane.f32.xlu0 %v2749_v59 }
 0xf62   :  { %v2510_v60 = vpop.f32.mrb[60].mxu1 }
 0xf63   :  { %v2511_v61 = vadd.f32 %v2510_v60, %v5350_v13  ;;  %v4426_v62 = vpop.f32.mrb[61].mxu1 }
 0xf64   :  { %v2513_v63 = vpop.f32.mrb[62].mxu1 }
 0xf65   :  { %v4427_v2 = vpop.f32.mrb[63].mxu1  ;;  %v2752_v3 = vsel %vm1000_vm6, %v2511_v61, -inf }
 0xf66   :  { %2753 = vmax.xlane.f32.xlu0 %v2752_v3 }
 0xf69   :  { %v2602_v4 = vpop.f32.mrb[44].mxu0 }
 0xf6a   :  { %v5610_v5 = vadd.f32 %v2602_v4, %v5350_v13  ;;  %v2556_v9 = vpop.f32.mrb[64].mxu1  ;;  %v4438_v6 = vpop.f32.mrb[45].mxu0 }
 0xf6b   :  { %v2557_v7 = vadd.f32 %v2556_v9, %v5358_v20  ;;  %v4432_v38 = vpop.f32.mrb[65].mxu1  ;;  %v2605_v14 = vpop.f32.mrb[46].mxu0 }
 0xf6c   :  { %v2559_v39 = vpop.f32.mrb[66].mxu1  ;;  %v4439_v15 = vpop.f32.mrb[47].mxu0  ;;  %v2758_v8 = vsel %vm1000_vm6, %v5610_v5, -inf }
 0xf6d   :  { %2759 = vmax.xlane.f32.xlu0 %v2758_v8  ;;  %v4433_v55 = vpop.f32.mrb[67].mxu1  ;;  %v2755_v51 = vsel %vm1000_vm6, %v2557_v7, -inf }
 0xf6e   :  { %2756 = vmax.xlane.f32.xlu1 %v2755_v51 }
 0xf71   :  { %v2694_v17 = vpop.f32.mrb[48].mxu0 }
 0xf72   :  { %v5617_v18 = vadd.f32 %v2694_v17, %v5350_v13  ;;  %v2648_v19 = vpop.f32.mrb[68].mxu1  ;;  %v4450_v21 = vpop.f32.mrb[49].mxu0 }
 0xf73   :  { %v2649_v23 = vadd.f32 %v2648_v19, %v5358_v20  ;;  %v4444_v22 = vpop.f32.mrb[69].mxu1  ;;  %v2697_v24 = vpop.f32.mrb[50].mxu0 }
 0xf74   :  { %v2651_v25 = vpop.f32.mrb[70].mxu1  ;;  %v4451_v26 = vpop.f32.mrb[51].mxu0  ;;  %v2764_v27 = vsel %vm1000_vm6, %v5617_v18, -inf }
 0xf75   :  { %2765 = vmax.xlane.f32.xlu0 %v2764_v27  ;;  %v4445_v29 = vpop.f32.mrb[71].mxu1  ;;  %v2761_v30 = vsel %vm1000_vm6, %v2649_v23, -inf }
 0xf76   :  { %2762 = vmax.xlane.f32.xlu1 %v2761_v30 }
 0xf7a   :  { %v2740_v31 = vpop.f32.mrb[72].mxu1 }
 0xf7b   :  { %v2741_v13 = vadd.f32 %v2740_v31, %v5358_v20  ;;  %v4456_v16 = vpop.f32.mrb[73].mxu1 }
 0xf7c   :  { %v2743_v28 = vpop.f32.mrb[74].mxu1 }
 0xf7d   :  { %v4457_v32 = vpop.f32.mrb[75].mxu1  ;;  %v2767_v33 = vsel %vm1000_vm6, %v2741_v13, -inf }
 0xf7e   :  { %2768 = vmax.xlane.f32.xlu1 %v2767_v33 }
 0xf80   :  { %v2748_v43 = vpop.xlane.xlu1 %2747 }
 0xf81   :  { %v2770_v35 = vsub.f32 %v2419_v34, %v2748_v43 }
 0xf83   :  { %v2778_v36 = vmul.f32 1.442695, %v2770_v35 }
 0xf85   :  { %4792 = vpow2.f32 %v2778_v36 }
 0xf88   :  { %v2751_v37 = vpop.xlane.xlu0 %2750 }
 0xf89   :  { %v2771_v40 = vsub.f32 %v2465_v48, %v2751_v37 }
 0xf8b   :  { %2366 = vrot.lane.b32.xlu0 %v5580_v10, %s5024_s26  ;;  %v2780_v44 = vmul.f32 1.442695, %v2771_v40 }
 0xf8d   :  { %4794 = vpow2.f32 %v2780_v44 }
 0xf8f   :  { %2368 = vrot.lane.b32.xlu1 %v5595_v41, %s5024_s26  ;;  %v4793_v20 = vpop.eup %4792 }
 0xf90   :  { %v2794_v45 = vsel %vm1000_vm6, %v4793_v20, 0.0 }
 0xf97   :  { %v5630_v46 = vpop.eup %4794 }
 0xf98   :  { %v2797_v49 = vsel %vm1000_vm6, %v5630_v46, 0.0 }
 0xfaa   :  { %2795 = vadd.xlane.f32.xlu0 %v2794_v45 }
 0xfb3   :  { %2798 = vadd.xlane.f32.xlu1 %v2797_v49 }
 0xfc4   :  { %2370 = vrot.lane.b32.xlu1 %v5580_v10, %s5012_s28 }
 0xff3   :  { %v2754_v34 = vpop.xlane.xlu0 %2753 }
 0xff4   :  { %v2772_v50 = vsub.f32 %v2511_v61, %v2754_v34 }
 0xff6   :  { %v2782_v42 = vmul.f32 1.442695, %v2772_v50 }
 0xff8   :  { %4796 = vpow2.f32 %v2782_v42 }
 0xffa   :  { %v2760_v38 = vpop.xlane.xlu0 %2759 }
 0xffb   :  { %v2757_v52 = vpop.xlane.xlu1 %2756  ;;  %v2774_v14 = vsub.f32 %v5610_v5, %v2760_v38 }
 0xffc   :  { %v2773_v53 = vsub.f32 %v2557_v7, %v2757_v52 }
 0xffd   :  { %v2786_v15 = vmul.f32 1.442695, %v2774_v14 }
 0xffe   :  { %v2784_v48 = vmul.f32 1.442695, %v2773_v53 }
0x1000   :  { %4798 = vpow2.f32 %v2784_v48 }
0x1002   :  { %v5636_v47 = vpop.eup %4796  ;;  %v2766_v39 = vpop.xlane.xlu0 %2765 }
0x1003   :  { %v2763_v57 = vpop.xlane.xlu1 %2762  ;;  %v2800_v58 = vsel %vm1000_vm6, %v5636_v47, 0.0  ;;  %v2776_v8 = vsub.f32 %v5617_v18, %v2766_v39 }
0x1004   :  { %v2775_v59 = vsub.f32 %v2649_v23, %v2763_v57  ;;  %2801 = vadd.xlane.f32.xlu0 %v2800_v58 }
0x1005   :  { %v2790_v55 = vmul.f32 1.442695, %v2776_v8  ;;  %v4692_v8 = vld [vmem:[#allocation8 + $0x40] sm:$0xff]  }
0x1006   :  { %v2788_v60 = vmul.f32 1.442695, %v2775_v59  ;;  %v2367_v51 = vpop.permute.xlu0 %2366 }
0x1007   :  { %v2938_v26 = vsel %vm1100_vm5, %v2367_v51, 0 }
0x1008   :  { %4800 = vpow2.f32 %v2788_v60 }
0x100a   :  { %v5640_v62 = vpop.eup %4798 }
0x100b   :  { %v2769_v63 = vpop.xlane.xlu1 %2768  ;;  %v2803_v61 = vsel %vm1000_vm6, %v5640_v62, 0.0 }
0x100c   :  { %v2777_v2 = vsub.f32 %v2741_v13, %v2769_v63  ;;  %2804 = vadd.xlane.f32.xlu1 %v2803_v61 }
0x100e   :  { %v2792_v3 = vmul.f32 1.442695, %v2777_v2 }
0x100f   :  { %v2369_v5 = vpop.permute.xlu1 %2368 }
0x1010   :  { %4802 = vpow2.f32 %v2792_v3  ;;  %v2984_v31 = vsel %vm1100_vm5, %v2369_v5, 0 }
0x1011   :  { %4804 = vpow2.f32 %v2786_v15 }
0x1012   :  { %v5644_v4 = vpop.eup %4800  ;;  %4806 = vpow2.f32 %v2790_v55 }
0x1013   :  { %v2809_v9 = vsel %vm1000_vm6, %v5644_v4, 0.0 }
0x1014   :  { %2810 = vadd.xlane.f32.xlu1 %v2809_v9 }
0x101a   :  { %v5648_v6 = vpop.eup %4802  ;;  %2372 = vrot.lane.b32.xlu0 %v5595_v41, %s5012_s28 }
0x101b   :  { %v2815_v7 = vsel %vm1000_vm6, %v5648_v6, 0.0  ;;  %v5658_v17 = vpop.eup %4804 }
0x101c   :  { %2816 = vadd.xlane.f32.xlu1 %v2815_v7  ;;  %v2806_v21 = vsel %vm1000_vm6, %v5658_v17, 0.0  ;;  %v5662_v23 = vpop.eup %4806 }
0x101d   :  { %v2812_v18 = vsel %vm1000_vm6, %v5662_v23, 0.0 }
0x102d   :  { %2374 = vrot.lane.b32.xlu1 %v5580_v10, %s5025_s24 }
0x1037   :  { %v2796_v19 = vpop.xlane.xlu0 %2795 }
0x1038   :  { %4808 = vrcp.f32 %v2796_v19 }
0x1039   :  { %2807 = vadd.xlane.f32.xlu0 %v2806_v21  ;;  %v4694_v21 = vld [vmem:[#allocation8 + $0x50] sm:$0xff]  }
0x103d   :  { %2813 = vadd.xlane.f32.xlu0 %v2812_v18 }
0x1040   :  { %v2799_v22 = vpop.xlane.xlu1 %2798 }
0x1041   :  { %4810 = vrcp.f32 %v2799_v22 }
0x1042   :  { %v4809_v10 = vpop.eup %4808 }
0x1043   :  { %v2826_v24 = vmul.f32 %v4809_v10, %v4793_v20  ;;  %v4695_v10 = vld [vmem:[#allocation8 + $0x58] sm:$0xff]  }
0x1044   :  { %v2371_v16 = vpop.permute.xlu1 %2370 }
0x1045   :  { %v2834_v25 = vpack.c.bf16 %v2826_v24, %v2826_v24  ;;  %v3030_v35 = vsel %vm1100_vm5, %v2371_v16, 0 }
0x1047   :  { %4461 = vmatmul.mubr.msk.bf16.vlgmr.msra.gmra.mrb[52].mxu0 %vm1000_vm6, %v2834_v25  ;;  %v4696_v25 = vld [vmem:[#allocation8 + $0x60] sm:$0xff]  }
0x1048   :  { %4471 = vmatpush3.bf16.msra.mxu0 %v2938_v26  ;;  %4472 = vmatprep.mubr.msk.bf16.mxu0 %vm5023_vm0, %v5022_v1 }
0x1049   :  { %4482 = vmatprep.subr.bf16.mxu0 %v5022_v1 }
0x104b   :  { %v4811_v27 = vpop.eup %4810 }
0x104c   :  { %v2827_v29 = vmul.f32 %v4811_v27, %v5630_v46 }
0x104e   :  { %v2835_v30 = vpack.c.bf16 %v2827_v29, %v2827_v29 }
0x1050   :  { %4467 = vmatmul.mubr.msk.bf16.vlgmr.msra.gmra.mrb[76].mxu1 %vm1000_vm6, %v2835_v30 }
0x1051   :  { %4477 = vmatpush3.bf16.msra.mxu1 %v2984_v31  ;;  %4478 = vmatprep.mubr.msk.bf16.mxu1 %vm5023_vm0, %v5022_v1  ;;  %v4697_v31 = vld [vmem:[#allocation8 + $0x68] sm:$0xff]  }
0x1052   :  { %4488 = vmatprep.subr.bf16.mxu1 %v5022_v1 }
0x1053   :  { %2376 = vrot.lane.b32.xlu0 %v5595_v41, %s5025_s24 }
0x1091   :  { %v2802_v13 = vpop.xlane.xlu0 %2801 }
0x1092   :  { %4812 = vrcp.f32 %v2802_v13  ;;  %v4698_v13 = vld [vmem:[#allocation8 + $0x70] sm:$0xff]  }
0x1095   :  { %v2373_v40 = vpop.permute.xlu0 %2372 }
0x1096   :  { %v3076_v20 = vsel %vm1100_vm5, %v2373_v40, 0 }
0x1099   :  { %v2805_v28 = vpop.xlane.xlu1 %2804 }
0x109a   :  { %4814 = vrcp.f32 %v2805_v28 }
0x109c   :  { %v4813_v32 = vpop.eup %4812 }
0x109d   :  { %v2828_v33 = vmul.f32 %v4813_v32, %v5636_v47 }
0x109f   :  { %v2836_v43 = vpack.c.bf16 %v2828_v33, %v2828_v33  ;;  %v4699_v33 = vld [vmem:[#allocation8 + $0x78] sm:$0xff]  }
0x10a1   :  { %4473 = vmatmul.mubr.msk.bf16.vlgmr.msra.gmra.mrb[56].mxu0 %vm1000_vm6, %v2836_v43  ;;  %v2811_v36 = vpop.xlane.xlu1 %2810 }
0x10a2   :  { %4483 = vmatpush3.bf16.msra.mxu0 %v3030_v35  ;;  %4816 = vrcp.f32 %v2811_v36  ;;  %4484 = vmatprep.mubr.msk.bf16.mxu0 %vm5023_vm0, %v5022_v1 }
0x10a3   :  { %4494 = vmatprep.subr.bf16.mxu0 %v5022_v1 }
0x10a4   :  { %v4815_v41 = vpop.eup %4814 }
0x10a5   :  { %v2829_v37 = vmul.f32 %v4815_v41, %v5640_v62 }
0x10a7   :  { %v2837_v44 = vpack.c.bf16 %v2829_v37, %v2829_v37 }
0x10a9   :  { %4479 = vmatmul.mubr.msk.bf16.vlgmr.msra.gmra.mrb[80].mxu1 %vm1000_vm6, %v2837_v44  ;;  %v2817_v34 = vpop.xlane.xlu1 %2816 }
0x10aa   :  { %4489 = vmatpush3.bf16.msra.mxu1 %v3076_v20  ;;  %4490 = vmatprep.mubr.msk.bf16.mxu1 %vm5023_vm0, %v5022_v1  ;;  %4818 = vrcp.f32 %v2817_v34 }
0x10ab   :  { %4500 = vmatprep.subr.bf16.mxu1 %v5022_v1 }
0x10ac   :  { %v4817_v45 = vpop.eup %4816 }
0x10ad   :  { %v2831_v46 = vmul.f32 %v4817_v45, %v5644_v4  ;;  %v2375_v60 = vpop.permute.xlu1 %2374 }
0x10ae   :  { %v3122_v61 = vsel %vm1100_vm5, %v2375_v60, 0 }
0x10af   :  { %v2839_v49 = vpack.c.bf16 %v2831_v46, %v2831_v46 }
0x10b1   :  { %4491 = vmatmul.mubr.msk.bf16.vlgmr.msra.gmra.mrb[84].mxu1 %vm1000_vm6, %v2839_v49 }
0x10b2   :  { %4502 = vmatprep.mubr.msk.bf16.mxu1 %vm5023_vm0, %v5022_v1 }
0x10b4   :  { %v4819_v42 = vpop.eup %4818 }
0x10b5   :  { %v2833_v53 = vmul.f32 %v4819_v42, %v5648_v6 }
0x10b7   :  { %v2841_v58 = vpack.c.bf16 %v2833_v53, %v2833_v53 }
0x10c6   :  { %v2808_v50 = vpop.xlane.xlu0 %2807 }
0x10c7   :  { %4820 = vrcp.f32 %v2808_v50 }
0x10ca   :  { %v2814_v52 = vpop.xlane.xlu0 %2813 }
0x10cb   :  { %4822 = vrcp.f32 %v2814_v52 }
0x10ce   :  { %v2377_v48 = vpop.permute.xlu0 %2376 }
0x10cf   :  { %v3168_v47 = vsel %vm1100_vm5, %v2377_v48, 0 }
0x10d0   :  { %4501 = vmatpush3.bf16.msra.mxu1 %v3168_v47 }
0x10d1   :  { %v4821_v57 = vpop.eup %4820 }
0x10d2   :  { %v2830_v59 = vmul.f32 %v4821_v57, %v5658_v17  ;;  %v4693_v17 = vld [vmem:[#allocation8 + $0x48] sm:$0xff]  }
0x10d3   :  { %4503 = vmatmul.mubr.msk.bf16.vlgmr.msra.gmra.mrb[88].mxu1 %vm1000_vm6, %v2841_v58 }
0x10d4   :  { %v2838_v62 = vpack.c.bf16 %v2830_v59, %v2830_v59  ;;  %3542 = vmatprep.mubr.bf16.mxu1 %v5021_v0 }
0x10d5   :  { %v4823_v63 = vpop.eup %4822 }
0x10d6   :  { %4485 = vmatmul.mubr.msk.bf16.vlgmr.msra.gmra.mrb[60].mxu0 %vm1000_vm6, %v2838_v62  ;;  %v2832_v2 = vmul.f32 %v4823_v63, %v5662_v23 }
0x10d7   :  { %4495 = vmatpush3.bf16.msra.mxu0 %v3122_v61  ;;  %4496 = vmatprep.mubr.msk.bf16.mxu0 %vm5023_vm0, %v5022_v1 }
0x10d8   :  { %4506 = vmatprep.subr.bf16.mxu0 %v5022_v1  ;;  %v2840_v3 = vpack.c.bf16 %v2832_v2, %v2832_v2 }
0x10de   :  { %4497 = vmatmul.mubr.msk.bf16.vlgmr.msra.gmra.mrb[64].mxu0 %vm1000_vm6, %v2840_v3  ;;  %v4029_v3 = vld [vmem:[%s5790_s9 + $0x1] ss:$0 sm:$0xff] }
0x10df   :  { %4522 = vmatprep.mubr.msk.bf16.mxu0 %vm5023_vm0, %v5022_v1  ;;  %4507 = vmatpush3.bf16.msra.mxu0 %v4692_v8  ;;  %v4702_v8 = vld [vmem:[#allocation10 + $0x84] ss:$8 sps:$4 sm:$0xff]  }
0x10e0   :  { %4508 = vmatprep.subr.bf16.mxu0 %v5022_v1  ;;  %3510 = vmatprep.subr.bf16.mxu1 %v4702_v8 }
0x10e3   :  { %4509 = vmatpush3.bf16.msra.mxu0 %v4693_v17 }
0x10e4   :  { %4510 = vmatprep.subr.bf16.mxu0 %v5022_v1 }
0x10e7   :  { %4511 = vmatpush3.bf16.msra.mxu0 %v4694_v21 }
0x10e8   :  { %4512 = vmatprep.subr.bf16.mxu0 %v5022_v1 }
0x10eb   :  { %4513 = vmatpush3.bf16.msra.mxu0 %v4695_v10  ;;  %v4706_v10 = vld [vmem:[#allocation10 + $0xa0] ss:$8 sps:$4 sm:$0xff]  }
0x10ec   :  { %4514 = vmatprep.subr.bf16.mxu0 %v5022_v1 }
0x10ef   :  { %4515 = vmatpush3.bf16.msra.mxu0 %v4696_v25  ;;  %v4709_v25 = vld [vmem:[#allocation10 + $0xb0] ss:$8 sps:$4 sm:$0xff]  }
0x10f0   :  { %4516 = vmatprep.subr.bf16.mxu0 %v5022_v1 }
0x10f3   :  { %4517 = vmatpush3.bf16.msra.mxu0 %v4697_v31  ;;  %v4720_v31 = vld [vmem:[#allocation10 + $0xe4] ss:$8 sps:$4 sm:$0xff]  }
0x10f4   :  { %4518 = vmatprep.subr.bf16.mxu0 %v5022_v1 }
0x10f7   :  { %4519 = vmatpush3.bf16.msra.mxu0 %v4698_v13  ;;  %v4718_v13 = vld [vmem:[#allocation10 + $0xe0] ss:$8 sps:$4 sm:$0xff]  }
0x10f8   :  { %4520 = vmatprep.subr.bf16.mxu0 %v5022_v1 }
0x10fb   :  { %4521 = vmatpush3.bf16.msra.mxu0 %v4699_v33 }
0x111a   :  { %v5709_v0 = vpop.f32.mrb[52].mxu0 }
0x111b   :  { %v4462_v4 = vpop.f32.mrb[53].mxu0 }
0x111c   :  { %v2885_v9 = vpop.f32.mrb[54].mxu0 }
0x111d   :  { %v4463_v6 = vpop.f32.mrb[55].mxu0 }
0x1123   :  { %v5711_v7 = vpop.f32.mrb[76].mxu1 }
0x1124   :  { %v4468_v38 = vpop.f32.mrb[77].mxu1 }
0x1125   :  { %v2931_v14 = vpop.f32.mrb[78].mxu1 }
0x1126   :  { %v4469_v39 = vpop.f32.mrb[79].mxu1 }
0x1174   :  { %v2974_v15 = vpop.f32.mrb[56].mxu0 }
0x1175   :  { %v4474_v55 = vpop.f32.mrb[57].mxu0 }
0x1176   :  { %v2977_v51 = vpop.f32.mrb[58].mxu0  ;;  %v4705_v55 = vld [vmem:[#allocation10 + $0x94] ss:$8 sps:$4 sm:$0xff]  }
0x1177   :  { %v4475_v19 = vpop.f32.mrb[59].mxu0  ;;  %v4703_v51 = vld [vmem:[#allocation10 + $0x90] ss:$8 sps:$4 sm:$0xff]  }
0x117c   :  { %v3020_v23 = vpop.f32.mrb[80].mxu1 }
0x117d   :  { %v4561_v5 = vpack.i.bf16 %v3020_v23, %v2974_v15  ;;  %v4480_v18 = vpop.f32.mrb[81].mxu1  ;;  %v4700_v15 = vld [vmem:[#allocation10 + $0x80] ss:$8 sps:$4 sm:$0xff]  }
0x117e   :  { %v3023_v22 = vpop.f32.mrb[82].mxu1  ;;  %3511 = vmatpush1.bf16.msra.mxu1 %v4700_v15 }
0x117f   :  { %4562 = vrot.lane.b32.xlu1 %v4561_v5, %s5025_s24  ;;  %v4481_v24 = vpop.f32.mrb[83].mxu1  ;;  %3512 = vmatprep.subr.bf16.mxu1 %v4705_v55 }
0x1180   :  { %v4711_v24 = vld [vmem:[#allocation10 + $0xb4] ss:$8 sps:$4 sm:$0xff]  }
0x1182   :  { %3513 = vmatpush1.bf16.msra.mxu1 %v4703_v51 }
0x1184   :  { %v3112_v26 = vpop.f32.mrb[84].mxu1 }
0x1185   :  { %v4492_v27 = vpop.f32.mrb[85].mxu1 }
0x1186   :  { %v3115_v29 = vpop.f32.mrb[86].mxu1  ;;  %v4712_v27 = vld [vmem:[#allocation10 + $0xc0] ss:$8 sps:$4 sm:$0xff]  }
0x1187   :  { %v4493_v30 = vpop.f32.mrb[87].mxu1  ;;  %v4717_v29 = vld [vmem:[#allocation10 + $0xd4] ss:$8 sps:$4 sm:$0xff]  }
0x1188   :  { %v4715_v30 = vld [vmem:[#allocation10 + $0xd0] ss:$8 sps:$4 sm:$0xff]  }
0x11a6   :  { %v3204_v16 = vpop.f32.mrb[88].mxu1 }
0x11a7   :  { %v4504_v28 = vpop.f32.mrb[89].mxu1 }
0x11a8   :  { %v3207_v32 = vpop.f32.mrb[90].mxu1  ;;  %v4721_v28 = vld [vmem:[#allocation10 + $0xf0] ss:$8 sps:$4 sm:$0xff]  }
0x11a9   :  { %v3066_v43 = vpop.f32.mrb[60].mxu0  ;;  %v4505_v35 = vpop.f32.mrb[91].mxu1 }
0x11aa   :  { %v4566_v36 = vpack.i.bf16 %v3112_v26, %v3066_v43  ;;  %v4486_v41 = vpop.f32.mrb[61].mxu0  ;;  %v4714_v26 = vld [vmem:[#allocation10 + $0xc4] ss:$8 sps:$4 sm:$0xff]  }
0x11ab   :  { %v3069_v37 = vpop.f32.mrb[62].mxu0 }
0x11ac   :  { %v4487_v40 = vpop.f32.mrb[63].mxu0  ;;  %4567 = vrot.lane.b32.xlu0 %v4566_v36, %s5012_s28 }
0x11b1   :  { %v3158_v44 = vpop.f32.mrb[64].mxu0 }
0x11b2   :  { %v4571_v20 = vpack.i.bf16 %v3204_v16, %v3158_v44  ;;  %v4498_v45 = vpop.f32.mrb[65].mxu0  ;;  %v4723_v16 = vld [vmem:[#allocation10 + $0xf4] ss:$8 sps:$4 sm:$0xff]  }
0x11b3   :  { %v3161_v46 = vpop.f32.mrb[66].mxu0  ;;  %v4040_v44 = vld [vmem:[%s5791_s10 + $0x1] ss:$0 sm:$0xff] }
0x11b4   :  { %v4499_v49 = vpop.f32.mrb[67].mxu0  ;;  %4572 = vrot.lane.b32.xlu1 %v4571_v20, %s5024_s26 }
0x11b5   :  { %v4041_v49 = vld [vmem:[%s5792_s11 + $0x1] ss:$0 sm:$0xff] }
0x11f1   :  { %v4563_v34 = vpop.permute.xlu1 %4562 }
0x11f2   :  { %v4565_v50 = vunpack.i.h.bf16 %v4563_v34  ;;  %v4564_v42 = vunpack.i.l.bf16 %v4563_v34 }
0x11f4   :  { %v3235_v47 = vsel %vm631_vm4, %v5711_v7, %v4565_v50  ;;  %v3234_v57 = vsel %vm631_vm4, %v5709_v0, %v4564_v42 }
0x121e   :  { %v4568_v1 = vpop.permute.xlu0 %4567 }
0x121f   :  { %v4570_v52 = vunpack.i.h.bf16 %v4568_v1  ;;  %v4569_v53 = vunpack.i.l.bf16 %v4568_v1 }
0x1221   :  { %v3237_v60 = vsel %vm190_vm3, %v3235_v47, %v4570_v52  ;;  %v3236_v62 = vsel %vm190_vm3, %v3234_v57, %v4569_v53  ;;  %v4724_v52 = vld [vmem:[#allocation11 + $0xc0] sm:$0xff]   ;;  %v4727_v47 = vld [vmem:[#allocation11 + $0x88] sm:$0xff]   ;;  %v4728_v57 = vld [vmem:[#allocation11 + $0xd0] sm:$0xff]  }
0x1222   :  { %v4725_v53 = vld [vmem:[#allocation11 + $0x80] sm:$0xff]   ;;  %4220 = vmatprep.subr.bf16.mxu0 %v4724_v52 }
0x1226   :  { %v4573_v48 = vpop.permute.xlu1 %4572 }
0x1227   :  { %v4575_v58 = vunpack.i.h.bf16 %v4573_v48  ;;  %v4574_v59 = vunpack.i.l.bf16 %v4573_v48  ;;  %v4726_v48 = vld [vmem:[#allocation11 + $0xc8] sm:$0xff]  }
0x1229   :  { %v3239_v63 = vsel %vm1494_vm7, %v3237_v60, %v4575_v58  ;;  %v3238_v61 = vsel %vm1494_vm7, %v3236_v62, %v4574_v59  ;;  %v4729_v58 = vld [vmem:[#allocation11 + $0x90] sm:$0xff]   ;;  %v4730_v59 = vld [vmem:[#allocation11 + $0xd8] sm:$0xff]   ;;  %v4732_v62 = vld [vmem:[#allocation11 + $0xe0] sm:$0xff]  }
0x122a   :  { %v3240_v2 = vpack.c.bf16 %v3239_v63, %v3238_v61  ;;  %v4731_v60 = vld [vmem:[#allocation11 + $0x98] sm:$0xff]   ;;  %v4733_v63 = vld [vmem:[#allocation11 + $0xa0] sm:$0xff]   ;;  %v4734_v61 = vld [vmem:[#allocation11 + $0xe8] sm:$0xff]  }
0x122c   :  { %4523 = vmatmul.mubr.bf16.vlgmr.msra.gmra.mrb[68].mxu0 %v3240_v2  ;;  %v4735_v2 = vld [vmem:[#allocation11 + $0xa8] sm:$0xff]  }
0x122d   :  { %4221 = vmatpush3.bf16.msra.mxu0 %v4725_v53 }
0x122e   :  { %4222 = vmatprep.subr.bf16.mxu0 %v4726_v48 }
0x1231   :  { %4223 = vmatpush3.bf16.msra.mxu0 %v4727_v47 }
0x1232   :  { %4224 = vmatprep.subr.bf16.mxu0 %v4728_v57 }
0x1235   :  { %4225 = vmatpush3.bf16.msra.mxu0 %v4729_v58 }
0x1236   :  { %4226 = vmatprep.subr.bf16.mxu0 %v4730_v59  ;;  %v4060_v59 = vld [vmem:[%s5796_s15 + $0x1] ss:$0 sm:$0xff] }
0x1239   :  { %4227 = vmatpush3.bf16.msra.mxu0 %v4731_v60 }
0x123a   :  { %4228 = vmatprep.subr.bf16.mxu0 %v4732_v62 }
0x123d   :  { %4229 = vmatpush3.bf16.msra.mxu0 %v4733_v63 }
0x123e   :  { %4230 = vmatprep.subr.bf16.mxu0 %v4734_v61 }
0x1241   :  { %4231 = vmatpush3.bf16.msra.mxu0 %v4735_v2 }
0x12ff   :  { %v3348_v4 = vpop.f32.mrb[68].mxu0 }
0x1300   :  { %v3349_v9 = vadd.f32 %v4029_v3, %v3348_v4  ;;  %v4524_v6 = vpop.f32.mrb[69].mxu0  ;;  %v4737_v4 = vld [vmem:[#allocation11 + $0xb0] sm:$0xff]  }
0x1301   :  { %v3351_v0 = vpop.f32.mrb[70].mxu0  ;;  %v4739_v6 = vld [vmem:[#allocation11 + $0xb8] sm:$0xff]  }
0x1302   :  { %v3352_v7 = vadd.f32 %v4029_v3, %v3351_v0  ;;  %v4525_v38 = vpop.f32.mrb[71].mxu0  ;;  %v3355_v14 = vadd.f32 %v3349_v9, %v5521_v54  ;;  %v4736_v3 = vld [vmem:[#allocation11 + $0xf0] sm:$0xff]   ;;  %v4738_v9 = vld [vmem:[#allocation11 + $0xf8] sm:$0xff]   ;;  %v4042_v0 = vld [vmem:[%s5794_s13 + $0x2] sm:$0x3] }
0x1303   :  { %4232 = vmatprep.subr.bf16.mxu0 %v4736_v3  ;;  %v3427_v38 = vrot.slane %v4042_v0, %v5262_v12 }
0x1304   :  { %3361 = vadd.xlane.f32.xlu0 %v3355_v14  ;;  %v3356_v39 = vadd.f32 %v3352_v7, %v5523_v56  ;;  %v4708_v56 = vld [vmem:[#allocation10 + $0xa4] ss:$8 sps:$4 sm:$0xff]   ;;  %4233 = vmatpush3.bf16.msra.mxu0 %v4737_v4  ;;  %v3423_v7 = vrot.slane %v4042_v0, %v5259_v11 }
0x1305   :  { %3514 = vmatprep.subr.bf16.mxu1 %v4708_v56  ;;  %4234 = vmatprep.subr.bf16.mxu0 %v4738_v9 }
0x1306   :  { %3363 = vadd.xlane.f32.xlu1 %v3356_v39  ;;  %3515 = vmatpush1.bf16.msra.mxu1 %v4706_v10 }
0x1307   :  { %3516 = vmatprep.subr.bf16.mxu1 %v4711_v24 }
0x1308   :  { %4235 = vmatpush3.bf16.msra.mxu0 %v4739_v6 }
0x130a   :  { %3517 = vmatpush1.bf16.msra.mxu1 %v4709_v25 }
0x130b   :  { %3518 = vmatprep.subr.bf16.mxu1 %v4714_v26 }
0x130e   :  { %3519 = vmatpush1.bf16.msra.mxu1 %v4712_v27 }
0x130f   :  { %3520 = vmatprep.subr.bf16.mxu1 %v4717_v29 }
0x1312   :  { %3521 = vmatpush1.bf16.msra.mxu1 %v4715_v30 }
0x1313   :  { %3522 = vmatprep.subr.bf16.mxu1 %v4720_v31 }
0x1316   :  { %3523 = vmatpush1.bf16.msra.mxu1 %v4718_v13 }
0x1317   :  { %3524 = vmatprep.subr.bf16.mxu1 %v4723_v16 }
0x131a   :  { %3525 = vmatpush1.bf16.msra.mxu1 %v4721_v28 }
0x1391   :  { %v3362_v17 = vpop.xlane.xlu0 %3361 }
0x1392   :  { %v3365_v19 = vmul.f32 0.0078125, %v3362_v17 }
0x1393   :  { %v3364_v21 = vpop.xlane.xlu1 %3363 }
0x1394   :  { %v3367_v23 = vsub.f32 %v3355_v14, %v3365_v19  ;;  %v3366_v5 = vmul.f32 0.0078125, %v3364_v21 }
0x1396   :  { %v3368_v18 = vsub.f32 %v3356_v39, %v3366_v5  ;;  %v3369_v22 = vmul.f32 %v3367_v23, %v3367_v23 }
0x1398   :  { %3371 = vadd.xlane.f32.xlu0 %v3369_v22  ;;  %v3370_v54 = vmul.f32 %v3368_v18, %v3368_v18 }
0x139c   :  { %3373 = vadd.xlane.f32.xlu0 %v3370_v54 }
0x1425   :  { %v3372_v32 = vpop.xlane.xlu0 %3371 }
0x1426   :  { %v3375_v33 = vmul.f32 0.0078125, %v3372_v32 }
0x1428   :  { %v3377_v43 = vadd.f32 1e-12, %v3375_v33 }
0x1429   :  { %v3374_v35 = vpop.xlane.xlu0 %3373 }
0x142a   :  { %4824 = vrsqrt.f32 %v3377_v43  ;;  %v3376_v36 = vmul.f32 0.0078125, %v3374_v35 }
0x142c   :  { %v3378_v41 = vadd.f32 1e-12, %v3376_v36 }
0x142e   :  { %4826 = vrsqrt.f32 %v3378_v41 }
0x1434   :  { %v4825_v37 = vpop.eup %4824 }
0x1435   :  { %v3381_v40 = vmul.f32 %v4825_v37, %v3367_v23 }
0x1437   :  { %v3389_v46 = vmul.f32 %v4040_v44, %v3381_v40 }
0x1438   :  { %v4827_v20 = vpop.eup %4826 }
0x1439   :  { %v3382_v45 = vmul.f32 %v4827_v20, %v3368_v18  ;;  %v5742_v1 = vadd.f32 %v4041_v49, %v3389_v46 }
0x143b   :  { %v3390_v34 = vmul.f32 %v4040_v44, %v3382_v45 }
0x143d   :  { %v5744_v50 = vadd.f32 %v4041_v49, %v3390_v34 }
0x143f   :  { %v3399_v42 = vpack.c.bf16 %v5744_v50, %v5742_v1 }
0x1441   :  { %3543 = vmatmul.mubr.bf16.vlgmr.msra.gmra.mrb[92].mxu1 %v3399_v42 }
0x1514   :  { %v3544_v14 = vpop.f32.mrb[92].mxu1 }
0x1515   :  { %v3545_v39 = vadd.f32 %v3544_v14, %v3423_v7  ;;  %v3546_v15 = vpop.f32.mrb[93].mxu1 }
0x1516   :  { %v3547_v8 = vadd.f32 %v3546_v15, %v3427_v38  ;;  %v3548_v55 = vpop.f32.mrb[94].mxu1 }
0x1517   :  { %v3553_v51 = vmul.f32 %v3545_v39, %v3545_v39  ;;  %v3549_v17 = vadd.f32 %v3548_v55, %v3423_v7  ;;  %v3550_v19 = vpop.f32.mrb[95].mxu1 }
0x1518   :  { %v3554_v21 = vmul.f32 %v3547_v8, %v3547_v8  ;;  %v3551_v23 = vadd.f32 %v3550_v19, %v3427_v38 }
0x1519   :  { %v3557_v5 = vmul.f32 %v3553_v51, %v3545_v39  ;;  %v3555_v18 = vmul.f32 %v3549_v17, %v3549_v17  ;;  %v4844_v51 = vld [vmem:[%s5808_s0] sm:$0x3] }
0x151a   :  { %v3558_v22 = vmul.f32 %v3554_v21, %v3547_v8  ;;  %v3556_v54 = vmul.f32 %v3551_v23, %v3551_v23 }
0x151b   :  { %v3561_v56 = vmul.f32 0.044715, %v3557_v5  ;;  %v3559_v10 = vmul.f32 %v3555_v18, %v3549_v17 }
0x151c   :  { %v3562_v24 = vmul.f32 0.044715, %v3558_v22  ;;  %v3560_v25 = vmul.f32 %v3556_v54, %v3551_v23 }
0x151d   :  { %v3565_v26 = vadd.f32 %v3561_v56, %v3545_v39  ;;  %v3563_v27 = vmul.f32 0.044715, %v3559_v10  ;;  %v4079_v10 = vld [vmem:[%s5797_s16 + $0x1] ss:$0 sm:$0xff]  ;;  %s5027_s16 = smov [#allocation13]  }
0x151e   :  { %v3566_v29 = vadd.f32 %v3562_v24, %v3547_v8  ;;  %v3564_v30 = vmul.f32 0.044715, %v3560_v25 }
0x151f   :  { %v3569_v31 = vmul.f32 0.7978846, %v3565_v26  ;;  %v3567_v13 = vadd.f32 %v3563_v27, %v3549_v17 }
0x1520   :  { %v3570_v16 = vmul.f32 0.7978846, %v3566_v29  ;;  %v3568_v28 = vadd.f32 %v3564_v30, %v3551_v23 }
0x1521   :  { %4828 = vtanh.f32 %v3569_v31  ;;  %v3571_v32 = vmul.f32 0.7978846, %v3567_v13 }
0x1522   :  { %4830 = vtanh.f32 %v3570_v16  ;;  %v3572_v33 = vmul.f32 0.7978846, %v3568_v28 }
0x1523   :  { %4832 = vtanh.f32 %v3571_v32 }
0x1524   :  { %4834 = vtanh.f32 %v3572_v33 }
0x152b   :  { %v4829_v43 = vpop.eup %4828 }
0x152c   :  { %v4831_v35 = vpop.eup %4830  ;;  %v3577_v36 = vadd.f32 1.0, %v4829_v43 }
0x152d   :  { %v4833_v41 = vpop.eup %4832  ;;  %v3578_v37 = vadd.f32 1.0, %v4831_v35 }
0x152e   :  { %v4835_v40 = vpop.eup %4834  ;;  %v3581_v44 = vmul.f32 0.5, %v3577_v36  ;;  %v3579_v20 = vadd.f32 1.0, %v4833_v41 }
0x152f   :  { %v3580_v45 = vadd.f32 1.0, %v4835_v40  ;;  %v3582_v46 = vmul.f32 0.5, %v3578_v37 }
0x1530   :  { %v3583_v49 = vmul.f32 0.5, %v3579_v20  ;;  %v3585_v42 = vmul.f32 %v3581_v44, %v3545_v39 }
0x1531   :  { %v3584_v34 = vmul.f32 0.5, %v3580_v45  ;;  %v3586_v53 = vmul.f32 %v3582_v46, %v3547_v8 }
0x1532   :  { %v3587_v52 = vmul.f32 %v3583_v49, %v3549_v17  ;;  %v3816_v17 = vrot.slane %v4844_v51, %v5259_v11  ;;  %v4080_v11 = vld [vmem:[%s5798_s17 + $0x1] ss:$0 sm:$0xff]  ;;  %s3867_s17 = sshll.u32 %s5027_s16, 4  ;;  %s3868_s17 = int_to_ptr.vmem [resolvable:$true] %s3867_s17 }
0x1533   :  { %v3588_v48 = vmul.f32 %v3584_v34, %v3551_v23  ;;  %s4977_s5 = scalar_lea.vmem %s3868_s17, 32  ;;  %p4982_p7 = scmp.lt.s32.totalorder %s3868_s17, %s3868_s17 }
0x1534   :  { %v3589_v47 = vpack.c.bf16 %v3587_v52, %v3585_v42  ;;  %p4978_p6 = scmp.ne.s32.totalorder %s3868_s17, %s4977_s5  ;;  %p4983_p8 = scmp.lt.s32.totalorder %s4977_s5, %s4977_s5 }
0x1535   :  { %v3590_v57 = vpack.c.bf16 %v3588_v48, %v3586_v53 }
0x1536   :  { %p4984_p9 = por %p4983_p8, %p4982_p7 }
0x1537   :  { %3760 = vmatprep.mubr.bf16.mxu0 %v3590_v57 }
0x1538   :  { %3761 = vmatmul.mubr.bf16.vlgmr.msra.gmra.mrb[72].mxu0 %v3589_v47  ;;  %p4985_p10 = pnand %p4984_p9, %p4978_p6 }
0x160b   :  { %v4236_v58 = vpop.f32.mrb[72].mxu0 }
0x160c   :  { %v4237_v60 = vpop.f32.mrb[73].mxu0 }
0x160d   :  { %v4238_v62 = vadd.f32 %v4237_v60, %v4236_v58  ;;  %v4239_v63 = vpop.f32.mrb[74].mxu0 }
0x160e   :  { %v4240_v61 = vpop.f32.mrb[75].mxu0 }
0x160f   :  { %v3763_v2 = vadd.f32 %v4238_v62, %v4060_v59  ;;  %v4241_v3 = vadd.f32 %v4240_v61, %v4239_v63 }
0x1611   :  { %v3766_v4 = vadd.f32 %v4241_v3, %v4060_v59  ;;  %v3769_v9 = vadd.f32 %v3763_v2, %v5742_v1  ;;  %v3842_v1 = vsel %vm3841_vm8, %v4844_v51, 0.0 }
0x1613   :  { %3775 = vadd.xlane.f32.xlu0 %v3769_v9  ;;  %v3770_v6 = vadd.f32 %v3766_v4, %v5744_v50  ;;  %v3823_v50 = vrot.slane %v4844_v51, %v5262_v12 }
0x1615   :  { %3777 = vadd.xlane.f32.xlu1 %v3770_v6 }
0x16a0   :  { %v3776_v0 = vpop.xlane.xlu0 %3775 }
0x16a1   :  { %v3779_v7 = vmul.f32 0.0078125, %v3776_v0 }
0x16a2   :  { %v3778_v38 = vpop.xlane.xlu1 %3777 }
0x16a3   :  { %v3781_v14 = vsub.f32 %v3769_v9, %v3779_v7  ;;  %v3780_v39 = vmul.f32 0.0078125, %v3778_v38 }
0x16a5   :  { %v3782_v15 = vsub.f32 %v3770_v6, %v3780_v39  ;;  %v3783_v8 = vmul.f32 %v3781_v14, %v3781_v14 }
0x16a7   :  { %3785 = vadd.xlane.f32.xlu0 %v3783_v8  ;;  %v3784_v55 = vmul.f32 %v3782_v15, %v3782_v15 }
0x16a9   :  { %3787 = vadd.xlane.f32.xlu1 %v3784_v55 }
0x16ad   :  { %3843 = vadd.xlane.f32.xlu1 %v3842_v1 }
0x16bd   :  { %3825 = vbcast.lane.b32.xlu0 %v3823_v50, 256 }
0x16be   :  { %3818 = vbcast.lane.b32.xlu1 %v3816_v17, 256 }
0x1734   :  { %v3786_v19 = vpop.xlane.xlu0 %3785 }
0x1735   :  { %v3789_v21 = vmul.f32 0.0078125, %v3786_v19 }
0x1736   :  { %v3788_v23 = vpop.xlane.xlu1 %3787 }
0x1737   :  { %v3791_v5 = vadd.f32 1e-12, %v3789_v21  ;;  %v3790_v18 = vmul.f32 0.0078125, %v3788_v23 }
0x1738   :  { %v3826_v16 = vpop.permute.xlu0 %3825 }
0x1739   :  { %4836 = vrsqrt.f32 %v3791_v5  ;;  %v3792_v22 = vadd.f32 1e-12, %v3790_v18 }
0x173a   :  { %v3844_v54 = vpop.xlane.xlu1 %3843 }
0x173b   :  { %4838 = vrsqrt.f32 %v3792_v22  ;;  %v3845_v25 = vmax.f32 %v3844_v54, 1e-09 }
0x173d   :  { %v3847_v13 = vrot.slane %v3845_v25, 1 }
0x173e   :  { %v3819_v29 = vpop.permute.xlu1 %3818 }
0x173f   :  { %4840 = vrcp.f32 %v3847_v13 }
0x1740   :  { %4842 = vrcp.f32 %v3845_v25 }
0x1743   :  { %v4837_v56 = vpop.eup %4836 }
0x1744   :  { %v3795_v24 = vmul.f32 %v4837_v56, %v3781_v14 }
0x1745   :  { %v4839_v12 = vpop.eup %4838 }
0x1746   :  { %v3803_v26 = vmul.f32 %v4079_v10, %v3795_v24  ;;  %v3796_v27 = vmul.f32 %v4839_v12, %v3782_v15 }
0x1748   :  { %v3811_v30 = vadd.f32 %v4080_v11, %v3803_v26  ;;  %v3804_v31 = vmul.f32 %v4079_v10, %v3796_v27 }
0x1749   :  { %v4841_v49 = vpop.eup %4840 }
0x174a   :  { %v3827_v28 = vmul.f32 %v3819_v29, %v3811_v30  ;;  %v3812_v32 = vadd.f32 %v4080_v11, %v3804_v31  ;;  %v4843_v52 = vpop.eup %4842 }
0x174c   :  { %v3829_v33 = vrot.slane %v3827_v28, 4  ;;  %v3828_v43 = vmul.f32 %v3826_v16, %v3812_v32 }
0x174e   :  { %v3830_v35 = vadd.f32 %v3829_v33, %v3827_v28  ;;  %v3835_v36 = vrot.slane %v3828_v43, 4 }
0x1750   :  { %v3831_v41 = vrot.slane %v3830_v35, 2  ;;  %v3836_v37 = vadd.f32 %v3835_v36, %v3828_v43 }
0x1752   :  { %v3832_v40 = vadd.f32 %v3831_v41, %v3830_v35  ;;  %v3837_v44 = vrot.slane %v3836_v37, 2 }
0x1754   :  { %v3833_v20 = vrot.slane %v3832_v40, 1  ;;  %v3838_v45 = vadd.f32 %v3837_v44, %v3836_v37 }
0x1756   :  { %v3839_v46 = vrot.slane %v3838_v45, 1  ;;  %v3834_v34 = vadd.f32 %v3833_v20, %v3832_v40 }
0x1758   :  { %v3840_v42 = vadd.f32 %v3839_v46, %v3838_v45  ;;  %v3851_v48 = vmul.f32 %v4843_v52, %v3834_v34 }
0x175a   :  { %v3853_v53 = vmul.f32 %v4841_v49, %v3840_v42 }
0x175c   :  { %v3856_v47 = vrot.slane %v3853_v53, 7 }
0x175e   :  { %v3858_v57 = vsel %vm3857_vm9, %v3856_v47, %v3851_v48 }
0x175f   :  { %3860 = vst [vmem:[#allocation13] sm:$0x3] %v3858_v57 }
0x1760   :  { %4988 = shalt.err (!%p4985_p10)
}
0x1761   :  { %s4989_s23 = scalar_lea.hbm %s5799_s18, 32 }
0x1762   :  { %p4990_p11 = scmp.ne.s32.totalorder %s5799_s18, %s4989_s23  ;;  %p4993_p12 = scmp.lt.u32.totalorder %s4989_s23, %s5799_s18 }
0x1764   :  { %p4995_p13 = pnand %p4993_p12, %p4990_p11 }
0x1766   :  { %4998 = shalt.err (!%p4995_p13)
}
0x1767   :  { %3870 = dma.vmem_to_hbm [thread:$0]  %s3868_s17, 32, %s5799_s18, [#allocation4]  }
0x1768   :  { %5007 = dma.done.wait [#allocation4], 32  }
0x1769   :  { %5008 = vsyncadd [#allocation4], 4294967264 }
0x176a   :  { %3874 = vsyncpa [#allocation3], 1 }
0x176b   :  { %3875 = vsyncpa [#allocation6], 1 }
0x176c   :  { %3876 = vsyncpa [#allocation9], 1 }
0x176d   :  { %3877 = vsyncpa [#allocation12], 1 }
0x176e   :  { %3878 = vsyncpa [#allocation4], 1 }

</bundles_post_ra>
